<compile_context>
chip_gen: v7x
topology: tpu7x:2x2x1
jax: 0.10.0
libtpu: 0.0.40
codegen_flags: <defaults>
</compile_context>

<pallas_src>
import functools

import jax
import jax.numpy as jnp
from jax.experimental import pallas as pl
from jax.experimental.pallas import tpu as pltpu


# ------------------------------ fused kernel -------------------------------

def _adda_fused_kernel(x_ref, w1_ref, b1_ref, w2_ref, b2_ref, wh_ref, bh_ref,
                       o_ref, h1p_ref):
    # x_ref : (1, H+2, W+2, Cin) f32   spatially pre-padded NHWC input block
    # w1_ref: (9, Cin, C1P) bf16       b1_ref: (1, C1P) f32
    # w2_ref: (9*C1P, C2P)  bf16       b2_ref: (1, C2P) f32
    # wh_ref: (C2P, NCP)    f32        bh_ref: (1, NCP) f32
    # o_ref : (1, 1, NCP)   f32
    # h1p_ref: VMEM scratch (H+2, W+2, C1P) bf16  (conv1 output + zero halo)
    hp2, wp2, cin = x_ref.shape[1], x_ref.shape[2], x_ref.shape[3]
    H, W = hp2 - 2, wp2 - 2
    HW = H * W
    c1p = w1_ref.shape[2]
    c2p = w2_ref.shape[1]
    cdt = jnp.bfloat16

    # ---- conv1 (3x3, SAME): im2col fused as 9 shifted views + MXU dots ----
    x = x_ref[0].astype(cdt)                                  # (H+2, W+2, Cin)
    acc1 = jnp.zeros((HW, c1p), jnp.float32)
    for di in range(3):
        for dj in range(3):
            xs = x[di:di + H, dj:dj + W, :].reshape(HW, cin)
            acc1 = acc1 + jnp.dot(xs, w1_ref[di * 3 + dj],
                                  preferred_element_type=jnp.float32)
    h1 = jnp.maximum(acc1 + b1_ref[...], 0.0)                 # (HW, C1P) f32

    # stage conv1 output (with zero halo) in VMEM for conv2 — no HBM round trip
    h1p_ref[...] = jnp.zeros(h1p_ref.shape, h1p_ref.dtype)
    h1p_ref[1:H + 1, 1:W + 1, :] = h1.reshape(H, W, c1p).astype(cdt)

    # ---- conv2 (3x3, SAME): single MXU dot with K = 9*C1P ----
    # Lane-aligned concat of the 9 shifted views (pure placement, no shuffles);
    # weight is pre-packed tap-major / channel-minor to match.
    patches = jnp.concatenate(
        [h1p_ref[di:di + H, dj:dj + W, :].reshape(HW, c1p)
         for di in range(3) for dj in range(3)],
        axis=-1)                                              # (HW, 9*C1P) bf16
    acc2 = jnp.dot(patches, w2_ref[...], preferred_element_type=jnp.float32)
    h2 = jnp.maximum(acc2 + b2_ref[...], 0.0)                 # (HW, C2P) f32

    # ---- AdaptiveAvgPool2d(1) as an MXU reduction, fused with the head ----
    pool = jnp.full((1, HW), 1.0 / HW, jnp.float32)
    pooled = jnp.dot(pool, h2, preferred_element_type=jnp.float32)     # (1, C2P)
    logits = jnp.dot(pooled, wh_ref[...], preferred_element_type=jnp.float32)
    o_ref[0] = (logits + bh_ref[...]).astype(o_ref.dtype)


# ------------------------------- wrapper ------------------------------------

def adda_forward(p, x_nchw, *, num_classes):
    """ADDAModel.forward: feature_extractor_tgt -> global_pool -> [:, :, 0, 0] -> head."""
    x = jnp.transpose(x_nchw, (0, 2, 3, 1)).astype(jnp.float32)      # NCHW -> NHWC
    B, H, W, cin = x.shape
    xpad = jnp.pad(x, ((0, 0), (1, 1), (1, 1), (0, 0)))              # SAME halo
    c1p = p["w1"].shape[2]
    kc1p, c2p = p["w2"].shape
    ncp = p["wh"].shape[1]
    HW = H * W

    flops = B * (2 * HW * 9 * cin * c1p
                 + 2 * HW * kc1p * c2p
                 + 2 * HW * c2p
                 + 2 * c2p * ncp)
    bytes_accessed = (xpad.size * 4
                      + p["w1"].size * 2 + p["w2"].size * 2
                      + p["wh"].size * 4
                      + (p["b1"].size + p["b2"].size + p["bh"].size) * 4
                      + B * ncp * 4)

    out = pl.pallas_call(
        _adda_fused_kernel,
        out_shape=jax.ShapeDtypeStruct((B, 1, ncp), jnp.float32),
        grid=(B,),
        in_specs=[
            pl.BlockSpec((1, H + 2, W + 2, cin), lambda b: (b, 0, 0, 0)),
            pl.BlockSpec((9, cin, c1p), lambda b: (0, 0, 0)),
            pl.BlockSpec((1, c1p), lambda b: (0, 0)),
            pl.BlockSpec((kc1p, c2p), lambda b: (0, 0)),
            pl.BlockSpec((1, c2p), lambda b: (0, 0)),
            pl.BlockSpec((c2p, ncp), lambda b: (0, 0)),
            pl.BlockSpec((1, ncp), lambda b: (0, 0)),
        ],
        out_specs=pl.BlockSpec((1, 1, ncp), lambda b: (b, 0, 0)),
        scratch_shapes=[pltpu.VMEM((H + 2, W + 2, c1p), jnp.bfloat16)],
        compiler_params=pltpu.CompilerParams(
            dimension_semantics=("parallel",)),
        cost_estimate=pl.CostEstimate(flops=flops, transcendentals=0,
                                      bytes_accessed=bytes_accessed),
    )(xpad, p["w1"], p["b1"], p["w2"], p["b2"], p["wh"], p["bh"])

    return out.reshape(B, ncp)[:, :num_classes]


# --------------------------- parameter handling ------------------------------

def init_params(key, c_in=4, c1=32, c_feat=64, num_classes=10):
    ks = jax.random.split(key, 6)
    s1 = 1.0 / (9 * c_in) ** 0.5
    s2 = 1.0 / (9 * c1) ** 0.5
    sh = 1.0 / c_feat ** 0.5
    return {
        # conv weights stored as (kh, kw, Cin, Cout); equivalent to PyTorch
        # (Cout, Cin, kh, kw) transposed to (kh, kw, Cin, Cout).
        "w1": jax.random.uniform(ks[0], (3, 3, c_in, c1), jnp.float32, -s1, s1),
        "b1": jax.random.uniform(ks[1], (c1,), jnp.float32, -s1, s1),
        "w2": jax.random.uniform(ks[2], (3, 3, c1, c_feat), jnp.float32, -s2, s2),
        "b2": jax.random.uniform(ks[3], (c_feat,), jnp.float32, -s2, s2),
        "w_head": jax.random.uniform(ks[4], (c_feat, num_classes), jnp.float32, -sh, sh),
        "b_head": jax.random.uniform(ks[5], (num_classes,), jnp.float32, -sh, sh),
    }
    # TODO(synk): forward_gan / forward_dsc (discriminator MLP + dropout) are not
    # exercised by forward(); dropout has no deterministic inference-path effect.


def prepare_params(raw, *, c1p=128, c2p=128, ncp=128):
    """One-time reshape/pad/cast (hoisted out of the forward path).
    conv1 weight -> (9, Cin, C1P) bf16; conv2 weight packed tap-major to
    (9*C1P, C2P) bf16 for the single in-kernel K=9*C1P MXU dot; biases/head
    padded to 128 lanes (f32).  Padded entries are zero so padded lanes stay
    exactly zero through ReLU, pooling and the head."""
    c_in, c1 = raw["w1"].shape[2], raw["w1"].shape[3]
    c2 = raw["w2"].shape[3]
    nc = raw["w_head"].shape[1]
    w1 = jnp.pad(raw["w1"].reshape(9, c_in, c1),
                 ((0, 0), (0, 0), (0, c1p - c1))).astype(jnp.bfloat16)
    b1 = jnp.pad(raw["b1"], (0, c1p - c1)).reshape(1, c1p).astype(jnp.float32)
    w2 = jnp.pad(raw["w2"],
                 ((0, 0), (0, 0), (0, c1p - c1), (0, c2p - c2)))
    w2 = w2.reshape(9 * c1p, c2p).astype(jnp.bfloat16)
    b2 = jnp.pad(raw["b2"], (0, c2p - c2)).reshape(1, c2p).astype(jnp.float32)
    wh = jnp.pad(raw["w_head"], ((0, c2p - c2), (0, ncp - nc))).astype(jnp.float32)
    bh = jnp.pad(raw["b_head"], (0, ncp - nc)).reshape(1, ncp).astype(jnp.float32)
    return {"w1": w1, "b1": b1, "w2": w2, "b2": b2, "wh": wh, "bh": bh}


if __name__ == "__main__":
    key = jax.random.PRNGKey(0)
    pkey, xkey = jax.random.split(key)
    params = prepare_params(init_params(pkey))

    # PyTorch-convention NCHW input: batch=2, channels=4, spatial=16x16.
    x = jax.random.normal(xkey, (2, 4, 16, 16), dtype=jnp.float32)

    fwd = jax.jit(functools.partial(adda_forward, num_classes=10))
    out = jax.block_until_ready(fwd(params, x))
    assert out.shape == (2, 10) and out.dtype == jnp.float32
    print("KERNEL_OK")
</pallas_src>

<mosaic_0001>
module attributes {stable_mosaic.version = 11 : i64} {
  func.func @_adda_fused_kernel(%arg0: i32, %arg1: memref<1x18x18x4xf32, #tpu.memory_space<vmem>>, %arg2: memref<9x4x128xbf16, #tpu.memory_space<vmem>>, %arg3: memref<1x128xf32, #tpu.memory_space<vmem>>, %arg4: memref<1152x128xbf16, #tpu.memory_space<vmem>>, %arg5: memref<1x128xf32, #tpu.memory_space<vmem>>, %arg6: memref<128x128xf32, #tpu.memory_space<vmem>>, %arg7: memref<1x128xf32, #tpu.memory_space<vmem>>, %arg8: memref<1x1x128xf32, #tpu.memory_space<vmem>>, %arg9: memref<18x18x128xbf16, #tpu.memory_space<vmem>>) attributes {dimension_semantics = [#tpu.dimension_semantics<parallel>], iteration_bounds = array<i64: 2>, scalar_prefetch = 0 : i64, scratch_operands = 1 : i64, tpu.core_type = #tpu.core_type<tc>, window_params = [{transform_indices = @transform_0, window_bounds = array<i64: 1, 18, 18, 4>}, {pipeline_mode = #tpu.pipeline_mode<synchronous>, transform_indices = @transform_1, window_bounds = array<i64: 9, 4, 128>}, {pipeline_mode = #tpu.pipeline_mode<synchronous>, transform_indices = @transform_2, window_bounds = array<i64: 1, 128>}, {pipeline_mode = #tpu.pipeline_mode<synchronous>, transform_indices = @transform_3, window_bounds = array<i64: 1152, 128>}, {pipeline_mode = #tpu.pipeline_mode<synchronous>, transform_indices = @transform_4, window_bounds = array<i64: 1, 128>}, {pipeline_mode = #tpu.pipeline_mode<synchronous>, transform_indices = @transform_5, window_bounds = array<i64: 128, 128>}, {pipeline_mode = #tpu.pipeline_mode<synchronous>, transform_indices = @transform_6, window_bounds = array<i64: 1, 128>}, {transform_indices = @transform_7, window_bounds = array<i64: 1, 1, 128>}]} {
    %c0 = arith.constant 0 : index
    %c0_0 = arith.constant 0 : index
    %c0_1 = arith.constant 0 : index
    %c0_2 = arith.constant 0 : index
    %0 = vector.load %arg1[%c0, %c0_0, %c0_1, %c0_2] : memref<1x18x18x4xf32, #tpu.memory_space<vmem>>, vector<1x18x18x4xf32>
    %1 = vector.shape_cast %0 : vector<1x18x18x4xf32> to vector<18x18x4xf32>
    %2 = arith.truncf %1 : vector<18x18x4xf32> to vector<18x18x4xbf16>
    %cst = arith.constant 0.000000e+00 : f32
    %3 = vector.broadcast %cst : f32 to vector<256x128xf32>
    %4 = vector.extract_strided_slice %2 {offsets = [0, 0, 0], sizes = [16, 16, 4], strides = [1, 1, 1]} : vector<18x18x4xbf16> to vector<16x16x4xbf16>
    %5 = vector.shape_cast %4 : vector<16x16x4xbf16> to vector<256x4xbf16>
    %c0_3 = arith.constant 0 : index
    %c0_4 = arith.constant 0 : index
    %c0_5 = arith.constant 0 : index
    %6 = vector.load %arg2[%c0_3, %c0_4, %c0_5] : memref<9x4x128xbf16, #tpu.memory_space<vmem>>, vector<1x4x128xbf16>
    %7 = vector.shape_cast %6 : vector<1x4x128xbf16> to vector<4x128xbf16>
    %cst_6 = arith.constant dense<0.000000e+00> : vector<256x128xf32>
    %8 = tpu.matmul %5, %7, %cst_6 {dimension_numbers = #tpu.dot_dimension_numbers<[1], [0], [0], [1], [0, 0, 1, 1], [], []>} : vector<256x4xbf16>, vector<4x128xbf16>, vector<256x128xf32> -> vector<256x128xf32>
    %9 = arith.addf %3, %8 : vector<256x128xf32>
    %10 = vector.extract_strided_slice %2 {offsets = [0, 1, 0], sizes = [16, 16, 4], strides = [1, 1, 1]} : vector<18x18x4xbf16> to vector<16x16x4xbf16>
    %11 = vector.shape_cast %10 : vector<16x16x4xbf16> to vector<256x4xbf16>
    %c1 = arith.constant 1 : index
    %c0_7 = arith.constant 0 : index
    %c0_8 = arith.constant 0 : index
    %12 = vector.load %arg2[%c1, %c0_7, %c0_8] : memref<9x4x128xbf16, #tpu.memory_space<vmem>>, vector<1x4x128xbf16>
    %13 = vector.shape_cast %12 : vector<1x4x128xbf16> to vector<4x128xbf16>
    %cst_9 = arith.constant dense<0.000000e+00> : vector<256x128xf32>
    %14 = tpu.matmul %11, %13, %cst_9 {dimension_numbers = #tpu.dot_dimension_numbers<[1], [0], [0], [1], [0, 0, 1, 1], [], []>} : vector<256x4xbf16>, vector<4x128xbf16>, vector<256x128xf32> -> vector<256x128xf32>
    %15 = arith.addf %9, %14 : vector<256x128xf32>
    %16 = vector.extract_strided_slice %2 {offsets = [0, 2, 0], sizes = [16, 16, 4], strides = [1, 1, 1]} : vector<18x18x4xbf16> to vector<16x16x4xbf16>
    %17 = vector.shape_cast %16 : vector<16x16x4xbf16> to vector<256x4xbf16>
    %c2 = arith.constant 2 : index
    %c0_10 = arith.constant 0 : index
    %c0_11 = arith.constant 0 : index
    %18 = vector.load %arg2[%c2, %c0_10, %c0_11] : memref<9x4x128xbf16, #tpu.memory_space<vmem>>, vector<1x4x128xbf16>
    %19 = vector.shape_cast %18 : vector<1x4x128xbf16> to vector<4x128xbf16>
    %cst_12 = arith.constant dense<0.000000e+00> : vector<256x128xf32>
    %20 = tpu.matmul %17, %19, %cst_12 {dimension_numbers = #tpu.dot_dimension_numbers<[1], [0], [0], [1], [0, 0, 1, 1], [], []>} : vector<256x4xbf16>, vector<4x128xbf16>, vector<256x128xf32> -> vector<256x128xf32>
    %21 = arith.addf %15, %20 : vector<256x128xf32>
    %22 = vector.extract_strided_slice %2 {offsets = [1, 0, 0], sizes = [16, 16, 4], strides = [1, 1, 1]} : vector<18x18x4xbf16> to vector<16x16x4xbf16>
    %23 = vector.shape_cast %22 : vector<16x16x4xbf16> to vector<256x4xbf16>
    %c3 = arith.constant 3 : index
    %c0_13 = arith.constant 0 : index
    %c0_14 = arith.constant 0 : index
    %24 = vector.load %arg2[%c3, %c0_13, %c0_14] : memref<9x4x128xbf16, #tpu.memory_space<vmem>>, vector<1x4x128xbf16>
    %25 = vector.shape_cast %24 : vector<1x4x128xbf16> to vector<4x128xbf16>
    %cst_15 = arith.constant dense<0.000000e+00> : vector<256x128xf32>
    %26 = tpu.matmul %23, %25, %cst_15 {dimension_numbers = #tpu.dot_dimension_numbers<[1], [0], [0], [1], [0, 0, 1, 1], [], []>} : vector<256x4xbf16>, vector<4x128xbf16>, vector<256x128xf32> -> vector<256x128xf32>
    %27 = arith.addf %21, %26 : vector<256x128xf32>
    %28 = vector.extract_strided_slice %2 {offsets = [1, 1, 0], sizes = [16, 16, 4], strides = [1, 1, 1]} : vector<18x18x4xbf16> to vector<16x16x4xbf16>
    %29 = vector.shape_cast %28 : vector<16x16x4xbf16> to vector<256x4xbf16>
    %c4 = arith.constant 4 : index
    %c0_16 = arith.constant 0 : index
    %c0_17 = arith.constant 0 : index
    %30 = vector.load %arg2[%c4, %c0_16, %c0_17] : memref<9x4x128xbf16, #tpu.memory_space<vmem>>, vector<1x4x128xbf16>
    %31 = vector.shape_cast %30 : vector<1x4x128xbf16> to vector<4x128xbf16>
    %cst_18 = arith.constant dense<0.000000e+00> : vector<256x128xf32>
    %32 = tpu.matmul %29, %31, %cst_18 {dimension_numbers = #tpu.dot_dimension_numbers<[1], [0], [0], [1], [0, 0, 1, 1], [], []>} : vector<256x4xbf16>, vector<4x128xbf16>, vector<256x128xf32> -> vector<256x128xf32>
    %33 = arith.addf %27, %32 : vector<256x128xf32>
    %34 = vector.extract_strided_slice %2 {offsets = [1, 2, 0], sizes = [16, 16, 4], strides = [1, 1, 1]} : vector<18x18x4xbf16> to vector<16x16x4xbf16>
    %35 = vector.shape_cast %34 : vector<16x16x4xbf16> to vector<256x4xbf16>
    %c5 = arith.constant 5 : index
    %c0_19 = arith.constant 0 : index
    %c0_20 = arith.constant 0 : index
    %36 = vector.load %arg2[%c5, %c0_19, %c0_20] : memref<9x4x128xbf16, #tpu.memory_space<vmem>>, vector<1x4x128xbf16>
    %37 = vector.shape_cast %36 : vector<1x4x128xbf16> to vector<4x128xbf16>
    %cst_21 = arith.constant dense<0.000000e+00> : vector<256x128xf32>
    %38 = tpu.matmul %35, %37, %cst_21 {dimension_numbers = #tpu.dot_dimension_numbers<[1], [0], [0], [1], [0, 0, 1, 1], [], []>} : vector<256x4xbf16>, vector<4x128xbf16>, vector<256x128xf32> -> vector<256x128xf32>
    %39 = arith.addf %33, %38 : vector<256x128xf32>
    %40 = vector.extract_strided_slice %2 {offsets = [2, 0, 0], sizes = [16, 16, 4], strides = [1, 1, 1]} : vector<18x18x4xbf16> to vector<16x16x4xbf16>
    %41 = vector.shape_cast %40 : vector<16x16x4xbf16> to vector<256x4xbf16>
    %c6 = arith.constant 6 : index
    %c0_22 = arith.constant 0 : index
    %c0_23 = arith.constant 0 : index
    %42 = vector.load %arg2[%c6, %c0_22, %c0_23] : memref<9x4x128xbf16, #tpu.memory_space<vmem>>, vector<1x4x128xbf16>
    %43 = vector.shape_cast %42 : vector<1x4x128xbf16> to vector<4x128xbf16>
    %cst_24 = arith.constant dense<0.000000e+00> : vector<256x128xf32>
    %44 = tpu.matmul %41, %43, %cst_24 {dimension_numbers = #tpu.dot_dimension_numbers<[1], [0], [0], [1], [0, 0, 1, 1], [], []>} : vector<256x4xbf16>, vector<4x128xbf16>, vector<256x128xf32> -> vector<256x128xf32>
    %45 = arith.addf %39, %44 : vector<256x128xf32>
    %46 = vector.extract_strided_slice %2 {offsets = [2, 1, 0], sizes = [16, 16, 4], strides = [1, 1, 1]} : vector<18x18x4xbf16> to vector<16x16x4xbf16>
    %47 = vector.shape_cast %46 : vector<16x16x4xbf16> to vector<256x4xbf16>
    %c7 = arith.constant 7 : index
    %c0_25 = arith.constant 0 : index
    %c0_26 = arith.constant 0 : index
    %48 = vector.load %arg2[%c7, %c0_25, %c0_26] : memref<9x4x128xbf16, #tpu.memory_space<vmem>>, vector<1x4x128xbf16>
    %49 = vector.shape_cast %48 : vector<1x4x128xbf16> to vector<4x128xbf16>
    %cst_27 = arith.constant dense<0.000000e+00> : vector<256x128xf32>
    %50 = tpu.matmul %47, %49, %cst_27 {dimension_numbers = #tpu.dot_dimension_numbers<[1], [0], [0], [1], [0, 0, 1, 1], [], []>} : vector<256x4xbf16>, vector<4x128xbf16>, vector<256x128xf32> -> vector<256x128xf32>
    %51 = arith.addf %45, %50 : vector<256x128xf32>
    %52 = vector.extract_strided_slice %2 {offsets = [2, 2, 0], sizes = [16, 16, 4], strides = [1, 1, 1]} : vector<18x18x4xbf16> to vector<16x16x4xbf16>
    %53 = vector.shape_cast %52 : vector<16x16x4xbf16> to vector<256x4xbf16>
    %c8 = arith.constant 8 : index
    %c0_28 = arith.constant 0 : index
    %c0_29 = arith.constant 0 : index
    %54 = vector.load %arg2[%c8, %c0_28, %c0_29] : memref<9x4x128xbf16, #tpu.memory_space<vmem>>, vector<1x4x128xbf16>
    %55 = vector.shape_cast %54 : vector<1x4x128xbf16> to vector<4x128xbf16>
    %cst_30 = arith.constant dense<0.000000e+00> : vector<256x128xf32>
    %56 = tpu.matmul %53, %55, %cst_30 {dimension_numbers = #tpu.dot_dimension_numbers<[1], [0], [0], [1], [0, 0, 1, 1], [], []>} : vector<256x4xbf16>, vector<4x128xbf16>, vector<256x128xf32> -> vector<256x128xf32>
    %57 = arith.addf %51, %56 : vector<256x128xf32>
    %c0_31 = arith.constant 0 : index
    %c0_32 = arith.constant 0 : index
    %58 = vector.load %arg3[%c0_31, %c0_32] : memref<1x128xf32, #tpu.memory_space<vmem>>, vector<1x128xf32>
    %59 = vector.broadcast %58 : vector<1x128xf32> to vector<256x128xf32>
    %60 = arith.addf %57, %59 : vector<256x128xf32>
    %cst_33 = arith.constant 0.000000e+00 : f32
    %61 = vector.broadcast %cst_33 : f32 to vector<256x128xf32>
    %62 = arith.maximumf %60, %61 : vector<256x128xf32>
    %cst_34 = arith.constant 0.000000e+00 : bf16
    %63 = vector.broadcast %cst_34 : bf16 to vector<18x18x128xbf16>
    %c0_35 = arith.constant 0 : index
    %c0_36 = arith.constant 0 : index
    %c0_37 = arith.constant 0 : index
    %64 = vector.load %arg9[%c0_35, %c0_36, %c0_37] : memref<18x18x128xbf16, #tpu.memory_space<vmem>>, vector<18x18x128xbf16>
    tpu.vector_store %arg9[%c0_35, %c0_36, %c0_37], %63 {strides = array<i32>} : memref<18x18x128xbf16, #tpu.memory_space<vmem>>, vector<18x18x128xbf16>,
    %65 = vector.shape_cast %62 : vector<256x128xf32> to vector<16x16x128xf32>
    %66 = arith.truncf %65 : vector<16x16x128xf32> to vector<16x16x128xbf16>
    %c1_38 = arith.constant 1 : index
    %c1_39 = arith.constant 1 : index
    %c0_40 = arith.constant 0 : index
    %67 = vector.load %arg9[%c1_38, %c1_39, %c0_40] : memref<18x18x128xbf16, #tpu.memory_space<vmem>>, vector<16x16x128xbf16>
    tpu.vector_store %arg9[%c1_38, %c1_39, %c0_40], %66 {strides = array<i32>} : memref<18x18x128xbf16, #tpu.memory_space<vmem>>, vector<16x16x128xbf16>,
    %c0_41 = arith.constant 0 : index
    %c0_42 = arith.constant 0 : index
    %c0_43 = arith.constant 0 : index
    %68 = vector.load %arg9[%c0_41, %c0_42, %c0_43] : memref<18x18x128xbf16, #tpu.memory_space<vmem>>, vector<16x16x128xbf16>
    %69 = vector.shape_cast %68 : vector<16x16x128xbf16> to vector<256x128xbf16>
    %c0_44 = arith.constant 0 : index
    %c1_45 = arith.constant 1 : index
    %c0_46 = arith.constant 0 : index
    %70 = vector.load %arg9[%c0_44, %c1_45, %c0_46] : memref<18x18x128xbf16, #tpu.memory_space<vmem>>, vector<16x16x128xbf16>
    %71 = vector.shape_cast %70 : vector<16x16x128xbf16> to vector<256x128xbf16>
    %c0_47 = arith.constant 0 : index
    %c2_48 = arith.constant 2 : index
    %c0_49 = arith.constant 0 : index
    %72 = vector.load %arg9[%c0_47, %c2_48, %c0_49] : memref<18x18x128xbf16, #tpu.memory_space<vmem>>, vector<16x16x128xbf16>
    %73 = vector.shape_cast %72 : vector<16x16x128xbf16> to vector<256x128xbf16>
    %c1_50 = arith.constant 1 : index
    %c0_51 = arith.constant 0 : index
    %c0_52 = arith.constant 0 : index
    %74 = vector.load %arg9[%c1_50, %c0_51, %c0_52] : memref<18x18x128xbf16, #tpu.memory_space<vmem>>, vector<16x16x128xbf16>
    %75 = vector.shape_cast %74 : vector<16x16x128xbf16> to vector<256x128xbf16>
    %c1_53 = arith.constant 1 : index
    %c1_54 = arith.constant 1 : index
    %c0_55 = arith.constant 0 : index
    %76 = vector.load %arg9[%c1_53, %c1_54, %c0_55] : memref<18x18x128xbf16, #tpu.memory_space<vmem>>, vector<16x16x128xbf16>
    %77 = vector.shape_cast %76 : vector<16x16x128xbf16> to vector<256x128xbf16>
    %c1_56 = arith.constant 1 : index
    %c2_57 = arith.constant 2 : index
    %c0_58 = arith.constant 0 : index
    %78 = vector.load %arg9[%c1_56, %c2_57, %c0_58] : memref<18x18x128xbf16, #tpu.memory_space<vmem>>, vector<16x16x128xbf16>
    %79 = vector.shape_cast %78 : vector<16x16x128xbf16> to vector<256x128xbf16>
    %c2_59 = arith.constant 2 : index
    %c0_60 = arith.constant 0 : index
    %c0_61 = arith.constant 0 : index
    %80 = vector.load %arg9[%c2_59, %c0_60, %c0_61] : memref<18x18x128xbf16, #tpu.memory_space<vmem>>, vector<16x16x128xbf16>
    %81 = vector.shape_cast %80 : vector<16x16x128xbf16> to vector<256x128xbf16>
    %c2_62 = arith.constant 2 : index
    %c1_63 = arith.constant 1 : index
    %c0_64 = arith.constant 0 : index
    %82 = vector.load %arg9[%c2_62, %c1_63, %c0_64] : memref<18x18x128xbf16, #tpu.memory_space<vmem>>, vector<16x16x128xbf16>
    %83 = vector.shape_cast %82 : vector<16x16x128xbf16> to vector<256x128xbf16>
    %c2_65 = arith.constant 2 : index
    %c2_66 = arith.constant 2 : index
    %c0_67 = arith.constant 0 : index
    %84 = vector.load %arg9[%c2_65, %c2_66, %c0_67] : memref<18x18x128xbf16, #tpu.memory_space<vmem>>, vector<16x16x128xbf16>
    %85 = vector.shape_cast %84 : vector<16x16x128xbf16> to vector<256x128xbf16>
    %86 = tpu.concatenate %69, %71, %73, %75, %77, %79, %81, %83, %85 in 1 : vector<256x128xbf16>, vector<256x128xbf16>, vector<256x128xbf16>, vector<256x128xbf16>, vector<256x128xbf16>, vector<256x128xbf16>, vector<256x128xbf16>, vector<256x128xbf16>, vector<256x128xbf16> -> vector<256x1152xbf16>
    %c0_68 = arith.constant 0 : index
    %c0_69 = arith.constant 0 : index
    %87 = vector.load %arg4[%c0_68, %c0_69] : memref<1152x128xbf16, #tpu.memory_space<vmem>>, vector<1152x128xbf16>
    %cst_70 = arith.constant dense<0.000000e+00> : vector<256x128xf32>
    %88 = tpu.matmul %86, %87, %cst_70 {dimension_numbers = #tpu.dot_dimension_numbers<[1], [0], [0], [1], [0, 0, 1, 1], [], []>} : vector<256x1152xbf16>, vector<1152x128xbf16>, vector<256x128xf32> -> vector<256x128xf32>
    %c0_71 = arith.constant 0 : index
    %c0_72 = arith.constant 0 : index
    %89 = vector.load %arg5[%c0_71, %c0_72] : memref<1x128xf32, #tpu.memory_space<vmem>>, vector<1x128xf32>
    %90 = vector.broadcast %89 : vector<1x128xf32> to vector<256x128xf32>
    %91 = arith.addf %88, %90 : vector<256x128xf32>
    %cst_73 = arith.constant 0.000000e+00 : f32
    %92 = vector.broadcast %cst_73 : f32 to vector<256x128xf32>
    %93 = arith.maximumf %91, %92 : vector<256x128xf32>
    %cst_74 = arith.constant 3.906250e-03 : f32
    %94 = vector.broadcast %cst_74 : f32 to vector<1x256xf32>
    %cst_75 = arith.constant dense<0.000000e+00> : vector<1x128xf32>
    %95 = tpu.matmul %94, %93, %cst_75 {dimension_numbers = #tpu.dot_dimension_numbers<[1], [0], [0], [1], [0, 0, 1, 1], [], []>} : vector<1x256xf32>, vector<256x128xf32>, vector<1x128xf32> -> vector<1x128xf32>
    %c0_76 = arith.constant 0 : index
    %c0_77 = arith.constant 0 : index
    %96 = vector.load %arg6[%c0_76, %c0_77] : memref<128x128xf32, #tpu.memory_space<vmem>>, vector<128x128xf32>
    %cst_78 = arith.constant dense<0.000000e+00> : vector<1x128xf32>
    %97 = tpu.matmul %95, %96, %cst_78 {dimension_numbers = #tpu.dot_dimension_numbers<[1], [0], [0], [1], [0, 0, 1, 1], [], []>} : vector<1x128xf32>, vector<128x128xf32>, vector<1x128xf32> -> vector<1x128xf32>
    %c0_79 = arith.constant 0 : index
    %c0_80 = arith.constant 0 : index
    %98 = vector.load %arg7[%c0_79, %c0_80] : memref<1x128xf32, #tpu.memory_space<vmem>>, vector<1x128xf32>
    %99 = arith.addf %97, %98 : vector<1x128xf32>
    %c0_81 = arith.constant 0 : index
    %c0_82 = arith.constant 0 : index
    %c0_83 = arith.constant 0 : index
    %100 = vector.load %arg8[%c0_81, %c0_82, %c0_83] : memref<1x1x128xf32, #tpu.memory_space<vmem>>, vector<1x1x128xf32>
    %101 = vector.shape_cast %100 : vector<1x1x128xf32> to vector<1x128xf32>
    %102 = vector.shape_cast %99 : vector<1x128xf32> to vector<1x1x128xf32>
    tpu.vector_store %arg8[%c0_81, %c0_82, %c0_83], %102 {strides = array<i32>} : memref<1x1x128xf32, #tpu.memory_space<vmem>>, vector<1x1x128xf32>,
    return
  }
  func.func @transform_0(%arg0: i32) -> (i32, i32, i32, i32) {
    %c0_i32 = arith.constant 0 : i32
    %c0_i32_0 = arith.constant 0 : i32
    %c0_i32_1 = arith.constant 0 : i32
    %c0_i32_2 = arith.constant 0 : i32
    return %arg0, %c0_i32, %c0_i32_0, %c0_i32_1 : i32, i32, i32, i32
  }
  func.func @transform_1(%arg0: i32) -> (i32, i32, i32) {
    %c0_i32 = arith.constant 0 : i32
    %c0_i32_0 = arith.constant 0 : i32
    %c0_i32_1 = arith.constant 0 : i32
    %c0_i32_2 = arith.constant 0 : i32
    return %c0_i32, %c0_i32_0, %c0_i32_1 : i32, i32, i32
  }
  func.func @transform_2(%arg0: i32) -> (i32, i32) {
    %c0_i32 = arith.constant 0 : i32
    %c0_i32_0 = arith.constant 0 : i32
    %c0_i32_1 = arith.constant 0 : i32
    return %c0_i32, %c0_i32_0 : i32, i32
  }
  func.func @transform_3(%arg0: i32) -> (i32, i32) {
    %c0_i32 = arith.constant 0 : i32
    %c0_i32_0 = arith.constant 0 : i32
    %c0_i32_1 = arith.constant 0 : i32
    return %c0_i32, %c0_i32_0 : i32, i32
  }
  func.func @transform_4(%arg0: i32) -> (i32, i32) {
    %c0_i32 = arith.constant 0 : i32
    %c0_i32_0 = arith.constant 0 : i32
    %c0_i32_1 = arith.constant 0 : i32
    return %c0_i32, %c0_i32_0 : i32, i32
  }
  func.func @transform_5(%arg0: i32) -> (i32, i32) {
    %c0_i32 = arith.constant 0 : i32
    %c0_i32_0 = arith.constant 0 : i32
    %c0_i32_1 = arith.constant 0 : i32
    return %c0_i32, %c0_i32_0 : i32, i32
  }
  func.func @transform_6(%arg0: i32) -> (i32, i32) {
    %c0_i32 = arith.constant 0 : i32
    %c0_i32_0 = arith.constant 0 : i32
    %c0_i32_1 = arith.constant 0 : i32
    return %c0_i32, %c0_i32_0 : i32, i32
  }
  func.func @transform_7(%arg0: i32) -> (i32, i32, i32) {
    %c0_i32 = arith.constant 0 : i32
    %c0_i32_0 = arith.constant 0 : i32
    %c0_i32_1 = arith.constant 0 : i32
    return %arg0, %c0_i32, %c0_i32_0 : i32, i32, i32
  }
}

</mosaic_0001>

<bundles_post_ra>
// kernel: adda_forward.1
= control target key start
LH: loop header
LB: loop body
LE: loop exit
PB: predicated region body
PF: predicated region fallthrough
CT: control target
= control target key end

     0   :  { %12 = vsyncpa [#allocation4], 0  ;;  %s12580_s0 = inlined_call_operand.vmem [shape: f32[2,18,18,4], index: 0, kind: input, shape index: {}]   ;;  %s12581_s1 = inlined_call_operand.vmem [shape: bf16[9,4,128], index: 1, kind: input, shape index: {}]   ;;  %s12582_s2 = inlined_call_operand.vmem [shape: f32[1,128], index: 2, kind: input, shape index: {}]   ;;  %s12583_s3 = inlined_call_operand.vmem [shape: bf16[1152,128], index: 3, kind: input, shape index: {}]   ;;  %s12584_s4 = inlined_call_operand.vmem [shape: f32[1,128], index: 4, kind: input, shape index: {}]   ;;  %s12585_s5 = inlined_call_operand.vmem [shape: f32[128,128], index: 5, kind: input, shape index: {}]   ;;  %s12586_s6 = inlined_call_operand.vmem [shape: f32[1,128], index: 6, kind: input, shape index: {}]   ;;  %s12587_s7 = inlined_call_operand.hbm [shape: f32[2,1,128], index: 7, kind: output, shape index: {}]  }
   0x1   :  { %14 = vsyncpa [#allocation4 + $0x1], 0  ;;  %s9497_s24 = smov 0   ;;  %s9499_s25 = smov 0  }
   0x2   :  { %s9501_s26 = smov 0   ;;  %s9503_s27 = smov 0  }
   0x3 LB: > { %s9518_s28 = sadd.s32 4294967295, %s9449_s27   ;;  %s7301_s29 = sadd.s32 4294967294, %s9449_s27   ;;  %s9449_s27 = sphi %s9503_s27, %s12780_s27   ;;  %s9445_s26 = sphi %s9501_s26, %s12779_s26   ;;  %s9441_s25 = sphi %s9499_s25, %s12778_s25   ;;  %s9437_s24 = sphi %s9497_s24, %s12777_s24  }
   0x4   : > { %s9522_s30 = sadd.s32 1, %s9449_s27   ;;  %s179_s8 = sadd.s32 1, %s9445_s26 }
   0x5   : > { %s176_s9 = ssub.s32 %s9449_s27, %s9522_s30  ;;  %p189_p0 = scmp.ne.s32.totalorder %s9445_s26, %s9441_s25 }
   0x6   : > { %p177_p1 = scmp.eq.s32.totalorder %s176_s9, 0  ;;  %p190_p2 = scmp.eq.s32.totalorder %s9518_s28, 1 }
   0x7   : > { %p195_p3 = scmp.ne.s32.totalorder %s9441_s25, %s9437_s24  ;;  %p196_p4 = scmp.eq.s32.totalorder %s7301_s29, 1 }
   0x8   : > { %s9533_s10 = scalar_select %p177_p1, %s9445_s26, %s179_s8  }
   0x9   : > { %p9535_p5 = por %p190_p2, %p189_p0  ;;  %p9539_p6 = por %p196_p4, %p195_p3 }
   0xa   : > { %p7304_p7 = scmp.ge.s32.totalorder %s9449_s27, 1  ;;  %p240_p8 = scmp.lt.s32.totalorder %s9449_s27, 3 }
   0xc   : > { %p241_p9 = pnand %p7304_p7, %p240_p8 }
   0xe   : > { %244 = sbr.rel (%p241_p9) target bundleno = 2073 (0x819), region = 48 }
  0x15   : > { %v7306_v0 = vld [vmem:[%s12581_s1 + $0x2] sm:$0x3]  ;;  %vm612_vm0 = vcmask 1041408   ;;  %p271_p10 = scmp.lt.s32.totalorder %s9518_s28, 1  ;;  %v367_v2 = vld [vmem:[%s12581_s1] sm:$0x3] }
  0x16   : > { %9169 = vmatprep.subr.msk.bf16.mxu0 %vm612_vm0, %v7306_v0  ;;  %v614_v1 = vsel %vm612_vm0, %v7306_v0, 0  ;;  %vm368_vm1 = vsmask.f32 7424  ;;  %vm563_vm2 = vcmask 31744   ;;  %v810_v16 = vsel %vm612_vm0, %v367_v2, 0  ;;  %s269_s23 = sand.u32 1, %s9441_s25  }
  0x17   : > { %8469 = vmatpush3.bf16.msra.mxu0 %v614_v1  ;;  %s272_s17 = scalar_select %p271_p10, %s9518_s28, 1  ;;  %v9623_v59 = vld [vmem:[%s12581_s1 + $0x4] sm:$0x3]  ;;  %vm1005_vm3 = vcmask 1046528   ;;  %vm3248_vm4 = vsmask.f32 3328 }
  0x18   : > { %9170 = vmatprep.subr.msk.bf16.mxu0 %vm612_vm0, %v367_v2  ;;  %vm3249_vm5 = vsmask.f32 7440  ;;  %vm3699_vm7 = vcmask 1042432   ;;  %vm3700_vm8 = vcmask 1046532   ;;  %vm3083_vm10 = vcmask 1043456   ;;  %s7756_s9 = sshll.u32 %s9518_s28, 4 }
  0x19   : > { %s9178_s18 = smul.u32 432, %s272_s17  ;;  %vm10239_vm6 = vmor %vm3248_vm4, %vm3249_vm5  ;;  %vm3084_vm11 = vsmask.f32 7938  ;;  %vm2759_vm12 = vsmask.f32 256  ;;  %vm3090_vm14 = vcmask 1040384  }
  0x1a   : > { %vm10251_vm9 = vmor %vm3699_vm7, %vm3700_vm8  ;;  %vm2760_vm13 = vsmask.f32 4368  ;;  %s270_s13 = scalar_lea.vmem [#allocation3], %s269_s23  ;;  %s7234_s17 = scalar_lea.sflag [#allocation4], %s269_s23 }
  0x1b   : > { %s9559_s21 = scalar_lea.vmem %s12580_s0, %s9178_s18  ;;  %vm10289_vm15 = vmand %vm3083_vm10, %vm3084_vm11  ;;  %s7246_s14 = sshll.u32 %s270_s13, 4  ;;  %s12540_s14 = int_to_ptr.vmem [resolvable:$true] %s7246_s14 }
  0x1c   : > { %v277_v3 = vld [vmem:[%s9559_s21] sm:$0xff]  ;;  %v278_v4 = vld [vmem:[%s9559_s21 + $0x8] sm:$0xff]  ;;  %v279_v5 = vld [vmem:[%s9559_s21 + $0x10] sm:$0x3]  ;;  %s9387_s18 = scalar_lea.vmem %s12540_s14, 16  ;;  %s9456_s28 = smov [#allocation3]  }
  0x1d   : > { %v9564_v6 = vpack.c.bf16 %v278_v4, %v277_v3  ;;  %v9566_v7 = vpack.c.bf16 %v279_v5, %v279_v5  ;;  %v280_v8 = vld [vmem:[%s9559_s21 + $0x18] sm:$0xff]  ;;  %v281_v9 = vld [vmem:[%s9559_s21 + $0x20] sm:$0xff]  ;;  %v282_v10 = vld [vmem:[%s9559_s21 + $0x28] sm:$0x3]  ;;  %p9388_p11 = scmp.ne.s32.totalorder %s12540_s14, %s9387_s18  ;;  %s9391_s19 = sshll.u32 %s9456_s28, 4  ;;  %s9392_s19 = int_to_ptr.vmem [resolvable:$false] %s9391_s19 }
  0x1e   : > { %v9571_v11 = vpack.c.bf16 %v281_v9, %v280_v8  ;;  %v9573_v12 = vpack.c.bf16 %v282_v10, %v282_v10  ;;  %v283_v13 = vld [vmem:[%s9559_s21 + $0x30] sm:$0xff]  ;;  %v284_v14 = vld [vmem:[%s9559_s21 + $0x38] sm:$0xff]  ;;  %v285_v15 = vld [vmem:[%s9559_s21 + $0x40] sm:$0x3]  ;;  %s9393_s20 = scalar_lea.vmem %s9392_s19, 32  ;;  %p9394_p0 = scmp.lt.s32.totalorder %s12540_s14, %s9392_s19 }
  0x1f   : > { %v370_v17 = vshrl.u32 %v9564_v6, 16  ;;  %v372_v18 = vshll.u32 %v9564_v6, 16  ;;  %v377_v19 = vshll.u32 %v9566_v7, 16  ;;  %v9582_v20 = vpack.c.bf16 %v284_v14, %v283_v13  ;;  %v286_v21 = vld [vmem:[%s9559_s21 + $0x48] sm:$0xff]  ;;  %v287_v22 = vld [vmem:[%s9559_s21 + $0x50] sm:$0xff]  ;;  %v289_v27 = vld [vmem:[%s9559_s21 + $0x60] sm:$0xff]  ;;  %p9389_p12 = pnand %p9388_p11, %p9535_p5  ;;  %p9395_p1 = scmp.lt.s32.totalorder %s9393_s20, %s9387_s18 }
  0x20   : > { %v382_v23 = vshrl.u32 %v9571_v11, 16  ;;  %v384_v24 = vshll.u32 %v9571_v11, 16  ;;  %v389_v25 = vshll.u32 %v9573_v12, 16  ;;  %v288_v26 = vld [vmem:[%s9559_s21 + $0x58] sm:$0x3]  ;;  %v9591_v30 = vpack.c.bf16 %v285_v15, %v285_v15  ;;  %v290_v32 = vld [vmem:[%s9559_s21 + $0x68] sm:$0xff] }
  0x21   : > { %v374_v28 = vrot.slane %v372_v18, 1  ;;  %v379_v29 = vrot.slane %v377_v19, 1  ;;  %v394_v31 = vshrl.u32 %v9582_v20, 16  ;;  %v396_v35 = vshll.u32 %v9582_v20, 16  ;;  %v291_v37 = vld [vmem:[%s9559_s21 + $0x70] sm:$0x3]  ;;  %p9390_p13 = pneg %p9389_p12  ;;  %p9396_p2 = por %p9395_p1, %p9394_p0 }
  0x22   : > { %v386_v33 = vrot.slane %v384_v24, 1  ;;  %v391_v34 = vrot.slane %v389_v25, 1  ;;  %v9596_v36 = vpack.c.bf16 %v287_v22, %v286_v21  ;;  %v401_v39 = vshll.u32 %v9591_v30, 16  ;;  %v292_v46 = vld [vmem:[%s9559_s21 + $0x78] sm:$0xff]  ;;  %v293_v47 = vld [vmem:[%s9559_s21 + $0x80] sm:$0xff]  ;;  %v295_v53 = vld [vmem:[%s9559_s21 + $0x90] sm:$0xff] }
  0x23   : > { %v375_v38 = vor.u32 %v374_v28, %v370_v17  ;;  %v9600_v40 = vpack.c.bf16 %v288_v26, %v288_v26  ;;  %v9602_v41 = vpack.c.bf16 %v290_v32, %v289_v27  ;;  %v398_v43 = vrot.slane %v396_v35, 1  ;;  %v294_v52 = vld [vmem:[%s9559_s21 + $0x88] sm:$0x3]  ;;  %v296_v54 = vld [vmem:[%s9559_s21 + $0x98] sm:$0xff]  ;;  %v297_v0 = vld [vmem:[%s9559_s21 + $0xa0] sm:$0x3]  ;;  %p9397_p3 = pnand %p9396_p2, %p9390_p13 }
  0x24   : > { %v387_v42 = vor.u32 %v386_v33, %v382_v23  ;;  %v406_v44 = vshrl.u32 %v9596_v36, 16  ;;  %v408_v45 = vshll.u32 %v9596_v36, 16  ;;  %v403_v49 = vrot.slane %v401_v39, 1  ;;  %v298_v10 = vld [vmem:[%s9559_s21 + $0xa8] sm:$0xff]  ;;  %v299_v13 = vld [vmem:[%s9559_s21 + $0xb0] sm:$0xff]  ;;  %v301_v15 = vld [vmem:[%s9559_s21 + $0xc0] sm:$0xff] }
  0x25   : > { %v380_v48 = vsel %vm368_vm1, %v375_v38, %v379_v29  ;;  %v413_v50 = vshll.u32 %v9600_v40, 16  ;;  %v9610_v51 = vpack.c.bf16 %v291_v37, %v291_v37  ;;  %v399_v56 = vor.u32 %v398_v43, %v394_v31  ;;  %v302_v17 = vld [vmem:[%s9559_s21 + $0xc8] sm:$0xff]  ;;  %v300_v25 = vld [vmem:[%s9559_s21 + $0xb8] sm:$0x3]  ;;  %v303_v32 = vld [vmem:[%s9559_s21 + $0xd0] sm:$0x3] }
  0x26   : > { %8470 = vmatprep.mubr.msk.bf16.mxu0 %vm563_vm2, %v380_v48  ;;  %v9617_v55 = vsel %vm368_vm1, %v387_v42, %v391_v34  ;;  %v410_v57 = vrot.slane %v408_v45, 1  ;;  %v418_v58 = vshrl.u32 %v9602_v41, 16  ;;  %v420_v61 = vshll.u32 %v9602_v41, 16  ;;  %v304_v38 = vld [vmem:[%s9559_s21 + $0xd8] sm:$0xff]  ;;  %v305_v39 = vld [vmem:[%s9559_s21 + $0xe0] sm:$0xff] }
  0x27   : > { %8471 = vmatmul.mubr.msk.bf16.vlgmr.msra.gmra.mrb[0].mxu0 %vm563_vm2, %v9617_v55  ;;  %v415_v60 = vrot.slane %v413_v50, 1  ;;  %v425_v62 = vshll.u32 %v9610_v51, 16  ;;  %v9629_v63 = vpack.c.bf16 %v293_v47, %v292_v46  ;;  %v9633_v1 = vsel %vm368_vm1, %v399_v56, %v403_v49  ;;  %v307_v46 = vld [vmem:[%s9559_s21 + $0xf0] sm:$0xff]  ;;  %v308_v47 = vld [vmem:[%s9559_s21 + $0xf8] sm:$0xff]  ;;  %v306_v50 = vld [vmem:[%s9559_s21 + $0xe8] sm:$0x3] }
  0x28   : > { %v411_v2 = vor.u32 %v410_v57, %v406_v44  ;;  %v9635_v3 = vpack.c.bf16 %v294_v52, %v294_v52  ;;  %v9637_v4 = vpack.c.bf16 %v296_v54, %v295_v53  ;;  %8503 = vmatpush3.bf16.msra.mxu0 %v810_v16  ;;  %8474 = vmatprep.mubr.msk.bf16.mxu0 %vm563_vm2, %v9633_v1  ;;  %v422_v5 = vrot.slane %v420_v61, 1 }
  0x29   : > { %v427_v8 = vrot.slane %v425_v62, 1  ;;  %v432_v9 = vshll.u32 %v9629_v63, 16  ;;  %9171 = vmatprep.subr.msk.bf16.mxu0 %vm612_vm0, %v9623_v59  ;;  %v9646_v14 = vpack.c.bf16 %v297_v0, %v297_v0  ;;  %v430_v19 = vshrl.u32 %v9629_v63, 16  ;;  %v309_v62 = vld [vmem:[%s9559_s21 + $0x100] sm:$0x3]  ;;  %v310_v0 = vld [vmem:[%s9559_s21 + $0x108] sm:$0xff] }
  0x2a   : > { %v9651_v16 = vsel %vm368_vm1, %v411_v2, %v415_v60  ;;  %v423_v18 = vor.u32 %v422_v5, %v418_v58  ;;  %v444_v21 = vshll.u32 %v9637_v4, 16  ;;  %v437_v23 = vshll.u32 %v9635_v3, 16  ;;  %v311_v2 = vld [vmem:[%s9559_s21 + $0x110] sm:$0xff] }
  0x2b   : > { %v434_v22 = vrot.slane %v432_v9, 1  ;;  %v442_v24 = vshrl.u32 %v9637_v4, 16  ;;  %v9658_v26 = vpack.c.bf16 %v299_v13, %v298_v10  ;;  %v449_v29 = vshll.u32 %v9646_v14, 16 }
  0x2c   : > { %v9661_v27 = vsel %vm368_vm1, %v423_v18, %v427_v8  ;;  %v446_v28 = vrot.slane %v444_v21, 1  ;;  %v9664_v31 = vpack.c.bf16 %v302_v17, %v301_v15  ;;  %v9669_v33 = vpack.c.bf16 %v300_v25, %v300_v25  ;;  %v314_v21 = vld [vmem:[%s9559_s21 + $0x128] sm:$0xff]  ;;  %v315_v25 = vld [vmem:[%s9559_s21 + $0x130] sm:$0x3] }
  0x2d   : > { %v435_v34 = vor.u32 %v434_v22, %v430_v19  ;;  %v439_v35 = vrot.slane %v437_v23, 1  ;;  %v456_v37 = vshll.u32 %v9658_v26, 16  ;;  %v451_v43 = vrot.slane %v449_v29, 1  ;;  %v313_v19 = vld [vmem:[%s9559_s21 + $0x120] sm:$0xff]  ;;  %v312_v22 = vld [vmem:[%s9559_s21 + $0x118] sm:$0x3] }
  0x2e   : > { %v447_v42 = vor.u32 %v446_v28, %v442_v24  ;;  %v9676_v44 = vpack.c.bf16 %v303_v32, %v303_v32  ;;  %v468_v45 = vshll.u32 %v9664_v31, 16  ;;  %v454_v48 = vshrl.u32 %v9658_v26, 16 }
  0x2f   : > { %8475 = vmatmul.mubr.msk.bf16.gmra.mrb[4].mxu0 %vm563_vm2, %v9651_v16  ;;  %v461_v49 = vshll.u32 %v9669_v33, 16  ;;  %v9685_v52 = vsel %vm368_vm1, %v435_v34, %v439_v35  ;;  %v458_v53 = vrot.slane %v456_v37, 1  ;;  %v466_v54 = vshrl.u32 %v9664_v31, 16  ;;  %v316_v35 = vld [vmem:[%s9559_s21 + $0x138] sm:$0xff] }
  0x30   : > { %8478 = vmatprep.mubr.msk.bf16.mxu0 %vm563_vm2, %v9661_v27  ;;  %v9688_v56 = vpack.c.bf16 %v305_v39, %v304_v38  ;;  %v9691_v57 = vsel %vm368_vm1, %v447_v42, %v451_v43  ;;  %v470_v58 = vrot.slane %v468_v45, 1  ;;  %v473_v60 = vshll.u32 %v9676_v44, 16  ;;  %v317_v43 = vld [vmem:[%s9559_s21 + $0x140] sm:$0xff] }
  0x31   : > { %v9694_v61 = vpack.c.bf16 %v308_v47, %v307_v46  ;;  %v459_v5 = vor.u32 %v458_v53, %v454_v48  ;;  %v463_v8 = vrot.slane %v461_v49, 1  ;;  %v9703_v9 = vpack.c.bf16 %v306_v50, %v306_v50  ;;  %v318_v46 = vld [vmem:[%s9559_s21 + $0x148] sm:$0x3]  ;;  %v319_v47 = vld [vmem:[%s9559_s21 + $0x150] sm:$0xff]  ;;  %v320_v49 = vld [vmem:[%s9559_s21 + $0x158] sm:$0xff] }
  0x32   : > { %v480_v10 = vshll.u32 %v9688_v56, 16  ;;  %v471_v13 = vor.u32 %v470_v58, %v466_v54  ;;  %v475_v15 = vrot.slane %v473_v60, 1  ;;  %v9706_v17 = vpack.c.bf16 %v309_v62, %v309_v62  ;;  %v321_v60 = vld [vmem:[%s9559_s21 + $0x160] sm:$0x3] }
  0x33   : > { %v492_v18 = vshll.u32 %v9694_v61, 16  ;;  %v478_v23 = vshrl.u32 %v9688_v56, 16  ;;  %v9713_v24 = vpack.c.bf16 %v311_v2, %v310_v0  ;;  %v9717_v28 = vsel %vm368_vm1, %v459_v5, %v463_v8 }
  0x34   : > { %v482_v29 = vrot.slane %v480_v10, 1  ;;  %v485_v32 = vshll.u32 %v9703_v9, 16  ;;  %v9720_v34 = vpack.c.bf16 %v314_v21, %v313_v19  ;;  %v9724_v37 = vsel %vm368_vm1, %v471_v13, %v475_v15  ;;  %v322_v15 = vld [vmem:[%s9559_s21 + $0x168] sm:$0xff] }
  0x35   : > { %v490_v38 = vshrl.u32 %v9694_v61, 16  ;;  %v494_v39 = vrot.slane %v492_v18, 1  ;;  %v497_v42 = vshll.u32 %v9706_v17, 16  ;;  %v9729_v45 = vpack.c.bf16 %v312_v22, %v312_v22  ;;  %v323_v18 = vld [vmem:[%s9559_s21 + $0x170] sm:$0xff] }
  0x36   : > { %v504_v48 = vshll.u32 %v9713_v24, 16  ;;  %v483_v50 = vor.u32 %v482_v29, %v478_v23  ;;  %v487_v53 = vrot.slane %v485_v32, 1  ;;  %v9739_v54 = vpack.c.bf16 %v315_v25, %v315_v25 }
  0x37   : > { %8479 = vmatmul.mubr.msk.bf16.gmra.mrb[8].mxu0 %vm563_vm2, %v9685_v52  ;;  %v516_v58 = vshll.u32 %v9720_v34, 16  ;;  %v495_v62 = vor.u32 %v494_v39, %v490_v38  ;;  %v499_v0 = vrot.slane %v497_v42, 1  ;;  %v9743_v2 = vpack.c.bf16 %v317_v43, %v316_v35 }
  0x38   : > { %8482 = vmatprep.mubr.msk.bf16.mxu0 %vm563_vm2, %v9691_v57  ;;  %v9745_v5 = vpack.c.bf16 %v318_v46, %v318_v46  ;;  %v502_v8 = vshrl.u32 %v9713_v24, 16  ;;  %v509_v10 = vshll.u32 %v9729_v45, 16  ;;  %v9749_v13 = vpack.c.bf16 %v320_v49, %v319_v47 }
  0x39   : > { %v506_v19 = vrot.slane %v504_v48, 1  ;;  %v514_v21 = vshrl.u32 %v9720_v34, 16  ;;  %v9755_v22 = vsel %vm368_vm1, %v483_v50, %v487_v53  ;;  %v518_v23 = vrot.slane %v516_v58, 1  ;;  %v324_v50 = vld [vmem:[%s9559_s21 + $0x178] sm:$0x3] }
  0x3a   : > { %v521_v25 = vshll.u32 %v9739_v54, 16  ;;  %v9759_v29 = vsel %vm368_vm1, %v495_v62, %v499_v0  ;;  %v528_v32 = vshll.u32 %v9743_v2, 16  ;;  %v533_v35 = vshll.u32 %v9745_v5, 16 }
  0x3b   : > { %v9763_v38 = vpack.c.bf16 %v321_v60, %v321_v60  ;;  %v540_v39 = vshll.u32 %v9749_v13, 16  ;;  %v9766_v42 = vpack.c.bf16 %v323_v18, %v322_v15  ;;  %v511_v43 = vrot.slane %v509_v10, 1 }
  0x3c   : > { %v507_v46 = vor.u32 %v506_v19, %v502_v8  ;;  %v519_v47 = vor.u32 %v518_v23, %v514_v21  ;;  %v523_v48 = vrot.slane %v521_v25, 1  ;;  %v526_v49 = vshrl.u32 %v9743_v2, 16 }
  0x3d   : > { %v530_v53 = vrot.slane %v528_v32, 1  ;;  %v535_v58 = vrot.slane %v533_v35, 1  ;;  %v538_v60 = vshrl.u32 %v9749_v13, 16  ;;  %v545_v62 = vshll.u32 %v9763_v38, 16 }
  0x3e   : > { %v542_v0 = vrot.slane %v540_v39, 1  ;;  %v552_v15 = vshll.u32 %v9766_v42, 16  ;;  %v9778_v10 = vsel %vm368_vm1, %v507_v46, %v511_v43  ;;  %v9780_v18 = vpack.c.bf16 %v324_v50, %v324_v50  ;;  %v7356_v50 = vld [vmem:[%s12581_s1 + $0x6] sm:$0x3] }
  0x3f   : > { %8483 = vmatmul.mubr.msk.bf16.gmra.mrb[12].mxu0 %vm563_vm2, %v9717_v28  ;;  %v9783_v8 = vsel %vm368_vm1, %v519_v47, %v523_v48  ;;  %v547_v19 = vrot.slane %v545_v62, 1  ;;  %v550_v21 = vshrl.u32 %v9766_v42, 16  ;;  %v531_v23 = vor.u32 %v530_v53, %v526_v49 }
  0x40   : > { %8486 = vmatprep.mubr.msk.bf16.mxu0 %vm563_vm2, %v9724_v37  ;;  %v554_v25 = vrot.slane %v552_v15, 1  ;;  %v557_v32 = vshll.u32 %v9780_v18, 16  ;;  %v543_v35 = vor.u32 %v542_v0, %v538_v60  ;;  %v1105_v48 = vsel %vm612_vm0, %v9623_v59, 0 }
  0x41   : > { %v9792_v39 = vsel %vm368_vm1, %v531_v23, %v535_v58  ;;  %v1006_v59 = vrot.slane %v9564_v6, 1  ;;  %v1007_v53 = vrot.slane %v9566_v7, 1  ;;  %v1010_v60 = vrot.slane %v9573_v12, 1  ;;  %v7373_v12 = vld [vmem:[%s12581_s1 + $0x8] sm:$0x3] }
  0x42   : > { %v9795_v43 = vsel %vm368_vm1, %v543_v35, %v547_v19  ;;  %v555_v46 = vor.u32 %v554_v25, %v550_v21  ;;  %v559_v47 = vrot.slane %v557_v32, 1  ;;  %v1009_v62 = vrot.slane %v9571_v11, 1 }
  0x43   : > { %v1008_v58 = vsel %vm1005_vm3, %v1006_v59, %v1007_v53  ;;  %v1012_v0 = vrot.slane %v9582_v20, 1  ;;  %v1013_v15 = vrot.slane %v9591_v30, 1  ;;  %v1306_v19 = vsel %vm612_vm0, %v7356_v50, 0 }
  0x44   : > { %v9804_v49 = vsel %vm368_vm1, %v555_v46, %v559_v47  ;;  %v1015_v30 = vrot.slane %v9596_v36, 1  ;;  %v1016_v21 = vrot.slane %v9600_v40, 1  ;;  %v1018_v23 = vrot.slane %v9602_v41, 1 }
  0x45   : > { %v9856_v7 = vsel %vm1005_vm3, %v1012_v0, %v1013_v15  ;;  %v1019_v25 = vrot.slane %v9610_v51, 1  ;;  %v1021_v40 = vrot.slane %v9629_v63, 1  ;;  %v1022_v46 = vrot.slane %v9635_v3, 1 }
  0x46   : > { %v9872_v32 = vsel %vm1005_vm3, %v1015_v30, %v1016_v21  ;;  %v1024_v51 = vrot.slane %v9637_v4, 1  ;;  %v1025_v47 = vrot.slane %v9646_v14, 1  ;;  %v1027_v59 = vrot.slane %v9658_v26, 1 }
  0x47   : > { %8487 = vmatmul.mubr.msk.bf16.gmra.mrb[16].mxu0 %vm563_vm2, %v9755_v22  ;;  %v9875_v35 = vsel %vm1005_vm3, %v1018_v23, %v1019_v25  ;;  %v1028_v3 = vrot.slane %v9669_v33, 1  ;;  %v1030_v53 = vrot.slane %v9664_v31, 1  ;;  %v1031_v14 = vrot.slane %v9676_v44, 1 }
  0x48   : > { %8490 = vmatprep.mubr.msk.bf16.mxu0 %vm563_vm2, %v9759_v29  ;;  %v1034_v33 = vrot.slane %v9703_v9, 1  ;;  %v1036_v0 = vrot.slane %v9694_v61, 1  ;;  %v1037_v44 = vrot.slane %v9706_v17, 1  ;;  %v1039_v30 = vrot.slane %v9713_v24, 1 }
  0x49   : > { %v1040_v9 = vrot.slane %v9729_v45, 1  ;;  %v1042_v21 = vrot.slane %v9720_v34, 1  ;;  %v1043_v17 = vrot.slane %v9739_v54, 1  ;;  %v1046_v45 = vrot.slane %v9745_v5, 1 }
  0x4a   : > { %v1049_v54 = vrot.slane %v9763_v38, 1  ;;  %v1052_v5 = vrot.slane %v9780_v18, 1  ;;  %v1518_v38 = vsel %vm612_vm0, %v7373_v12, 0  ;;  %v326_v18 = vld [vmem:[%s9559_s21 + $0x188] sm:$0xff] }
  0x4b   : > { %v9928_v23 = vsel %vm1005_vm3, %v1039_v30, %v1040_v9  ;;  %v9931_v25 = vsel %vm1005_vm3, %v1042_v21, %v1043_v17 }
  0x4f   : > { %8491 = vmatmul.mubr.msk.bf16.gmra.mrb[20].mxu0 %vm563_vm2, %v9778_v10 }
  0x50   : > { %8494 = vmatprep.mubr.msk.bf16.mxu0 %vm563_vm2, %v9783_v8 }
  0x57   : > { %8495 = vmatmul.mubr.msk.bf16.gmra.mrb[24].mxu0 %vm563_vm2, %v9792_v39 }
  0x58   : > { %8498 = vmatprep.mubr.msk.bf16.mxu0 %vm563_vm2, %v9795_v43 }
  0x5f   : > { %8499 = vmatmul.mubr.msk.bf16.gmra.mrb[28].mxu0 %vm563_vm2, %v9804_v49 }
  0x60   : > { %8504 = vmatprep.mubr.msk.bf16.mxu0 %vm563_vm2, %v9564_v6  ;;  %v9853_v6 = vsel %vm1005_vm3, %v1009_v62, %v1010_v60  ;;  %v9903_v60 = vsel %vm1005_vm3, %v1030_v53, %v1031_v14  ;;  %v1033_v62 = vrot.slane %v9688_v56, 1  ;;  %v7390_v53 = vld [vmem:[%s12581_s1 + $0xa] sm:$0x3] }
  0x61   : > { %v1724_v14 = vsel %vm612_vm0, %v7390_v53, 0 }
  0x62   : > { %v9914_v15 = vsel %vm1005_vm3, %v1033_v62, %v1034_v33  ;;  %v7407_v62 = vld [vmem:[%s12581_s1 + $0xc] sm:$0x3] }
  0x67   : > { %8505 = vmatmul.mubr.msk.bf16.vlgmr.msra.gmra.mrb[0].mxu0 %vm563_vm2, %v9571_v11 }
  0x68   : > { %8508 = vmatprep.mubr.msk.bf16.mxu0 %vm563_vm2, %v9582_v20  ;;  %8537 = vmatpush3.bf16.msra.mxu0 %v1105_v48  ;;  %v9886_v48 = vsel %vm1005_vm3, %v1021_v40, %v1022_v46  ;;  %v1045_v40 = vrot.slane %v9743_v2, 1  ;;  %v1048_v46 = vrot.slane %v9749_v13, 1 }
  0x69   : > { %9172 = vmatprep.subr.msk.bf16.mxu0 %vm612_vm0, %v7356_v50  ;;  %v9889_v50 = vsel %vm1005_vm3, %v1024_v51, %v1025_v47 }
  0x6a   : > { %v9942_v51 = vsel %vm1005_vm3, %v1045_v40, %v1046_v45  ;;  %v9945_v47 = vsel %vm1005_vm3, %v1048_v46, %v1049_v54  ;;  %v1925_v45 = vsel %vm612_vm0, %v7407_v62, 0  ;;  %v7424_v46 = vld [vmem:[%s12581_s1 + $0xe] sm:$0x3] }
  0x6f   : > { %8509 = vmatmul.mubr.msk.bf16.gmra.mrb[4].mxu0 %vm563_vm2, %v9596_v36 }
  0x70   : > { %8512 = vmatprep.mubr.msk.bf16.mxu0 %vm563_vm2, %v9602_v41 }
  0x77   : > { %8513 = vmatmul.mubr.msk.bf16.gmra.mrb[8].mxu0 %vm563_vm2, %v9629_v63 }
  0x78   : > { %8516 = vmatprep.mubr.msk.bf16.mxu0 %vm563_vm2, %v9637_v4 }
  0x7f   : > { %8517 = vmatmul.mubr.msk.bf16.gmra.mrb[12].mxu0 %vm563_vm2, %v9658_v26 }
  0x80   : > { %8520 = vmatprep.mubr.msk.bf16.mxu0 %vm563_vm2, %v9664_v31 }
  0x87   : > { %8521 = vmatmul.mubr.msk.bf16.gmra.mrb[16].mxu0 %vm563_vm2, %v9688_v56 }
  0x88   : > { %8524 = vmatprep.mubr.msk.bf16.mxu0 %vm563_vm2, %v9694_v61 }
  0x8f   : > { %8525 = vmatmul.mubr.msk.bf16.gmra.mrb[20].mxu0 %vm563_vm2, %v9713_v24 }
  0x90   : > { %8528 = vmatprep.mubr.msk.bf16.mxu0 %vm563_vm2, %v9720_v34 }
  0x97   : > { %8529 = vmatmul.mubr.msk.bf16.gmra.mrb[24].mxu0 %vm563_vm2, %v9743_v2 }
  0x98   : > { %8532 = vmatprep.mubr.msk.bf16.mxu0 %vm563_vm2, %v9749_v13 }
  0x9f   : > { %8533 = vmatmul.mubr.msk.bf16.gmra.mrb[28].mxu0 %vm563_vm2, %v9766_v42 }
  0xa0   : > { %8538 = vmatprep.mubr.msk.bf16.mxu0 %vm563_vm2, %v1008_v58  ;;  %v9900_v58 = vsel %vm1005_vm3, %v1027_v59, %v1028_v3  ;;  %v1051_v59 = vrot.slane %v9766_v42, 1 }
  0xa2   : > { %v9954_v3 = vsel %vm1005_vm3, %v1051_v59, %v1052_v5  ;;  %v2137_v5 = vsel %vm612_vm0, %v7424_v46, 0 }
  0xa7   : > { %8539 = vmatmul.mubr.msk.bf16.vlgmr.msra.gmra.mrb[0].mxu0 %vm563_vm2, %v9853_v6 }
  0xa8   : > { %8542 = vmatprep.mubr.msk.bf16.mxu0 %vm563_vm2, %v9856_v7  ;;  %8571 = vmatpush3.bf16.msra.mxu0 %v1306_v19  ;;  %v9917_v19 = vsel %vm1005_vm3, %v1036_v0, %v1037_v44 }
  0xa9   : > { %9173 = vmatprep.subr.msk.bf16.mxu0 %vm612_vm0, %v7373_v12 }
  0xaf   : > { %8543 = vmatmul.mubr.msk.bf16.gmra.mrb[4].mxu0 %vm563_vm2, %v9872_v32 }
  0xb0   : > { %8546 = vmatprep.mubr.msk.bf16.mxu0 %vm563_vm2, %v9875_v35 }
  0xb7   : > { %8547 = vmatmul.mubr.msk.bf16.gmra.mrb[8].mxu0 %vm563_vm2, %v9886_v48 }
  0xb8   : > { %8550 = vmatprep.mubr.msk.bf16.mxu0 %vm563_vm2, %v9889_v50 }
  0xbf   : > { %8551 = vmatmul.mubr.msk.bf16.gmra.mrb[12].mxu0 %vm563_vm2, %v9900_v58 }
  0xc0   : > { %8554 = vmatprep.mubr.msk.bf16.mxu0 %vm563_vm2, %v9903_v60 }
  0xc7   : > { %8555 = vmatmul.mubr.msk.bf16.gmra.mrb[16].mxu0 %vm563_vm2, %v9914_v15 }
  0xc8   : > { %8558 = vmatprep.mubr.msk.bf16.mxu0 %vm563_vm2, %v9917_v19 }
  0xcf   : > { %8559 = vmatmul.mubr.msk.bf16.gmra.mrb[20].mxu0 %vm563_vm2, %v9928_v23 }
  0xd0   : > { %8562 = vmatprep.mubr.msk.bf16.mxu0 %vm563_vm2, %v9931_v25 }
  0xd7   : > { %8563 = vmatmul.mubr.msk.bf16.gmra.mrb[24].mxu0 %vm563_vm2, %v9942_v51 }
  0xd8   : > { %8566 = vmatprep.mubr.msk.bf16.mxu0 %vm563_vm2, %v9945_v47 }
  0xdf   : > { %8567 = vmatmul.mubr.msk.bf16.gmra.mrb[28].mxu0 %vm563_vm2, %v9954_v3 }
  0xe0   : > { %8572 = vmatprep.mubr.msk.bf16.mxu0 %vm563_vm2, %v9571_v11  ;;  %v325_v11 = vld [vmem:[%s9559_s21 + $0x180] sm:$0xff] }
  0xe1   : > { %v9995_v12 = vpack.c.bf16 %v326_v18, %v325_v11 }
  0xe3   : > { %v1503_v0 = vshll.u32 %v9995_v12, 16  ;;  %v1501_v44 = vshrl.u32 %v9995_v12, 16 }
  0xe5   : > { %v1505_v30 = vrot.slane %v1503_v0, 1 }
  0xe7   : > { %8573 = vmatmul.mubr.msk.bf16.vlgmr.msra.gmra.mrb[0].mxu0 %vm563_vm2, %v9582_v20  ;;  %v1506_v21 = vor.u32 %v1505_v30, %v1501_v44 }
  0xe8   : > { %8576 = vmatprep.mubr.msk.bf16.mxu0 %vm563_vm2, %v9596_v36  ;;  %8605 = vmatpush3.bf16.msra.mxu0 %v1518_v38  ;;  %v7441_v38 = vld [vmem:[%s12581_s1 + $0x10] sm:$0x3] }
  0xe9   : > { %9174 = vmatprep.subr.msk.bf16.mxu0 %vm612_vm0, %v7390_v53 }
  0xef   : > { %8577 = vmatmul.mubr.msk.bf16.gmra.mrb[4].mxu0 %vm563_vm2, %v9602_v41 }
  0xf0   : > { %8580 = vmatprep.mubr.msk.bf16.mxu0 %vm563_vm2, %v9629_v63 }
  0xf7   : > { %8581 = vmatmul.mubr.msk.bf16.gmra.mrb[8].mxu0 %vm563_vm2, %v9637_v4 }
  0xf8   : > { %8584 = vmatprep.mubr.msk.bf16.mxu0 %vm563_vm2, %v9658_v26 }
  0xff   : > { %8585 = vmatmul.mubr.msk.bf16.gmra.mrb[12].mxu0 %vm563_vm2, %v9664_v31 }
 0x100   : > { %8588 = vmatprep.mubr.msk.bf16.mxu0 %vm563_vm2, %v9688_v56 }
 0x107   : > { %8589 = vmatmul.mubr.msk.bf16.gmra.mrb[16].mxu0 %vm563_vm2, %v9694_v61 }
 0x108   : > { %8592 = vmatprep.mubr.msk.bf16.mxu0 %vm563_vm2, %v9713_v24 }
 0x10f   : > { %8593 = vmatmul.mubr.msk.bf16.gmra.mrb[20].mxu0 %vm563_vm2, %v9720_v34 }
 0x110   : > { %8596 = vmatprep.mubr.msk.bf16.mxu0 %vm563_vm2, %v9743_v2 }
 0x117   : > { %8597 = vmatmul.mubr.msk.bf16.gmra.mrb[24].mxu0 %vm563_vm2, %v9749_v13 }
 0x118   : > { %8600 = vmatprep.mubr.msk.bf16.mxu0 %vm563_vm2, %v9766_v42 }
 0x11f   : > { %8601 = vmatmul.mubr.msk.bf16.gmra.mrb[28].mxu0 %vm563_vm2, %v9995_v12 }
 0x120   : > { %8606 = vmatprep.mubr.msk.bf16.mxu0 %vm563_vm2, %v9617_v55  ;;  %v327_v55 = vld [vmem:[%s9559_s21 + $0x190] sm:$0x3] }
 0x121   : > { %v364_v33 = vpack.c.bf16 %v327_v55, %v327_v55 }
 0x123   : > { %v1508_v9 = vshll.u32 %v364_v33, 16  ;;  %v1716_v54 = vrot.slane %v364_v33, 1 }
 0x125   : > { %v1510_v17 = vrot.slane %v1508_v9, 1 }
 0x127   : > { %8607 = vmatmul.mubr.msk.bf16.vlgmr.msra.gmra.mrb[0].mxu0 %vm563_vm2, %v9633_v1  ;;  %v10038_v40 = vsel %vm368_vm1, %v1506_v21, %v1510_v17 }
 0x128   : > { %8610 = vmatprep.mubr.msk.bf16.mxu0 %vm563_vm2, %v9651_v16  ;;  %8639 = vmatpush3.bf16.msra.mxu0 %v1724_v14 }
 0x129   : > { %9175 = vmatprep.subr.msk.bf16.mxu0 %vm612_vm0, %v7407_v62  ;;  %v9238_v62 = vld [vmem:[%s12583_s3 + $0x38] sm:$0xff]  }
 0x12f   : > { %8611 = vmatmul.mubr.msk.bf16.gmra.mrb[4].mxu0 %vm563_vm2, %v9661_v27 }
 0x130   : > { %8614 = vmatprep.mubr.msk.bf16.mxu0 %vm563_vm2, %v9685_v52 }
 0x137   : > { %8615 = vmatmul.mubr.msk.bf16.gmra.mrb[8].mxu0 %vm563_vm2, %v9691_v57 }
 0x138   : > { %8618 = vmatprep.mubr.msk.bf16.mxu0 %vm563_vm2, %v9717_v28 }
 0x13f   : > { %8619 = vmatmul.mubr.msk.bf16.gmra.mrb[12].mxu0 %vm563_vm2, %v9724_v37 }
 0x140   : > { %8622 = vmatprep.mubr.msk.bf16.mxu0 %vm563_vm2, %v9755_v22 }
 0x147   : > { %8623 = vmatmul.mubr.msk.bf16.gmra.mrb[16].mxu0 %vm563_vm2, %v9759_v29 }
 0x148   : > { %8626 = vmatprep.mubr.msk.bf16.mxu0 %vm563_vm2, %v9778_v10 }
 0x14f   : > { %8627 = vmatmul.mubr.msk.bf16.gmra.mrb[20].mxu0 %vm563_vm2, %v9783_v8 }
 0x150   : > { %8630 = vmatprep.mubr.msk.bf16.mxu0 %vm563_vm2, %v9792_v39 }
 0x157   : > { %8631 = vmatmul.mubr.msk.bf16.gmra.mrb[24].mxu0 %vm563_vm2, %v9795_v43 }
 0x158   : > { %8634 = vmatprep.mubr.msk.bf16.mxu0 %vm563_vm2, %v9804_v49 }
 0x15f   : > { %8635 = vmatmul.mubr.msk.bf16.gmra.mrb[28].mxu0 %vm563_vm2, %v10038_v40 }
 0x160   : > { %8640 = vmatprep.mubr.msk.bf16.mxu0 %vm563_vm2, %v9853_v6  ;;  %v1715_v6 = vrot.slane %v9995_v12, 1 }
 0x162   : > { %v10079_v59 = vsel %vm1005_vm3, %v1715_v6, %v1716_v54  ;;  %v9244_v54 = vld [vmem:[%s12583_s3 + $0xc0] sm:$0xff]  }
 0x167   : > { %8641 = vmatmul.mubr.msk.bf16.vlgmr.msra.gmra.mrb[0].mxu0 %vm563_vm2, %v9856_v7 }
 0x168   : > { %8644 = vmatprep.mubr.msk.bf16.mxu0 %vm563_vm2, %v9872_v32  ;;  %8673 = vmatpush3.bf16.msra.mxu0 %v1925_v45 }
 0x169   : > { %9176 = vmatprep.subr.msk.bf16.mxu0 %vm612_vm0, %v7424_v46 }
 0x16f   : > { %8645 = vmatmul.mubr.msk.bf16.gmra.mrb[4].mxu0 %vm563_vm2, %v9875_v35 }
 0x170   : > { %8648 = vmatprep.mubr.msk.bf16.mxu0 %vm563_vm2, %v9886_v48 }
 0x177   : > { %8649 = vmatmul.mubr.msk.bf16.gmra.mrb[8].mxu0 %vm563_vm2, %v9889_v50 }
 0x178   : > { %8652 = vmatprep.mubr.msk.bf16.mxu0 %vm563_vm2, %v9900_v58 }
 0x17f   : > { %8653 = vmatmul.mubr.msk.bf16.gmra.mrb[12].mxu0 %vm563_vm2, %v9903_v60 }
 0x180   : > { %8656 = vmatprep.mubr.msk.bf16.mxu0 %vm563_vm2, %v9914_v15 }
 0x187   : > { %8657 = vmatmul.mubr.msk.bf16.gmra.mrb[16].mxu0 %vm563_vm2, %v9917_v19 }
 0x188   : > { %8660 = vmatprep.mubr.msk.bf16.mxu0 %vm563_vm2, %v9928_v23 }
 0x18f   : > { %8661 = vmatmul.mubr.msk.bf16.gmra.mrb[20].mxu0 %vm563_vm2, %v9931_v25 }
 0x190   : > { %8664 = vmatprep.mubr.msk.bf16.mxu0 %vm563_vm2, %v9942_v51 }
 0x197   : > { %8665 = vmatmul.mubr.msk.bf16.gmra.mrb[24].mxu0 %vm563_vm2, %v9945_v47 }
 0x198   : > { %8668 = vmatprep.mubr.msk.bf16.mxu0 %vm563_vm2, %v9954_v3 }
 0x19f   : > { %8669 = vmatmul.mubr.msk.bf16.gmra.mrb[28].mxu0 %vm563_vm2, %v10079_v59 }
 0x1a0   : > { %8674 = vmatprep.mubr.msk.bf16.mxu0 %vm563_vm2, %v9582_v20  ;;  %v328_v20 = vld [vmem:[%s9559_s21 + $0x198] sm:$0xff] }
 0x1a7   : > { %8675 = vmatmul.mubr.msk.bf16.vlgmr.msra.gmra.mrb[0].mxu0 %vm563_vm2, %v9596_v36  ;;  %v329_v36 = vld [vmem:[%s9559_s21 + $0x1a0] sm:$0xff] }
 0x1a8   : > { %8678 = vmatprep.mubr.msk.bf16.mxu0 %vm563_vm2, %v9602_v41  ;;  %8707 = vmatpush3.bf16.msra.mxu0 %v2137_v5  ;;  %v365_v41 = vpack.c.bf16 %v329_v36, %v328_v20  ;;  %v9248_v5 = vld [vmem:[%s12583_s3 + $0xc8] sm:$0xff]   ;;  %v10274_v20 = vld [vmem:[%s12582_s2] ss:$0 sm:$0xff] }
 0x1a9   : > { %9177 = vmatprep.subr.msk.bf16.mxu0 %vm612_vm0, %v7441_v38 }
 0x1af   : > { %8679 = vmatmul.mubr.msk.bf16.gmra.mrb[4].mxu0 %vm563_vm2, %v9629_v63  ;;  %v9223_v63 = vld [vmem:[%s12583_s3 + $0x40] sm:$0xff]  }
 0x1b0   : > { %8682 = vmatprep.mubr.msk.bf16.mxu0 %vm563_vm2, %v9637_v4  ;;  %v9224_v4 = vld [vmem:[%s12583_s3] sm:$0xff]   ;;  %7944 = vmatprep.subr.bf16.mxu1 %v9223_v63 }
 0x1b1   : > { %7945 = vmatpush3.bf16.msra.mxu1 %v9224_v4 }
 0x1b7   : > { %8683 = vmatmul.mubr.msk.bf16.gmra.mrb[8].mxu0 %vm563_vm2, %v9658_v26  ;;  %v9225_v26 = vld [vmem:[%s12583_s3 + $0x48] sm:$0xff]  }
 0x1b8   : > { %8686 = vmatprep.mubr.msk.bf16.mxu0 %vm563_vm2, %v9664_v31  ;;  %v9226_v31 = vld [vmem:[%s12583_s3 + $0x8] sm:$0xff]   ;;  %7946 = vmatprep.subr.bf16.mxu1 %v9225_v26 }
 0x1b9   : > { %7947 = vmatpush3.bf16.msra.mxu1 %v9226_v31 }
 0x1bf   : > { %8687 = vmatmul.mubr.msk.bf16.gmra.mrb[12].mxu0 %vm563_vm2, %v9688_v56  ;;  %v2343_v56 = vsel %vm612_vm0, %v7441_v38, 0  ;;  %v9249_v38 = vld [vmem:[%s12583_s3 + $0x88] sm:$0xff]   ;;  %vm10296_vm0 = vmor %vm2759_vm12, %vm2760_vm13 }
 0x1c0   : > { %8690 = vmatprep.mubr.msk.bf16.mxu0 %vm563_vm2, %v9694_v61 }
 0x1c7   : > { %8691 = vmatmul.mubr.msk.bf16.gmra.mrb[16].mxu0 %vm563_vm2, %v9713_v24 }
 0x1c8   : > { %8694 = vmatprep.mubr.msk.bf16.mxu0 %vm563_vm2, %v9720_v34 }
 0x1cf   : > { %8695 = vmatmul.mubr.msk.bf16.gmra.mrb[20].mxu0 %vm563_vm2, %v9743_v2 }
 0x1d0   : > { %8698 = vmatprep.mubr.msk.bf16.mxu0 %vm563_vm2, %v9749_v13 }
 0x1d7   : > { %8699 = vmatmul.mubr.msk.bf16.gmra.mrb[24].mxu0 %vm563_vm2, %v9766_v42  ;;  %v9451_v42 = vmov 0  }
 0x1d8   : > { %8702 = vmatprep.mubr.msk.bf16.mxu0 %vm563_vm2, %v9995_v12  ;;  %2615 = vst [vmem:[#allocation2 + $0x18] sm:$0xf] %v9451_v42  ;;  %2609 = vst [vmem:[#allocation2] sm:$0xf] %v9451_v42  ;;  %v9237_v12 = vld [vmem:[%s12583_s3 + $0x78] sm:$0xff]  }
 0x1d9   : > { %2610 = vst [vmem:[#allocation2 + $0x4] sm:$0xf] %v9451_v42  ;;  %2611 = vst [vmem:[#allocation2 + $0x8] sm:$0x1] %v9451_v42 }
 0x1da   : > { %2612 = vst [vmem:[#allocation2 + $0xc] sm:$0xf] %v9451_v42  ;;  %2613 = vst [vmem:[#allocation2 + $0x10] sm:$0xf] %v9451_v42 }
 0x1db   : > { %2614 = vst [vmem:[#allocation2 + $0x14] sm:$0x1] %v9451_v42  ;;  %2616 = vst [vmem:[#allocation2 + $0x1c] sm:$0xf] %v9451_v42 }
 0x1dc   : > { %2617 = vst [vmem:[#allocation2 + $0x20] sm:$0x1] %v9451_v42  ;;  %2618 = vst [vmem:[#allocation2 + $0x24] sm:$0xf] %v9451_v42 }
 0x1dd   : > { %2619 = vst [vmem:[#allocation2 + $0x28] sm:$0xf] %v9451_v42  ;;  %2620 = vst [vmem:[#allocation2 + $0x2c] sm:$0x1] %v9451_v42 }
 0x1de   : > { %2621 = vst [vmem:[#allocation2 + $0x30] sm:$0xf] %v9451_v42  ;;  %2622 = vst [vmem:[#allocation2 + $0x34] sm:$0xf] %v9451_v42 }
 0x1df   : > { %8703 = vmatmul.mubr.msk.bf16.gmra.mrb[28].mxu0 %vm563_vm2, %v365_v41  ;;  %2623 = vst [vmem:[#allocation2 + $0x38] sm:$0x1] %v9451_v42  ;;  %2624 = vst [vmem:[#allocation2 + $0x3c] sm:$0xf] %v9451_v42 }
 0x1e0   : > { %8708 = vmatprep.mubr.msk.bf16.mxu0 %vm563_vm2, %v9633_v1  ;;  %v330_v1 = vld [vmem:[%s9559_s21 + $0x1a8] sm:$0x3]  ;;  %2625 = vst [vmem:[#allocation2 + $0x40] sm:$0xf] %v9451_v42  ;;  %2626 = vst [vmem:[#allocation2 + $0x44] sm:$0x1] %v9451_v42  ;;  %s12538_s21 = scalar_lea.hbm %s12587_s7, %s7756_s9 }
 0x1e1   : > { %2627 = vst [vmem:[#allocation2 + $0x48] sm:$0xf] %v9451_v42  ;;  %2628 = vst [vmem:[#allocation2 + $0x4c] sm:$0xf] %v9451_v42 }
 0x1e2   : > { %2629 = vst [vmem:[#allocation2 + $0x50] sm:$0x1] %v9451_v42  ;;  %2630 = vst [vmem:[#allocation2 + $0x54] sm:$0xf] %v9451_v42 }
 0x1e3   : > { %2631 = vst [vmem:[#allocation2 + $0x58] sm:$0xf] %v9451_v42  ;;  %2632 = vst [vmem:[#allocation2 + $0x5c] sm:$0x1] %v9451_v42 }
 0x1e4   : > { %2633 = vst [vmem:[#allocation2 + $0x60] sm:$0xf] %v9451_v42  ;;  %2634 = vst [vmem:[#allocation2 + $0x64] sm:$0xf] %v9451_v42 }
 0x1e5   : > { %2635 = vst [vmem:[#allocation2 + $0x68] sm:$0x1] %v9451_v42  ;;  %2636 = vst [vmem:[#allocation2 + $0x6c] sm:$0xf] %v9451_v42 }
 0x1e6   : > { %2637 = vst [vmem:[#allocation2 + $0x70] sm:$0xf] %v9451_v42  ;;  %2638 = vst [vmem:[#allocation2 + $0x74] sm:$0x1] %v9451_v42 }
 0x1e7   : > { %8709 = vmatmul.mubr.msk.bf16.vlgmr.msra.gmra.mrb[0].mxu0 %vm563_vm2, %v9651_v16  ;;  %v366_v16 = vpack.c.bf16 %v330_v1, %v330_v1  ;;  %2639 = vst [vmem:[#allocation2 + $0x78] sm:$0xf] %v9451_v42  ;;  %2640 = vst [vmem:[#allocation2 + $0x7c] sm:$0xf] %v9451_v42 }
 0x1e8   : > { %8712 = vmatprep.mubr.msk.bf16.mxu0 %vm563_vm2, %v9661_v27  ;;  %8741 = vmatpush3.bf16.msra.mxu0 %v2343_v56  ;;  %v2122_v27 = vshll.u32 %v365_v41, 16  ;;  %2641 = vst [vmem:[#allocation2 + $0x80] sm:$0x1] %v9451_v42  ;;  %2642 = vst [vmem:[#allocation2 + $0x84] sm:$0xf] %v9451_v42 }
 0x1e9   : > { %v2127_v61 = vshll.u32 %v366_v16, 16  ;;  %v2335_v2 = vrot.slane %v366_v16, 1  ;;  %2643 = vst [vmem:[#allocation2 + $0x88] sm:$0xf] %v9451_v42  ;;  %2644 = vst [vmem:[#allocation2 + $0x8c] sm:$0x1] %v9451_v42 }
 0x1ea   : > { %2645 = vst [vmem:[#allocation2 + $0x90] sm:$0xf] %v9451_v42  ;;  %2646 = vst [vmem:[#allocation2 + $0x94] sm:$0xf] %v9451_v42 }
 0x1eb   : > { %2647 = vst [vmem:[#allocation2 + $0x98] sm:$0x1] %v9451_v42  ;;  %2648 = vst [vmem:[#allocation2 + $0x9c] sm:$0xf] %v9451_v42 }
 0x1ec   : > { %2649 = vst [vmem:[#allocation2 + $0xa0] sm:$0xf] %v9451_v42  ;;  %2650 = vst [vmem:[#allocation2 + $0xa4] sm:$0x1] %v9451_v42 }
 0x1ed   : > { %2651 = vst [vmem:[#allocation2 + $0xa8] sm:$0xf] %v9451_v42  ;;  %2652 = vst [vmem:[#allocation2 + $0xac] sm:$0xf] %v9451_v42 }
 0x1ee   : > { %2653 = vst [vmem:[#allocation2 + $0xb0] sm:$0x1] %v9451_v42  ;;  %2654 = vst [vmem:[#allocation2 + $0xb4] sm:$0xf] %v9451_v42 }
 0x1ef   : > { %8713 = vmatmul.mubr.msk.bf16.gmra.mrb[4].mxu0 %vm563_vm2, %v9685_v52  ;;  %v2120_v52 = vshrl.u32 %v365_v41, 16  ;;  %2655 = vst [vmem:[#allocation2 + $0xb8] sm:$0xf] %v9451_v42  ;;  %2656 = vst [vmem:[#allocation2 + $0xbc] sm:$0x1] %v9451_v42 }
 0x1f0   : > { %8716 = vmatprep.mubr.msk.bf16.mxu0 %vm563_vm2, %v9691_v57  ;;  %v2124_v57 = vrot.slane %v2122_v27, 1  ;;  %2657 = vst [vmem:[#allocation2 + $0xc0] sm:$0xf] %v9451_v42  ;;  %2658 = vst [vmem:[#allocation2 + $0xc4] sm:$0xf] %v9451_v42 }
 0x1f1   : > { %2659 = vst [vmem:[#allocation2 + $0xc8] sm:$0x1] %v9451_v42  ;;  %2660 = vst [vmem:[#allocation2 + $0xcc] sm:$0xf] %v9451_v42 }
 0x1f2   : > { %v2125_v24 = vor.u32 %v2124_v57, %v2120_v52  ;;  %2661 = vst [vmem:[#allocation2 + $0xd0] sm:$0xf] %v9451_v42  ;;  %2662 = vst [vmem:[#allocation2 + $0xd4] sm:$0x1] %v9451_v42 }
 0x1f7   : > { %8717 = vmatmul.mubr.msk.bf16.gmra.mrb[8].mxu0 %vm563_vm2, %v9717_v28  ;;  %v2129_v28 = vrot.slane %v2127_v61, 1 }
 0x1f8   : > { %8720 = vmatprep.mubr.msk.bf16.mxu0 %vm563_vm2, %v9724_v37  ;;  %v2334_v37 = vrot.slane %v365_v41, 1 }
 0x1f9   : > { %v2130_v34 = vsel %vm368_vm1, %v2125_v24, %v2129_v28  ;;  %vm10302_vm1 = vmand %vm3090_vm14, %vm2759_vm12 }
 0x1fa   : > { %v2336_v13 = vsel %vm1005_vm3, %v2334_v37, %v2335_v2  ;;  %v9252_v37 = vld [vmem:[%s12583_s3 + $0xd0] sm:$0xff]  }
 0x1ff   : > { %8721 = vmatmul.mubr.msk.bf16.gmra.mrb[12].mxu0 %vm563_vm2, %v9755_v22  ;;  %v9227_v22 = vld [vmem:[%s12583_s3 + $0x50] sm:$0xff]  }
 0x200   : > { %8724 = vmatprep.mubr.msk.bf16.mxu0 %vm563_vm2, %v9759_v29  ;;  %v9228_v29 = vld [vmem:[%s12583_s3 + $0x10] sm:$0xff]   ;;  %7948 = vmatprep.subr.bf16.mxu1 %v9227_v22 }
 0x201   : > { %7949 = vmatpush3.bf16.msra.mxu1 %v9228_v29 }
 0x207   : > { %8725 = vmatmul.mubr.msk.bf16.gmra.mrb[16].mxu0 %vm563_vm2, %v9778_v10  ;;  %v9229_v10 = vld [vmem:[%s12583_s3 + $0x58] sm:$0xff]  }
 0x208   : > { %8728 = vmatprep.mubr.msk.bf16.mxu0 %vm563_vm2, %v9783_v8  ;;  %v9230_v8 = vld [vmem:[%s12583_s3 + $0x18] sm:$0xff]   ;;  %7950 = vmatprep.subr.bf16.mxu1 %v9229_v10  ;;  %v9253_v10 = vld [vmem:[%s12583_s3 + $0x90] sm:$0xff]  }
 0x209   : > { %7951 = vmatpush3.bf16.msra.mxu1 %v9230_v8 }
 0x20f   : > { %8729 = vmatmul.mubr.msk.bf16.gmra.mrb[20].mxu0 %vm563_vm2, %v9792_v39  ;;  %v9231_v39 = vld [vmem:[%s12583_s3 + $0x60] sm:$0xff]  }
 0x210   : > { %8732 = vmatprep.mubr.msk.bf16.mxu0 %vm563_vm2, %v9795_v43  ;;  %v9232_v43 = vld [vmem:[%s12583_s3 + $0x20] sm:$0xff]   ;;  %7952 = vmatprep.subr.bf16.mxu1 %v9231_v39 }
 0x211   : > { %7953 = vmatpush3.bf16.msra.mxu1 %v9232_v43 }
 0x217   : > { %8733 = vmatmul.mubr.msk.bf16.gmra.mrb[24].mxu0 %vm563_vm2, %v9804_v49  ;;  %v9233_v49 = vld [vmem:[%s12583_s3 + $0x68] sm:$0xff]  }
 0x218   : > { %8736 = vmatprep.mubr.msk.bf16.mxu0 %vm563_vm2, %v10038_v40  ;;  %7954 = vmatprep.subr.bf16.mxu1 %v9233_v49 }
 0x21f   : > { %8737 = vmatmul.mubr.msk.bf16.gmra.mrb[28].mxu0 %vm563_vm2, %v2130_v34 }
 0x220   : > { %8742 = vmatprep.mubr.msk.bf16.mxu0 %vm563_vm2, %v9856_v7  ;;  %v9234_v7 = vld [vmem:[%s12583_s3 + $0x28] sm:$0xff]  }
 0x221   : > { %7955 = vmatpush3.bf16.msra.mxu1 %v9234_v7 }
 0x227   : > { %8743 = vmatmul.mubr.msk.bf16.vlgmr.msra.gmra.mrb[0].mxu0 %vm563_vm2, %v9872_v32  ;;  %v3200_v32 = vld [vmem:[#allocation2] sm:$0xf] }
 0x228   : > { %8746 = vmatprep.mubr.msk.bf16.mxu0 %vm563_vm2, %v9875_v35  ;;  %v10223_v35 = vld [vmem:[#allocation2 + $0x4] sm:$0xf] }
 0x229   : > { %v7539_v21 = vcombine.low %v3200_v32, %v10223_v35  ;;  %v3704_v17 = vrot.slane %v10223_v35, 5 }
 0x22b   : > { %v3706_v45 = vrot.slane %v3704_v17, 4 }
 0x22f   : > { %8747 = vmatmul.mubr.msk.bf16.gmra.mrb[4].mxu0 %vm563_vm2, %v9886_v48  ;;  %v3252_v48 = vshrl.u32 %v3200_v32, 16 }
 0x230   : > { %8750 = vmatprep.mubr.msk.bf16.mxu0 %vm563_vm2, %v9889_v50  ;;  %v3255_v50 = vshll.u32 %v3200_v32, 16 }
 0x237   : > { %8751 = vmatmul.mubr.msk.bf16.gmra.mrb[8].mxu0 %vm563_vm2, %v9900_v58  ;;  %v3261_v58 = vshll.u32 %v10223_v35, 16 }
 0x238   : > { %8754 = vmatprep.mubr.msk.bf16.mxu0 %vm563_vm2, %v9903_v60  ;;  %v3265_v60 = vshrl.u32 %v10223_v35, 16 }
 0x23f   : > { %8755 = vmatmul.mubr.msk.bf16.gmra.mrb[12].mxu0 %vm563_vm2, %v9914_v15  ;;  %v9235_v15 = vld [vmem:[%s12583_s3 + $0x70] sm:$0xff]  }
 0x240   : > { %8758 = vmatprep.mubr.msk.bf16.mxu0 %vm563_vm2, %v9917_v19  ;;  %v3254_v19 = vrot.slane %v3252_v48, 4  ;;  %7956 = vmatprep.subr.bf16.mxu1 %v9235_v15  ;;  %v3095_v48 = vld [vmem:[#allocation2 + $0x18] sm:$0xf] }
 0x247   : > { %8759 = vmatmul.mubr.msk.bf16.gmra.mrb[16].mxu0 %vm563_vm2, %v9928_v23  ;;  %v3257_v23 = vrot.slane %v3255_v50, 5 }
 0x248   : > { %8762 = vmatprep.mubr.msk.bf16.mxu0 %vm563_vm2, %v9931_v25  ;;  %v3263_v25 = vrot.slane %v3261_v58, 5 }
 0x249   : > { %v3258_v53 = vor.u32 %v3257_v23, %v3254_v19 }
 0x24b   : > { %v3259_v14 = vrot.slane %v3258_v53, 4 }
 0x24d   : > { %v3264_v44 = vsel %vm10239_vm6, %v3259_v14, %v3263_v25 }
 0x24f   : > { %8763 = vmatmul.mubr.msk.bf16.gmra.mrb[20].mxu0 %vm563_vm2, %v9942_v51  ;;  %v3267_v51 = vrot.slane %v3265_v60, 4 }
 0x250   : > { %8766 = vmatprep.mubr.msk.bf16.mxu0 %vm563_vm2, %v9945_v47  ;;  %v9236_v47 = vld [vmem:[%s12583_s3 + $0x30] sm:$0xff]  }
 0x251   : > { %v3268_v11 = vor.u32 %v3267_v51, %v3263_v25  ;;  %7957 = vmatpush3.bf16.msra.mxu1 %v9236_v47  ;;  %v3086_v51 = vld [vmem:[#allocation2 + $0xc] sm:$0xf]  ;;  %v9276_v47 = vld [vmem:[%s12583_s3 + $0x140] sm:$0xff]  }
 0x252   : > { %7958 = vmatprep.subr.bf16.mxu1 %v9237_v12 }
 0x253   : > { %v3269_v33 = vrot.slane %v3268_v11, 4 }
 0x255   : > { %7959 = vmatpush3.bf16.msra.mxu1 %v9238_v62  ;;  %v3099_v62 = vld [vmem:[#allocation2 + $0x20] sm:$0x1] }
 0x256   : > { %8056 = vmatprep.subr.bf16.mxu1 %v9244_v54 }
 0x257   : > { %8767 = vmatmul.mubr.msk.bf16.gmra.mrb[24].mxu0 %vm563_vm2, %v9954_v3  ;;  %v3232_v3 = vld [vmem:[#allocation2 + $0x8] sm:$0x1] }
 0x258   : > { %8770 = vmatprep.mubr.msk.bf16.mxu0 %vm563_vm2, %v10079_v59  ;;  %v3271_v18 = vshll.u32 %v3232_v3, 16  ;;  %v3707_v40 = vrot.slane %v3232_v3, 5  ;;  %v9245_v59 = vld [vmem:[%s12583_s3 + $0x80] sm:$0xff]  }
 0x25a   : > { %v3273_v0 = vrot.slane %v3271_v18, 5  ;;  %v10257_v6 = vsel %vm10251_vm9, %v3706_v45, %v3707_v40 }
 0x25c   : > { %v3274_v30 = vsel %vm10239_vm6, %v3269_v33, %v3273_v0 }
 0x25d   : > { %v7555_v9 = vcombine.low %v3264_v44, %v3274_v30 }
 0x25f   : > { %8771 = vmatmul.mubr.msk.bf16.gmra.mrb[28].mxu0 %vm563_vm2, %v2336_v13  ;;  %6270 = vmatprep.mubr.bf16.mxu1 %v7555_v9  ;;  %vm9454_vm2 = vmmov 0  }
 0x260   : > { %6271 = vmatmul.mubr.bf16.vlgmr.msra.gmra.mrb[0].mxu1 %v7539_v21  ;;  %v3092_v21 = vld [vmem:[#allocation2 + $0x14] sm:$0x1] }
 0x261   : > { %8057 = vmatpush3.bf16.msra.mxu1 %v9245_v59 }
 0x262   : > { %8058 = vmatprep.subr.bf16.mxu1 %v9248_v5 }
 0x265   : > { %8059 = vmatpush3.bf16.msra.mxu1 %v9249_v38 }
 0x266   : > { %8060 = vmatprep.subr.bf16.mxu1 %v9252_v37 }
 0x269   : > { %8061 = vmatpush3.bf16.msra.mxu1 %v9253_v10 }
 0x2fa   : > { %v8744_v36 = vpop.f32.mrb[0].mxu0 }
 0x2fb   : > { %v2547_v41 = vadd.f32 %v8744_v36, %v10274_v20  ;;  %v2379_v63 = vpop.f32.mrb[1].mxu0 }
 0x2fc   : > { %v2545_v4 = vadd.f32 %v10274_v20, %v2379_v63  ;;  %v8745_v26 = vpop.f32.mrb[2].mxu0 }
 0x2fd   : > { %v2579_v31 = vmax.f32 %v2547_v41, 0.0  ;;  %v2548_v56 = vadd.f32 %v8745_v26, %v10274_v20  ;;  %v2382_v1 = vpop.f32.mrb[3].mxu0 }
 0x2fe   : > { %v2577_v16 = vmax.f32 %v2545_v4, 0.0  ;;  %v2546_v27 = vadd.f32 %v10274_v20, %v2382_v1 }
 0x2ff   : > { %v7761_v52 = vpack.c.bf16 %v2579_v31, %v2579_v31  ;;  %v2580_v57 = vmax.f32 %v2548_v56, 0.0 }
 0x300   : > { %v7759_v61 = vpack.c.bf16 %v2577_v16, %v2577_v16  ;;  %v2578_v24 = vmax.f32 %v2546_v27, 0.0 }
 0x301   : > { %v2780_v28 = vshrl.u32 %v7761_v52, 16  ;;  %v7762_v34 = vpack.c.bf16 %v2580_v57, %v2580_v57  ;;  %v2783_v2 = vshll.u32 %v7761_v52, 16 }
 0x302   : > { %v2763_v13 = vshrl.u32 %v7759_v61, 16  ;;  %v2766_v22 = vshll.u32 %v7759_v61, 16  ;;  %v7760_v29 = vpack.c.bf16 %v2578_v24, %v2578_v24  ;;  %v8748_v42 = vpop.f32.mrb[4].mxu0  ;;  %v3109_v61 = vld [vmem:[#allocation2 + $0x30] sm:$0xf] }
 0x303   : > { %v2782_v8 = vrot.slane %v2780_v28, 7  ;;  %v2788_v39 = vshrl.u32 %v7762_v34, 16  ;;  %v2791_v43 = vshll.u32 %v7762_v34, 16  ;;  %v2551_v49 = vadd.f32 %v8748_v42, %v10274_v20  ;;  %v2395_v7 = vpop.f32.mrb[5].mxu0 }
 0x304   : > { %v2765_v50 = vrot.slane %v2763_v13, 7  ;;  %v2771_v58 = vshrl.u32 %v7760_v29, 16  ;;  %v2774_v60 = vshll.u32 %v7760_v29, 16  ;;  %v2549_v15 = vadd.f32 %v10274_v20, %v2395_v7  ;;  %v8749_v19 = vpop.f32.mrb[6].mxu0 }
 0x305   : > { %v2785_v23 = vor.u32 %v2783_v2, %v2782_v8  ;;  %v2786_v25 = vrot.slane %v2782_v8, 4  ;;  %v2790_v3 = vrot.slane %v2788_v39, 7  ;;  %v2583_v53 = vmax.f32 %v2551_v49, 0.0  ;;  %v2398_v11 = vpop.f32.mrb[7].mxu0 }
 0x306   : > { %v2768_v18 = vor.u32 %v2766_v22, %v2765_v50  ;;  %v2769_v12 = vrot.slane %v2765_v50, 4  ;;  %v2773_v33 = vrot.slane %v2771_v58, 7  ;;  %v2581_v0 = vmax.f32 %v2549_v15, 0.0  ;;  %v3102_v22 = vld [vmem:[#allocation2 + $0x24] sm:$0xf] }
 0x307   : > { %v3096_v44 = vsel %vm10289_vm15, %v2785_v23, %v3095_v48  ;;  %v2793_v30 = vor.u32 %v2791_v43, %v2790_v3  ;;  %v2795_v9 = vrot.slane %v2790_v3, 4  ;;  %v7765_v40 = vpack.c.bf16 %v2583_v53, %v2583_v53 }
 0x308   : > { %3097 = vst [vmem:[#allocation2 + $0x18] sm:$0xf] %v3096_v44  ;;  %v3087_v45 = vsel %vm10289_vm15, %v2768_v18, %v3086_v51  ;;  %v2776_v54 = vor.u32 %v2774_v60, %v2773_v33  ;;  %v2778_v59 = vrot.slane %v2773_v33, 4  ;;  %v7763_v5 = vpack.c.bf16 %v2581_v0, %v2581_v0  ;;  %v3106_v18 = vld [vmem:[#allocation2 + $0x2c] sm:$0x1] }
 0x309   : > { %3088 = vst [vmem:[#allocation2 + $0xc] sm:$0xf] %v3087_v45  ;;  %v2794_v38 = vsel %vm10296_vm0, %v2786_v25, %v2793_v30  ;;  %v3100_v36 = vsel %vm10302_vm1, %v2795_v9, %v3099_v62  ;;  %v2814_v41 = vshrl.u32 %v7765_v40, 16  ;;  %v2817_v26 = vshll.u32 %v7765_v40, 16  ;;  %v9256_v30 = vld [vmem:[%s12583_s3 + $0xd8] sm:$0xff]  }
 0x30a   : > { %3098 = vst [vmem:[#allocation2 + $0x1c] sm:$0xf] %v2794_v38  ;;  %3101 = vst [vmem:[#allocation2 + $0x20] sm:$0x1] %v3100_v36  ;;  %v2777_v63 = vsel %vm10296_vm0, %v2769_v12, %v2776_v54  ;;  %v3093_v4 = vsel %vm10302_vm1, %v2778_v59, %v3092_v21  ;;  %v2797_v31 = vshrl.u32 %v7763_v5, 16  ;;  %v8752_v56 = vpop.f32.mrb[8].mxu0  ;;  %v2552_v16 = vadd.f32 %v8749_v19, %v10274_v20 }
 0x30b   : > { %3089 = vst [vmem:[#allocation2 + $0x10] sm:$0xf] %v2777_v63  ;;  %3094 = vst [vmem:[#allocation2 + $0x14] sm:$0x1] %v3093_v4  ;;  %v10318_v1 = vrot.slane %v2814_v41, 7  ;;  %v2550_v27 = vadd.f32 %v10274_v20, %v2398_v11  ;;  %v2555_v52 = vadd.f32 %v8752_v56, %v10274_v20  ;;  %v2411_v57 = vpop.f32.mrb[9].mxu0  ;;  %8062 = vmatprep.subr.bf16.mxu1 %v9256_v30 }
 0x30c   : > { %v10323_v24 = vrot.slane %v2797_v31, 7  ;;  %v2800_v28 = vshll.u32 %v7763_v5, 16  ;;  %v2553_v34 = vadd.f32 %v10274_v20, %v2411_v57  ;;  %v8753_v37 = vpop.f32.mrb[10].mxu0  ;;  %v2584_v29 = vmax.f32 %v2552_v16, 0.0  ;;  %v3113_v11 = vld [vmem:[#allocation2 + $0x38] sm:$0x1] }
 0x30d   : > { %v2819_v2 = vor.u32 %v2817_v26, %v10318_v1  ;;  %v2820_v13 = vrot.slane %v10318_v1, 4  ;;  %v2582_v42 = vmax.f32 %v2550_v27, 0.0  ;;  %v2414_v10 = vpop.f32.mrb[11].mxu0  ;;  %v2587_v43 = vmax.f32 %v2555_v52, 0.0  ;;  %v9257_v59 = vld [vmem:[%s12583_s3 + $0x98] sm:$0xff]  }
 0x30e   : > { %v2802_v8 = vor.u32 %v2800_v28, %v10323_v24  ;;  %v2803_v39 = vrot.slane %v10323_v24, 4  ;;  %v2585_v49 = vmax.f32 %v2553_v34, 0.0  ;;  %v7766_v48 = vpack.c.bf16 %v2584_v29, %v2584_v29  ;;  %v3123_v38 = vld [vmem:[#allocation2 + $0x48] sm:$0xf]  ;;  %v3116_v16 = vld [vmem:[#allocation2 + $0x3c] sm:$0xf]  ;;  %8063 = vmatpush3.bf16.msra.mxu1 %v9257_v59 }
 0x30f   : > { %v3110_v7 = vsel %vm10289_vm15, %v2819_v2, %v3109_v61  ;;  %v7764_v50 = vpack.c.bf16 %v2582_v42, %v2582_v42  ;;  %v2556_v58 = vadd.f32 %v8753_v37, %v10274_v20  ;;  %v7769_v15 = vpack.c.bf16 %v2587_v43, %v2587_v43 }
 0x310   : > { %3111 = vst [vmem:[#allocation2 + $0x30] sm:$0xf] %v3110_v7  ;;  %v3103_v60 = vsel %vm10289_vm15, %v2802_v8, %v3102_v22  ;;  %v7767_v19 = vpack.c.bf16 %v2585_v49, %v2585_v49  ;;  %v2554_v23 = vadd.f32 %v10274_v20, %v2414_v10  ;;  %v2822_v25 = vshrl.u32 %v7766_v48, 16 }
 0x311   : > { %3104 = vst [vmem:[#allocation2 + $0x24] sm:$0xf] %v3103_v60  ;;  %v2825_v51 = vshll.u32 %v7766_v48, 16  ;;  %v2805_v3 = vshrl.u32 %v7764_v50, 16  ;;  %v2808_v53 = vshll.u32 %v7764_v50, 16  ;;  %v2848_v12 = vshrl.u32 %v7769_v15, 16 }
 0x312   : > { %v2851_v62 = vshll.u32 %v7769_v15, 16  ;;  %v2831_v33 = vshrl.u32 %v7767_v19, 16  ;;  %v2834_v0 = vshll.u32 %v7767_v19, 16  ;;  %v8756_v44 = vpop.f32.mrb[12].mxu0  ;;  %v2824_v9 = vrot.slane %v2822_v25, 7 }
 0x313   : > { %v2807_v21 = vrot.slane %v2805_v3, 7  ;;  %v2588_v40 = vmax.f32 %v2556_v58, 0.0  ;;  %v2586_v45 = vmax.f32 %v2554_v23, 0.0  ;;  %v2427_v54 = vpop.f32.mrb[13].mxu0  ;;  %v10342_v5 = vrot.slane %v2848_v12, 7 }
 0x314   : > { %v10344_v36 = vrot.slane %v2831_v33, 7  ;;  %v2559_v41 = vadd.f32 %v8756_v44, %v10274_v20  ;;  %v2557_v63 = vadd.f32 %v10274_v20, %v2427_v54  ;;  %v8757_v4 = vpop.f32.mrb[14].mxu0  ;;  %v2827_v26 = vor.u32 %v2825_v51, %v2824_v9  ;;  %v3127_v60 = vld [vmem:[#allocation2 + $0x50] sm:$0x1] }
 0x315   : > { %v2829_v31 = vrot.slane %v2824_v9, 4  ;;  %v2810_v56 = vor.u32 %v2808_v53, %v2807_v21  ;;  %v2812_v1 = vrot.slane %v2807_v21, 4  ;;  %v2430_v27 = vpop.f32.mrb[15].mxu0  ;;  %v2853_v52 = vor.u32 %v2851_v62, %v10342_v5 }
 0x316   : > { %v2854_v57 = vrot.slane %v10342_v5, 4  ;;  %v2836_v61 = vor.u32 %v2834_v0, %v10344_v36  ;;  %v2837_v24 = vrot.slane %v10344_v36, 4  ;;  %v2828_v28 = vsel %vm10296_vm0, %v2820_v13, %v2827_v26 }
 0x317   : > { %v3114_v34 = vsel %vm10302_vm1, %v2829_v31, %v3113_v11  ;;  %v2811_v37 = vsel %vm10296_vm0, %v2803_v39, %v2810_v56  ;;  %v3107_v2 = vsel %vm10302_vm1, %v2812_v1, %v3106_v18  ;;  %3112 = vst [vmem:[#allocation2 + $0x34] sm:$0xf] %v2828_v28  ;;  %v3124_v22 = vsel %vm10289_vm15, %v2853_v52, %v3123_v38  ;;  %v3120_v11 = vld [vmem:[#allocation2 + $0x44] sm:$0x1]  ;;  %v3137_v31 = vld [vmem:[#allocation2 + $0x60] sm:$0xf] }
 0x318   : > { %3115 = vst [vmem:[#allocation2 + $0x38] sm:$0x1] %v3114_v34  ;;  %3105 = vst [vmem:[#allocation2 + $0x28] sm:$0xf] %v2811_v37  ;;  %v3117_v29 = vsel %vm10289_vm15, %v2836_v61, %v3116_v16  ;;  %v7770_v13 = vpack.c.bf16 %v2588_v40, %v2588_v40  ;;  %v7768_v42 = vpack.c.bf16 %v2586_v45, %v2586_v45  ;;  %v2591_v10 = vmax.f32 %v2559_v41, 0.0  ;;  %v9260_v61 = vld [vmem:[%s12583_s3 + $0xe0] sm:$0xff]  }
 0x319   : > { %3108 = vst [vmem:[#allocation2 + $0x2c] sm:$0x1] %v3107_v2  ;;  %3125 = vst [vmem:[#allocation2 + $0x48] sm:$0xf] %v3124_v22  ;;  %v2589_v8 = vmax.f32 %v2557_v63, 0.0  ;;  %v2560_v39 = vadd.f32 %v8757_v4, %v10274_v20  ;;  %v2558_v43 = vadd.f32 %v10274_v20, %v2430_v27  ;;  %v9261_v22 = vld [vmem:[%s12583_s3 + $0xa0] sm:$0xff]   ;;  %8064 = vmatprep.subr.bf16.mxu1 %v9260_v61 }
 0x31a   : > { %3118 = vst [vmem:[#allocation2 + $0x3c] sm:$0xf] %v3117_v29  ;;  %v2856_v49 = vshrl.u32 %v7770_v13, 16  ;;  %v2859_v7 = vshll.u32 %v7770_v13, 16  ;;  %v2839_v48 = vshrl.u32 %v7768_v42, 16  ;;  %v2842_v50 = vshll.u32 %v7768_v42, 16  ;;  %8065 = vmatpush3.bf16.msra.mxu1 %v9261_v22 }
 0x31b   : > { %v8760_v58 = vpop.f32.mrb[16].mxu0  ;;  %v7773_v15 = vpack.c.bf16 %v2591_v10, %v2591_v10  ;;  %v7771_v19 = vpack.c.bf16 %v2589_v8, %v2589_v8  ;;  %v2592_v23 = vmax.f32 %v2560_v39, 0.0  ;;  %v2590_v25 = vmax.f32 %v2558_v43, 0.0  ;;  %v3130_v56 = vld [vmem:[#allocation2 + $0x54] sm:$0xf] }
 0x31c   : > { %v2443_v51 = vpop.f32.mrb[17].mxu0  ;;  %v2858_v3 = vrot.slane %v2856_v49, 7  ;;  %v2841_v53 = vrot.slane %v2839_v48, 7  ;;  %v2563_v18 = vadd.f32 %v8760_v58, %v10274_v20  ;;  %v3141_v43 = vld [vmem:[#allocation2 + $0x68] sm:$0x1] }
 0x31d   : > { %v2561_v12 = vadd.f32 %v10274_v20, %v2443_v51  ;;  %v8761_v62 = vpop.f32.mrb[18].mxu0  ;;  %v2882_v33 = vshrl.u32 %v7773_v15, 16  ;;  %v2885_v0 = vshll.u32 %v7773_v15, 16  ;;  %v2865_v44 = vshrl.u32 %v7771_v19, 16  ;;  %v3134_v58 = vld [vmem:[#allocation2 + $0x5c] sm:$0x1] }
 0x31e   : > { %v2868_v30 = vshll.u32 %v7771_v19, 16  ;;  %v2446_v9 = vpop.f32.mrb[19].mxu0  ;;  %v2861_v21 = vor.u32 %v2859_v7, %v2858_v3  ;;  %v2863_v40 = vrot.slane %v2858_v3, 4  ;;  %v2844_v45 = vor.u32 %v2842_v50, %v2841_v53 }
 0x31f   : > { %v2846_v54 = vrot.slane %v2841_v53, 4  ;;  %v2884_v59 = vrot.slane %v2882_v33, 7  ;;  %v2867_v5 = vrot.slane %v2865_v44, 7  ;;  %v7774_v38 = vpack.c.bf16 %v2592_v23, %v2592_v23 }
 0x320   : > { %v7772_v36 = vpack.c.bf16 %v2590_v25, %v2590_v25  ;;  %v2862_v41 = vsel %vm10296_vm0, %v2854_v57, %v2861_v21  ;;  %v3128_v63 = vsel %vm10302_vm1, %v2863_v40, %v3127_v60  ;;  %v2845_v4 = vsel %vm10296_vm0, %v2837_v24, %v2844_v45  ;;  %v10376_v57 = vld [vmem:[#allocation2 + $0xc] sm:$0xf]  ;;  %v3151_v40 = vld [vmem:[#allocation2 + $0x78] sm:$0xf] }
 0x321   : > { %v3121_v26 = vsel %vm10302_vm1, %v2846_v54, %v3120_v11  ;;  %3126 = vst [vmem:[#allocation2 + $0x4c] sm:$0xf] %v2862_v41  ;;  %3129 = vst [vmem:[#allocation2 + $0x50] sm:$0x1] %v3128_v63  ;;  %v2887_v1 = vor.u32 %v2885_v0, %v2884_v59  ;;  %v2888_v16 = vrot.slane %v2884_v59, 4  ;;  %v2870_v27 = vor.u32 %v2868_v30, %v2867_v5 }
 0x322   : > { %3119 = vst [vmem:[#allocation2 + $0x40] sm:$0xf] %v2845_v4  ;;  %3122 = vst [vmem:[#allocation2 + $0x44] sm:$0x1] %v3121_v26  ;;  %v2871_v52 = vrot.slane %v2867_v5, 4  ;;  %v2890_v24 = vshrl.u32 %v7774_v38, 16  ;;  %v2564_v7 = vadd.f32 %v8761_v62, %v10274_v20  ;;  %v2562_v48 = vadd.f32 %v10274_v20, %v2446_v9 }
 0x323   : > { %v2893_v28 = vshll.u32 %v7774_v38, 16  ;;  %v2873_v34 = vshrl.u32 %v7772_v36, 16  ;;  %v2876_v37 = vshll.u32 %v7772_v36, 16  ;;  %v10381_v2 = vpop.f32.mrb[20].mxu0  ;;  %v3138_v29 = vsel %vm10289_vm15, %v2887_v1, %v3137_v31  ;;  %v10400_v0 = vld [vmem:[#allocation2 + $0x10] sm:$0xf] }
 0x324   : > { %v3131_v13 = vsel %vm10289_vm15, %v2870_v27, %v3130_v56  ;;  %v2595_v42 = vmax.f32 %v2563_v18, 0.0  ;;  %v2593_v10 = vmax.f32 %v2561_v12, 0.0  ;;  %v10390_v8 = vpop.f32.mrb[21].mxu0  ;;  %3139 = vst [vmem:[#allocation2 + $0x60] sm:$0xf] %v3138_v29  ;;  %v2892_v39 = vrot.slane %v2890_v24, 7 }
 0x325   : > { %3132 = vst [vmem:[#allocation2 + $0x54] sm:$0xf] %v3131_v13  ;;  %v2875_v49 = vrot.slane %v2873_v34, 7  ;;  %v10394_v50 = vpop.f32.mrb[22].mxu0  ;;  %v3276_v19 = vshrl.u32 %v10376_v57, 16  ;;  %v3279_v23 = vshll.u32 %v10376_v57, 16 }
 0x326   : > { %v7777_v60 = vpack.c.bf16 %v2595_v42, %v2595_v42  ;;  %v7775_v15 = vpack.c.bf16 %v2593_v10, %v2593_v10  ;;  %v10398_v25 = vpop.f32.mrb[23].mxu0  ;;  %v2895_v51 = vor.u32 %v2893_v28, %v2892_v39  ;;  %v2897_v3 = vrot.slane %v2892_v39, 4  ;;  %v3144_v45 = vld [vmem:[#allocation2 + $0x6c] sm:$0xf]  ;;  %v3233_v36 = vld [vmem:[#allocation2 + $0x14] sm:$0x1] }
 0x327   : > { %v2878_v53 = vor.u32 %v2876_v37, %v2875_v49  ;;  %v2880_v11 = vrot.slane %v2875_v49, 4  ;;  %v2596_v5 = vmax.f32 %v2564_v7, 0.0  ;;  %v2594_v38 = vmax.f32 %v2562_v48, 0.0  ;;  %v10430_v10 = vld [vmem:[#allocation2 + $0x18] sm:$0xf] }
 0x328   : > { %v2916_v18 = vshrl.u32 %v7777_v60, 16  ;;  %v2919_v12 = vshll.u32 %v7777_v60, 16  ;;  %v2899_v62 = vshrl.u32 %v7775_v15, 16  ;;  %v2902_v33 = vshll.u32 %v7775_v15, 16 }
 0x329   : > { %v2896_v44 = vsel %vm10296_vm0, %v2888_v16, %v2895_v51  ;;  %v3142_v30 = vsel %vm10302_vm1, %v2897_v3, %v3141_v43  ;;  %v2879_v9 = vsel %vm10296_vm0, %v2871_v52, %v2878_v53  ;;  %v3135_v21 = vsel %vm10302_vm1, %v2880_v11, %v3134_v58  ;;  %v10434_v58 = vld [vmem:[#allocation2 + $0x1c] sm:$0xf]  ;;  %v3155_v3 = vld [vmem:[#allocation2 + $0x80] sm:$0x1] }
 0x32a   : > { %3140 = vst [vmem:[#allocation2 + $0x64] sm:$0xf] %v2896_v44  ;;  %3143 = vst [vmem:[#allocation2 + $0x68] sm:$0x1] %v3142_v30  ;;  %v10410_v54 = vrot.slane %v2916_v18, 7  ;;  %v10412_v59 = vrot.slane %v2899_v62, 7  ;;  %v7778_v61 = vpack.c.bf16 %v2596_v5, %v2596_v5  ;;  %v7776_v24 = vpack.c.bf16 %v2594_v38, %v2594_v38 }
 0x32b   : > { %3133 = vst [vmem:[#allocation2 + $0x58] sm:$0xf] %v2879_v9  ;;  %3136 = vst [vmem:[#allocation2 + $0x5c] sm:$0x1] %v3135_v21  ;;  %v3278_v41 = vrot.slane %v3276_v19, 4  ;;  %v3281_v63 = vrot.slane %v3279_v23, 5  ;;  %v7540_v23 = vcombine.low %v10376_v57, %v10400_v0 }
 0x32c   : > { %v3285_v4 = vshll.u32 %v10400_v0, 16  ;;  %v3289_v26 = vshrl.u32 %v10400_v0, 16  ;;  %v10416_v31 = vpop.f32.mrb[24].mxu0  ;;  %v2921_v56 = vor.u32 %v2919_v12, %v10410_v54  ;;  %v2922_v1 = vrot.slane %v10410_v54, 4  ;;  %v3148_v12 = vld [vmem:[#allocation2 + $0x74] sm:$0x1] }
 0x32d   : > { %v2904_v16 = vor.u32 %v2902_v33, %v10412_v59  ;;  %v2905_v27 = vrot.slane %v10412_v59, 4  ;;  %v10422_v52 = vpop.f32.mrb[25].mxu0  ;;  %v3282_v28 = vor.u32 %v3281_v63, %v3278_v41  ;;  %v3295_v42 = vshll.u32 %v3233_v36, 16  ;;  %v9264_v57 = vld [vmem:[%s12583_s3 + $0xe8] sm:$0xff]  }
 0x32e   : > { %v3287_v34 = vrot.slane %v3285_v4, 5  ;;  %v10424_v37 = vpop.f32.mrb[26].mxu0  ;;  %v3152_v22 = vsel %vm10289_vm15, %v2921_v56, %v3151_v40  ;;  %v3291_v13 = vrot.slane %v3289_v26, 4  ;;  %v2924_v43 = vshrl.u32 %v7778_v61, 16  ;;  %v9265_v59 = vld [vmem:[%s12583_s3 + $0xa8] sm:$0xff]   ;;  %8066 = vmatprep.subr.bf16.mxu1 %v9264_v57 }
 0x32f   : > { %v3145_v29 = vsel %vm10289_vm15, %v2904_v16, %v3144_v45  ;;  %v10432_v39 = vpop.f32.mrb[27].mxu0  ;;  %3153 = vst [vmem:[#allocation2 + $0x78] sm:$0xf] %v3152_v22  ;;  %v2927_v49 = vshll.u32 %v7778_v61, 16  ;;  %v2907_v7 = vshrl.u32 %v7776_v24, 16  ;;  %v2910_v48 = vshll.u32 %v7776_v24, 16  ;;  %8067 = vmatpush3.bf16.msra.mxu1 %v9265_v59 }
 0x330   : > { %3146 = vst [vmem:[#allocation2 + $0x6c] sm:$0xf] %v3145_v29  ;;  %v3283_v60 = vrot.slane %v3282_v28, 4  ;;  %v3292_v15 = vor.u32 %v3291_v13, %v3287_v34  ;;  %v3297_v19 = vrot.slane %v3295_v42, 5  ;;  %v2926_v51 = vrot.slane %v2924_v43, 7 }
 0x331   : > { %v2909_v53 = vrot.slane %v2907_v7, 7  ;;  %v3300_v11 = vshrl.u32 %v10430_v10, 16  ;;  %v3303_v18 = vshll.u32 %v10430_v10, 16  ;;  %v3309_v44 = vshll.u32 %v10434_v58, 16  ;;  %v3234_v45 = vld [vmem:[#allocation2 + $0x20] sm:$0x1] }
 0x332   : > { %v3288_v62 = vsel %vm10239_vm6, %v3283_v60, %v3287_v34  ;;  %v3293_v33 = vrot.slane %v3292_v15, 4  ;;  %v3313_v30 = vshrl.u32 %v10434_v58, 16  ;;  %v2929_v0 = vor.u32 %v2927_v49, %v2926_v51  ;;  %v10447_v54 = vpop.f32.mrb[28].mxu0  ;;  %v10476_v43 = vld [vmem:[#allocation2 + $0x24] sm:$0xf] }
 0x333   : > { %v2931_v9 = vrot.slane %v2926_v51, 4  ;;  %v2912_v21 = vor.u32 %v2910_v48, %v2909_v53  ;;  %v2914_v40 = vrot.slane %v2909_v53, 4  ;;  %v3302_v38 = vrot.slane %v3300_v11, 4  ;;  %v10454_v63 = vpop.f32.mrb[29].mxu0  ;;  %v10480_v51 = vld [vmem:[#allocation2 + $0x28] sm:$0xf] }
 0x334   : > { %v3298_v5 = vsel %vm10239_vm6, %v3293_v33, %v3297_v19  ;;  %v3305_v36 = vrot.slane %v3303_v18, 5  ;;  %v3311_v41 = vrot.slane %v3309_v44, 5  ;;  %v2930_v4 = vsel %vm10296_vm0, %v2922_v1, %v2929_v0  ;;  %v10464_v61 = vpop.f32.mrb[30].mxu0  ;;  %v9267_v11 = vld [vmem:[%s12583_s3 + $0xf0] sm:$0xff]  }
 0x335   : > { %v3156_v26 = vsel %vm10302_vm1, %v2931_v9, %v3155_v3  ;;  %v2913_v56 = vsel %vm10296_vm0, %v2905_v27, %v2912_v21  ;;  %v3149_v16 = vsel %vm10302_vm1, %v2914_v40, %v3148_v12  ;;  %3154 = vst [vmem:[#allocation2 + $0x7c] sm:$0xf] %v2930_v4  ;;  %v7556_v24 = vcombine.low %v3288_v62, %v3298_v5  ;;  %v10466_v22 = vpop.f32.mrb[31].mxu0  ;;  %v9270_v62 = vld [vmem:[%s12583_s3 + $0xf8] sm:$0xff]   ;;  %v3165_v4 = vld [vmem:[#allocation2 + $0x90] sm:$0xf] }
 0x336   : > { %3157 = vst [vmem:[#allocation2 + $0x80] sm:$0x1] %v3156_v26  ;;  %3147 = vst [vmem:[#allocation2 + $0x70] sm:$0xf] %v2913_v56  ;;  %v3306_v28 = vor.u32 %v3305_v36, %v3302_v38  ;;  %v3315_v34 = vrot.slane %v3313_v30, 4  ;;  %v3319_v1 = vshll.u32 %v3234_v45, 16  ;;  %v2567_v29 = vadd.f32 %v10381_v2, %v10274_v20  ;;  %8068 = vmatprep.subr.bf16.mxu1 %v9267_v11 }
 0x337   : > { %3150 = vst [vmem:[#allocation2 + $0x74] sm:$0x1] %v3149_v16  ;;  %v2565_v27 = vadd.f32 %v10274_v20, %v10390_v8  ;;  %v2568_v13 = vadd.f32 %v10394_v50, %v10274_v20  ;;  %v2566_v42 = vadd.f32 %v10274_v20, %v10398_v25  ;;  %6278 = vmatprep.mubr.bf16.mxu1 %v7556_v24  ;;  %v3324_v3 = vshrl.u32 %v10476_v43, 16  ;;  %v9271_v36 = vld [vmem:[%s12583_s3 + $0xb8] sm:$0xff]   ;;  %v3158_v24 = vld [vmem:[#allocation2 + $0x84] sm:$0xf] }
 0x338   : > { %v3307_v49 = vrot.slane %v3306_v28, 4  ;;  %v3316_v7 = vor.u32 %v3315_v34, %v3311_v41  ;;  %v3321_v48 = vrot.slane %v3319_v1, 5  ;;  %v7541_v60 = vcombine.low %v10430_v10, %v10434_v58  ;;  %6279 = vmatmul.mubr.bf16.gmra.mrb[4].mxu1 %v7540_v23  ;;  %v9268_v10 = vld [vmem:[%s12583_s3 + $0xb0] sm:$0xff]  }
 0x339   : > { %v2599_v2 = vmax.f32 %v2567_v29, 0.0  ;;  %v2597_v15 = vmax.f32 %v2565_v27, 0.0  ;;  %v2600_v19 = vmax.f32 %v2568_v13, 0.0  ;;  %v2598_v8 = vmax.f32 %v2566_v42, 0.0  ;;  %8069 = vmatpush3.bf16.msra.mxu1 %v9268_v10 }
 0x33a   : > { %v3312_v50 = vsel %vm10239_vm6, %v3307_v49, %v3311_v41  ;;  %v3317_v25 = vrot.slane %v3316_v7, 4  ;;  %v3327_v53 = vshll.u32 %v10476_v43, 16  ;;  %v3326_v44 = vrot.slane %v3324_v3, 4  ;;  %8070 = vmatprep.subr.bf16.mxu1 %v9270_v62  ;;  %v3169_v7 = vld [vmem:[#allocation2 + $0x98] sm:$0x1] }
 0x33b   : > { %v7781_v58 = vpack.c.bf16 %v2599_v2, %v2599_v2  ;;  %v7779_v23 = vpack.c.bf16 %v2597_v15, %v2597_v15  ;;  %v7782_v18 = vpack.c.bf16 %v2600_v19, %v2600_v19  ;;  %v7780_v12 = vpack.c.bf16 %v2598_v8, %v2598_v8 }
 0x33c   : > { %v3322_v33 = vsel %vm10239_vm6, %v3317_v25, %v3321_v48  ;;  %v3329_v30 = vrot.slane %v3327_v53, 5  ;;  %v3333_v57 = vshll.u32 %v10480_v51, 16  ;;  %v3337_v29 = vshrl.u32 %v10480_v51, 16  ;;  %v3162_v48 = vld [vmem:[#allocation2 + $0x8c] sm:$0x1] }
 0x33d   : > { %v7557_v0 = vcombine.low %v3312_v50, %v3322_v33  ;;  %v2950_v9 = vshrl.u32 %v7781_v58, 16  ;;  %v2953_v21 = vshll.u32 %v7781_v58, 16  ;;  %v2933_v40 = vshrl.u32 %v7779_v23, 16  ;;  %v3235_v50 = vld [vmem:[#allocation2 + $0x2c] sm:$0x1]  ;;  %8071 = vmatpush3.bf16.msra.mxu1 %v9271_v36 }
 0x33e   : > { %v2936_v45 = vshll.u32 %v7779_v23, 16  ;;  %v2958_v59 = vshrl.u32 %v7782_v18, 16  ;;  %v2961_v5 = vshll.u32 %v7782_v18, 16  ;;  %v2941_v38 = vshrl.u32 %v7780_v12, 16  ;;  %v10514_v18 = vld [vmem:[#allocation2 + $0x30] sm:$0xf]  ;;  %8168 = vmatprep.subr.bf16.mxu1 %v9276_v47 }
 0x33f   : > { %6286 = vmatprep.mubr.bf16.mxu1 %v7557_v0  ;;  %v2952_v41 = vrot.slane %v2950_v9, 7  ;;  %v2935_v26 = vrot.slane %v2933_v40, 7  ;;  %v2944_v56 = vshll.u32 %v7780_v12, 16  ;;  %v3330_v16 = vor.u32 %v3329_v30, %v3326_v44  ;;  %v10526_v9 = vld [vmem:[#allocation2 + $0x34] sm:$0xf] }
 0x340   : > { %v2960_v28 = vrot.slane %v2958_v59, 7  ;;  %v2943_v34 = vrot.slane %v2941_v38, 7  ;;  %v3335_v1 = vrot.slane %v3333_v57, 5  ;;  %6287 = vmatmul.mubr.bf16.gmra.mrb[8].mxu1 %v7541_v60  ;;  %v3339_v11 = vrot.slane %v3337_v29, 4 }
 0x341   : > { %v2955_v27 = vor.u32 %v2953_v21, %v2952_v41  ;;  %v2956_v13 = vrot.slane %v2952_v41, 4  ;;  %v2938_v42 = vor.u32 %v2936_v45, %v2935_v26  ;;  %v2939_v49 = vrot.slane %v2935_v26, 4 }
 0x342   : > { %v2963_v2 = vor.u32 %v2961_v5, %v2960_v28  ;;  %v2965_v15 = vrot.slane %v2960_v28, 4  ;;  %v2946_v19 = vor.u32 %v2944_v56, %v2943_v34  ;;  %v2948_v8 = vrot.slane %v2943_v34, 4 }
 0x343   : > { %v3166_v25 = vsel %vm10289_vm15, %v2955_v27, %v3165_v4  ;;  %v3159_v3 = vsel %vm10289_vm15, %v2938_v42, %v3158_v24  ;;  %v3331_v53 = vrot.slane %v3330_v16, 4  ;;  %v3340_v12 = vor.u32 %v3339_v11, %v3335_v1  ;;  %v3236_v42 = vld [vmem:[#allocation2 + $0x38] sm:$0x1] }
 0x344   : > { %3167 = vst [vmem:[#allocation2 + $0x90] sm:$0xf] %v3166_v25  ;;  %3160 = vst [vmem:[#allocation2 + $0x84] sm:$0xf] %v3159_v3  ;;  %v2964_v10 = vsel %vm10296_vm0, %v2956_v13, %v2963_v2  ;;  %v3170_v60 = vsel %vm10302_vm1, %v2965_v15, %v3169_v7  ;;  %v2947_v58 = vsel %vm10296_vm0, %v2939_v49, %v2946_v19  ;;  %v3343_v62 = vshll.u32 %v3235_v50, 16 }
 0x345   : > { %v3163_v23 = vsel %vm10302_vm1, %v2948_v8, %v3162_v48  ;;  %3168 = vst [vmem:[#allocation2 + $0x94] sm:$0xf] %v2964_v10  ;;  %3171 = vst [vmem:[#allocation2 + $0x98] sm:$0x1] %v3170_v60  ;;  %v2571_v33 = vadd.f32 %v10416_v31, %v10274_v20  ;;  %v3336_v44 = vsel %vm10239_vm6, %v3331_v53, %v3335_v1  ;;  %v3341_v21 = vrot.slane %v3340_v12, 4 }
 0x346   : > { %3161 = vst [vmem:[#allocation2 + $0x88] sm:$0xf] %v2947_v58  ;;  %3164 = vst [vmem:[#allocation2 + $0x8c] sm:$0x1] %v3163_v23  ;;  %v2569_v30 = vadd.f32 %v10274_v20, %v10422_v52  ;;  %v2572_v57 = vadd.f32 %v10424_v37, %v10274_v20  ;;  %v2570_v0 = vadd.f32 %v10274_v20, %v10432_v39  ;;  %v3345_v40 = vrot.slane %v3343_v62, 5 }
 0x347   : > { %v2603_v45 = vmax.f32 %v2571_v33, 0.0  ;;  %v3348_v59 = vshrl.u32 %v10514_v18, 16  ;;  %v3351_v36 = vshll.u32 %v10514_v18, 16  ;;  %v3357_v4 = vshll.u32 %v10526_v9, 16  ;;  %v3179_v48 = vld [vmem:[#allocation2 + $0xa8] sm:$0xf] }
 0x348   : > { %v2601_v31 = vmax.f32 %v2569_v30, 0.0  ;;  %v2604_v5 = vmax.f32 %v2572_v57, 0.0  ;;  %v2602_v38 = vmax.f32 %v2570_v0, 0.0  ;;  %v3346_v52 = vsel %vm10239_vm6, %v3341_v21, %v3345_v40  ;;  %v3172_v50 = vld [vmem:[#allocation2 + $0x9c] sm:$0xf] }
 0x349   : > { %v7785_v41 = vpack.c.bf16 %v2603_v45, %v2603_v45  ;;  %v3350_v37 = vrot.slane %v3348_v59, 4  ;;  %v7558_v39 = vcombine.low %v3336_v44, %v3346_v52  ;;  %v7542_v34 = vcombine.low %v10476_v43, %v10480_v51  ;;  %v3183_v53 = vld [vmem:[#allocation2 + $0xb0] sm:$0x1]  ;;  %v3176_v33 = vld [vmem:[#allocation2 + $0xa4] sm:$0x1] }
 0x34a   : > { %v7783_v26 = vpack.c.bf16 %v2601_v31, %v2601_v31  ;;  %v7786_v56 = vpack.c.bf16 %v2604_v5, %v2604_v5  ;;  %v7784_v16 = vpack.c.bf16 %v2602_v38, %v2602_v38  ;;  %v3353_v1 = vrot.slane %v3351_v36, 5  ;;  %v10546_v31 = vld [vmem:[#allocation2 + $0x3c] sm:$0xf] }
 0x34b   : > { %v2984_v24 = vshrl.u32 %v7785_v41, 16  ;;  %v2987_v28 = vshll.u32 %v7785_v41, 16  ;;  %6294 = vmatprep.mubr.bf16.mxu1 %v7558_v39  ;;  %v10535_v49 = vrot.slane %v3357_v4, 5  ;;  %v3361_v43 = vshrl.u32 %v10526_v9, 16 }
 0x34c   : > { %v2967_v29 = vshrl.u32 %v7783_v26, 16  ;;  %v2970_v27 = vshll.u32 %v7783_v26, 16  ;;  %v2992_v13 = vshrl.u32 %v7786_v56, 16  ;;  %v2995_v2 = vshll.u32 %v7786_v56, 16  ;;  %6295 = vmatmul.mubr.bf16.gmra.mrb[12].mxu1 %v7542_v34 }
 0x34d   : > { %v2986_v7 = vrot.slane %v2984_v24, 7  ;;  %v2975_v15 = vshrl.u32 %v7784_v16, 16  ;;  %v3354_v19 = vor.u32 %v3353_v1, %v3350_v37  ;;  %v2978_v3 = vshll.u32 %v7784_v16, 16 }
 0x34e   : > { %v2969_v8 = vrot.slane %v2967_v29, 7  ;;  %v2994_v25 = vrot.slane %v2992_v13, 7  ;;  %v3367_v60 = vshll.u32 %v3236_v42, 16  ;;  %v3363_v59 = vrot.slane %v3361_v43, 4  ;;  %v10566_v29 = vld [vmem:[#allocation2 + $0x40] sm:$0xf] }
 0x34f   : > { %v2989_v51 = vor.u32 %v2987_v28, %v2986_v7  ;;  %v2977_v11 = vrot.slane %v2975_v15, 7  ;;  %v3355_v10 = vrot.slane %v3354_v19, 4  ;;  %v2990_v58 = vrot.slane %v2986_v7, 4 }
 0x350   : > { %v2972_v23 = vor.u32 %v2970_v27, %v2969_v8  ;;  %v2997_v12 = vor.u32 %v2995_v2, %v2994_v25  ;;  %v2999_v62 = vrot.slane %v2994_v25, 4  ;;  %v2973_v30 = vrot.slane %v2969_v8, 4  ;;  %v3193_v8 = vld [vmem:[#allocation2 + $0xc0] sm:$0xf] }
 0x351   : > { %v3180_v44 = vsel %vm10289_vm15, %v2989_v51, %v3179_v48  ;;  %v2980_v57 = vor.u32 %v2978_v3, %v2977_v11  ;;  %v2982_v0 = vrot.slane %v2977_v11, 4  ;;  %v3360_v36 = vsel %vm10239_vm6, %v3355_v10, %v10535_v49  ;;  %v3186_v10 = vld [vmem:[#allocation2 + $0xb4] sm:$0xf] }
 0x352   : > { %3181 = vst [vmem:[#allocation2 + $0xa8] sm:$0xf] %v3180_v44  ;;  %v3173_v21 = vsel %vm10289_vm15, %v2972_v23, %v3172_v50  ;;  %v2998_v40 = vsel %vm10296_vm0, %v2990_v58, %v2997_v12  ;;  %v3184_v45 = vsel %vm10302_vm1, %v2999_v62, %v3183_v53  ;;  %v2575_v52 = vadd.f32 %v10447_v54, %v10274_v20  ;;  %v3237_v53 = vld [vmem:[#allocation2 + $0x44] sm:$0x1] }
 0x353   : > { %3174 = vst [vmem:[#allocation2 + $0x9c] sm:$0xf] %v3173_v21  ;;  %3182 = vst [vmem:[#allocation2 + $0xac] sm:$0xf] %v2998_v40  ;;  %v2981_v5 = vsel %vm10296_vm0, %v2973_v30, %v2980_v57  ;;  %v3177_v38 = vsel %vm10302_vm1, %v2982_v0, %v3176_v33  ;;  %v3364_v41 = vor.u32 %v3363_v59, %v10535_v49  ;;  %v3369_v26 = vrot.slane %v3367_v60, 5 }
 0x354   : > { %3185 = vst [vmem:[#allocation2 + $0xb0] sm:$0x1] %v3184_v45  ;;  %3175 = vst [vmem:[#allocation2 + $0xa0] sm:$0xf] %v2981_v5  ;;  %v2573_v37 = vadd.f32 %v10274_v20, %v10454_v63  ;;  %v2576_v4 = vadd.f32 %v10464_v61, %v10274_v20  ;;  %v2574_v39 = vadd.f32 %v10274_v20, %v10466_v22  ;;  %v2607_v56 = vmax.f32 %v2575_v52, 0.0 }
 0x355   : > { %3178 = vst [vmem:[#allocation2 + $0xa4] sm:$0x1] %v3177_v38  ;;  %v3372_v16 = vshrl.u32 %v10546_v31, 16  ;;  %v3375_v24 = vshll.u32 %v10546_v31, 16  ;;  %v3365_v54 = vrot.slane %v3364_v41, 4  ;;  %v7543_v63 = vcombine.low %v10514_v18, %v10526_v9 }
 0x356   : > { %v2605_v28 = vmax.f32 %v2573_v37, 0.0  ;;  %v2608_v34 = vmax.f32 %v2576_v4, 0.0  ;;  %v2606_v1 = vmax.f32 %v2574_v39, 0.0  ;;  %v7789_v27 = vpack.c.bf16 %v2607_v56, %v2607_v56  ;;  %v3197_v33 = vld [vmem:[#allocation2 + $0xc8] sm:$0x1] }
 0x357   : > { %v3374_v61 = vrot.slane %v3372_v16, 4  ;;  %v3377_v13 = vrot.slane %v3375_v24, 5  ;;  %v3370_v20 = vsel %vm10239_vm6, %v3365_v54, %v3369_v26  ;;  %v3381_v15 = vshll.u32 %v10566_v29, 16  ;;  %v3190_v40 = vld [vmem:[#allocation2 + $0xbc] sm:$0x1] }
 0x358   : > { %v7787_v22 = vpack.c.bf16 %v2605_v28, %v2605_v28  ;;  %v7790_v42 = vpack.c.bf16 %v2608_v34, %v2608_v34  ;;  %v7788_v49 = vpack.c.bf16 %v2606_v1, %v2606_v1  ;;  %v7559_v7 = vcombine.low %v3360_v36, %v3370_v20  ;;  %v10576_v52 = vld [vmem:[#allocation2 + $0x48] sm:$0xf]  ;;  %v10578_v41 = vld [vmem:[#allocation2 + $0x4c] sm:$0xf]  ;;  %v3238_v56 = vld [vmem:[#allocation2 + $0x50] sm:$0x1] }
 0x359   : > { %v3018_v48 = vshrl.u32 %v7789_v27, 16  ;;  %v3378_v2 = vor.u32 %v3377_v13, %v3374_v61  ;;  %v3021_v19 = vshll.u32 %v7789_v27, 16  ;;  %v3385_v23 = vshrl.u32 %v10566_v29, 16  ;;  %v10586_v16 = vld [vmem:[#allocation2 + $0x54] sm:$0xf] }
 0x35a   : > { %v3001_v50 = vshrl.u32 %v7787_v22, 16  ;;  %v3004_v25 = vshll.u32 %v7787_v22, 16  ;;  %v3026_v3 = vshrl.u32 %v7790_v42, 16  ;;  %6302 = vmatprep.mubr.bf16.mxu1 %v7559_v7  ;;  %v3029_v9 = vshll.u32 %v7790_v42, 16  ;;  %v10601_v13 = vld [vmem:[#allocation2 + $0x58] sm:$0xf] }
 0x35b   : > { %v3020_v18 = vrot.slane %v3018_v48, 7  ;;  %v3009_v43 = vshrl.u32 %v7788_v49, 16  ;;  %v3012_v51 = vshll.u32 %v7788_v49, 16  ;;  %6303 = vmatmul.mubr.bf16.gmra.mrb[16].mxu1 %v7543_v63  ;;  %v3379_v58 = vrot.slane %v3378_v2, 4  ;;  %v3239_v48 = vld [vmem:[#allocation2 + $0x5c] sm:$0x1] }
 0x35c   : > { %v3003_v11 = vrot.slane %v3001_v50, 7  ;;  %v3028_v60 = vrot.slane %v3026_v3, 7  ;;  %v3383_v30 = vrot.slane %v3381_v15, 5  ;;  %v3391_v45 = vshll.u32 %v3237_v53, 16 }
 0x35d   : > { %v3023_v12 = vor.u32 %v3021_v19, %v3020_v18  ;;  %v3024_v62 = vrot.slane %v3020_v18, 4  ;;  %v3011_v44 = vrot.slane %v3009_v43, 7  ;;  %v3387_v26 = vrot.slane %v3385_v23, 4 }
 0x35e   : > { %v3006_v57 = vor.u32 %v3004_v25, %v3003_v11  ;;  %v3031_v0 = vor.u32 %v3029_v9, %v3028_v60  ;;  %v3033_v21 = vrot.slane %v3028_v60, 4  ;;  %v3007_v5 = vrot.slane %v3003_v11, 4  ;;  %v10611_v9 = vld [vmem:[#allocation2 + $0x60] sm:$0xf] }
 0x35f   : > { %v3194_v59 = vsel %vm10289_vm15, %v3023_v12, %v3193_v8  ;;  %v3014_v38 = vor.u32 %v3012_v51, %v3011_v44  ;;  %v3016_v36 = vrot.slane %v3011_v44, 4  ;;  %v3384_v54 = vsel %vm10239_vm6, %v3379_v58, %v3383_v30 }
 0x360   : > { %3195 = vst [vmem:[#allocation2 + $0xc0] sm:$0xf] %v3194_v59  ;;  %v3187_v37 = vsel %vm10289_vm15, %v3006_v57, %v3186_v10  ;;  %v3032_v4 = vsel %vm10296_vm0, %v3024_v62, %v3031_v0  ;;  %v3198_v39 = vsel %vm10302_vm1, %v3033_v21, %v3197_v33  ;;  %v3388_v28 = vor.u32 %v3387_v26, %v3383_v30  ;;  %v10613_v10 = vld [vmem:[#allocation2 + $0x64] sm:$0xf] }
 0x361   : > { %3188 = vst [vmem:[#allocation2 + $0xb4] sm:$0xf] %v3187_v37  ;;  %3196 = vst [vmem:[#allocation2 + $0xc4] sm:$0xf] %v3032_v4  ;;  %v3015_v24 = vsel %vm10296_vm0, %v3007_v5, %v3014_v38  ;;  %v3191_v32 = vsel %vm10302_vm1, %v3016_v36, %v3190_v40  ;;  %v3396_v34 = vshrl.u32 %v10576_v52, 16  ;;  %v3399_v1 = vshll.u32 %v10576_v52, 16 }
 0x362   : > { %3199 = vst [vmem:[#allocation2 + $0xc8] sm:$0x1] %v3198_v39  ;;  %3189 = vst [vmem:[#allocation2 + $0xb8] sm:$0xf] %v3015_v24  ;;  %v3405_v27 = vshll.u32 %v10578_v41, 16  ;;  %v3393_v63 = vrot.slane %v3391_v45, 5  ;;  %v7544_v2 = vcombine.low %v10546_v31, %v10566_v29  ;;  %v7545_v24 = vcombine.low %v10576_v52, %v10578_v41 }
 0x363   : > { %3192 = vst [vmem:[#allocation2 + $0xbc] sm:$0x1] %v3191_v32  ;;  %v3409_v14 = vshrl.u32 %v10578_v41, 16  ;;  %v3415_v61 = vshll.u32 %v3238_v56, 16  ;;  %v3420_v20 = vshrl.u32 %v10586_v16, 16  ;;  %v3389_v22 = vrot.slane %v3388_v28, 4 }
 0x364   : > { %v3398_v42 = vrot.slane %v3396_v34, 4  ;;  %v3401_v49 = vrot.slane %v3399_v1, 5  ;;  %v3407_v7 = vrot.slane %v3405_v27, 5  ;;  %v3423_v8 = vshll.u32 %v10586_v16, 16  ;;  %v3240_v45 = vld [vmem:[#allocation2 + $0x68] sm:$0x1] }
 0x365   : > { %v3411_v15 = vrot.slane %v3409_v14, 4  ;;  %v3422_v19 = vrot.slane %v3420_v20, 4  ;;  %v3394_v50 = vsel %vm10239_vm6, %v3389_v22, %v3393_v63  ;;  %v3429_v3 = vshll.u32 %v10601_v13, 16  ;;  %v10623_v39 = vld [vmem:[#allocation2 + $0x70] sm:$0xf] }
 0x366   : > { %v3402_v25 = vor.u32 %v3401_v49, %v3398_v42  ;;  %v3433_v18 = vshrl.u32 %v10601_v13, 16  ;;  %v7560_v43 = vcombine.low %v3384_v54, %v3394_v50  ;;  %v3425_v53 = vrot.slane %v3423_v8, 5  ;;  %v10625_v56 = vld [vmem:[#allocation2 + $0x6c] sm:$0xf]  ;;  %v10637_v22 = vld [vmem:[#allocation2 + $0x7c] sm:$0xf] }
 0x367   : > { %v3412_v51 = vor.u32 %v3411_v15, %v3407_v7  ;;  %v3439_v11 = vshll.u32 %v3239_v48, 16  ;;  %v3417_v29 = vrot.slane %v3415_v61, 5  ;;  %v3431_v60 = vrot.slane %v3429_v3, 5  ;;  %v10641_v15 = vld [vmem:[#allocation2 + $0x78] sm:$0xf] }
 0x368   : > { %v3403_v31 = vrot.slane %v3402_v25, 4  ;;  %v3435_v58 = vrot.slane %v3433_v18, 4  ;;  %6310 = vmatprep.mubr.bf16.mxu1 %v7560_v43  ;;  %v3426_v12 = vor.u32 %v3425_v53, %v3422_v19  ;;  %v3444_v33 = vshrl.u32 %v10611_v9, 16 }
 0x369   : > { %v3413_v23 = vrot.slane %v3412_v51, 4  ;;  %v3441_v62 = vrot.slane %v3439_v11, 5  ;;  %6311 = vmatmul.mubr.bf16.gmra.mrb[20].mxu1 %v7544_v2  ;;  %v3447_v57 = vshll.u32 %v10611_v9, 16  ;;  %v3453_v0 = vshll.u32 %v10613_v10, 16 }
 0x36a   : > { %v3408_v44 = vsel %vm10239_vm6, %v3403_v31, %v3407_v7  ;;  %v3436_v30 = vor.u32 %v3435_v58, %v3431_v60  ;;  %v3427_v40 = vrot.slane %v3426_v12, 4  ;;  %v3446_v59 = vrot.slane %v3444_v33, 4  ;;  %v10639_v7 = vld [vmem:[#allocation2 + $0x74] sm:$0x1] }
 0x36b   : > { %v3418_v21 = vsel %vm10239_vm6, %v3413_v23, %v3417_v29  ;;  %v3457_v5 = vshrl.u32 %v10613_v10, 16  ;;  %v3449_v37 = vrot.slane %v3447_v57, 5  ;;  %v3455_v4 = vrot.slane %v3453_v0, 5  ;;  %v10654_v23 = vld [vmem:[#allocation2 + $0x88] sm:$0xf] }
 0x36c   : > { %v7561_v38 = vcombine.low %v3408_v44, %v3418_v21  ;;  %v3437_v36 = vrot.slane %v3436_v30, 4  ;;  %v3432_v54 = vsel %vm10239_vm6, %v3427_v40, %v3431_v60  ;;  %v3463_v34 = vshll.u32 %v3240_v45, 16  ;;  %v10658_v44 = vld [vmem:[#allocation2 + $0x84] sm:$0xf] }
 0x36d   : > { %v3459_v26 = vrot.slane %v3457_v5, 4  ;;  %v3477_v1 = vshll.u32 %v10623_v39, 16  ;;  %v3450_v27 = vor.u32 %v3449_v37, %v3446_v59  ;;  %v3468_v47 = vshrl.u32 %v10625_v56, 16 }
 0x36e   : > { %6318 = vmatprep.mubr.bf16.mxu1 %v7561_v38  ;;  %v3442_v32 = vsel %vm10239_vm6, %v3437_v36, %v3441_v62  ;;  %v3471_v63 = vshll.u32 %v10625_v56, 16  ;;  %v3481_v14 = vshrl.u32 %v10623_v39, 16  ;;  %v3465_v49 = vrot.slane %v3463_v34, 5 }
 0x36f   : > { %v3460_v28 = vor.u32 %v3459_v26, %v3455_v4  ;;  %v7562_v61 = vcombine.low %v3432_v54, %v3442_v32  ;;  %v3479_v41 = vrot.slane %v3477_v1, 5  ;;  %v3451_v42 = vrot.slane %v3450_v27, 4  ;;  %v10671_v32 = vld [vmem:[#allocation2 + $0x94] sm:$0xf]  ;;  %v10675_v1 = vld [vmem:[#allocation2 + $0x90] sm:$0xf] }
 0x370   : > { %v3483_v20 = vrot.slane %v3481_v14, 4  ;;  %v3470_v48 = vrot.slane %v3468_v47, 4  ;;  %v3473_v2 = vrot.slane %v3471_v63, 5  ;;  %v3501_v50 = vshll.u32 %v10637_v22, 16 }
 0x371   : > { %6319 = vmatmul.mubr.bf16.gmra.mrb[24].mxu1 %v7545_v24  ;;  %v3461_v52 = vrot.slane %v3460_v28, 4  ;;  %v3505_v25 = vshrl.u32 %v10637_v22, 16  ;;  %v7546_v3 = vcombine.low %v10586_v16, %v10601_v13  ;;  %v3487_v18 = vshll.u32 %v10639_v7, 16  ;;  %v10656_v13 = vld [vmem:[#allocation2 + $0x80] sm:$0x1] }
 0x372   : > { %6326 = vmatprep.mubr.bf16.mxu1 %v7562_v61  ;;  %v3484_v8 = vor.u32 %v3483_v20, %v3479_v41  ;;  %v3456_v43 = vsel %vm10239_vm6, %v3451_v42, %v3455_v4  ;;  %v3474_v51 = vor.u32 %v3473_v2, %v3470_v48  ;;  %v3492_v53 = vshrl.u32 %v10641_v15, 16 }
 0x373   : > { %v3466_v19 = vsel %vm10239_vm6, %v3461_v52, %v3465_v49  ;;  %v3495_v11 = vshll.u32 %v10641_v15, 16  ;;  %v3503_v60 = vrot.slane %v3501_v50, 5  ;;  %v3507_v58 = vrot.slane %v3505_v25, 4  ;;  %v10688_v50 = vld [vmem:[#allocation2 + $0xa0] sm:$0xf]  ;;  %v10690_v25 = vpop.f32.mrb[0].mxu1 }
 0x374   : > { %v7563_v31 = vcombine.low %v3456_v43, %v3466_v19  ;;  %v3485_v29 = vrot.slane %v3484_v8, 4  ;;  %v3475_v12 = vrot.slane %v3474_v51, 4  ;;  %v3489_v16 = vrot.slane %v3487_v18, 5  ;;  %v10692_v18 = vld [vmem:[#allocation2 + $0x98] sm:$0x1] }
 0x375   : > { %v3494_v62 = vrot.slane %v3492_v53, 4  ;;  %v3497_v33 = vrot.slane %v3495_v11, 5  ;;  %v3508_v57 = vor.u32 %v3507_v58, %v3503_v60  ;;  %v3525_v0 = vshll.u32 %v10654_v23, 16  ;;  %v10694_v53 = vld [vmem:[#allocation2 + $0x9c] sm:$0xf] }
 0x376   : > { %v3490_v30 = vsel %vm10239_vm6, %v3485_v29, %v3489_v16  ;;  %v3529_v21 = vshrl.u32 %v10654_v23, 16  ;;  %v7547_v40 = vcombine.low %v10611_v9, %v10613_v10  ;;  %v3511_v45 = vshll.u32 %v10656_v13, 16  ;;  %v10673_v10 = vld [vmem:[#allocation2 + $0x8c] sm:$0x1]  ;;  %v3635_v58 = vld [vmem:[#allocation2] sm:$0xe] }
 0x377   : > { %v3480_v59 = vsel %vm10239_vm6, %v3475_v12, %v3479_v41  ;;  %v3498_v5 = vor.u32 %v3497_v33, %v3494_v62  ;;  %v3516_v38 = vshrl.u32 %v10658_v44, 16  ;;  %v3519_v36 = vshll.u32 %v10658_v44, 16 }
 0x378   : > { %v7564_v37 = vcombine.low %v3480_v59, %v3490_v30  ;;  %v3509_v4 = vrot.slane %v3508_v57, 4  ;;  %v3527_v26 = vrot.slane %v3525_v0, 5  ;;  %v3531_v24 = vrot.slane %v3529_v21, 4 }
 0x379   : > { %6327 = vmatmul.mubr.bf16.gmra.mrb[28].mxu1 %v7546_v3  ;;  %v3499_v54 = vrot.slane %v3498_v5, 4  ;;  %v3513_v9 = vrot.slane %v3511_v45, 5  ;;  %v3518_v28 = vrot.slane %v3516_v38, 4  ;;  %v3521_v34 = vrot.slane %v3519_v36, 5  ;;  %v10707_v5 = vpop.f32.mrb[1].mxu1 }
 0x37a   : > { %6334 = vmatprep.mubr.bf16.mxu1 %v7563_v31  ;;  %v3532_v47 = vor.u32 %v3531_v24, %v3527_v26  ;;  %v3549_v63 = vshll.u32 %v10671_v32, 16  ;;  %v3553_v14 = vshrl.u32 %v10671_v32, 16  ;;  %v7548_v61 = vcombine.low %v10625_v56, %v10623_v39  ;;  %v10709_v38 = vld [vmem:[#allocation2 + $0xac] sm:$0xf] }
 0x37b   : > { %v3514_v27 = vsel %vm10239_vm6, %v3509_v4, %v3513_v9  ;;  %v3535_v52 = vshll.u32 %v10673_v10, 16  ;;  %v3504_v41 = vsel %vm10239_vm6, %v3499_v54, %v3503_v60  ;;  %v3522_v20 = vor.u32 %v3521_v34, %v3518_v28  ;;  %v10725_v34 = vld [vmem:[#allocation2 + $0xa8] sm:$0xf] }
 0x37c   : > { %v3540_v42 = vshrl.u32 %v10675_v1, 16  ;;  %v3543_v49 = vshll.u32 %v10675_v1, 16  ;;  %v7565_v48 = vcombine.low %v3504_v41, %v3514_v27  ;;  %v3533_v2 = vrot.slane %v3532_v47, 4 }
 0x37d   : > { %v3551_v19 = vrot.slane %v3549_v63, 5  ;;  %v3555_v8 = vrot.slane %v3553_v14, 4  ;;  %v3523_v56 = vrot.slane %v3522_v20, 4  ;;  %v3537_v3 = vrot.slane %v3535_v52, 5 }
 0x37e   : > { %v3542_v43 = vrot.slane %v3540_v42, 4  ;;  %v3545_v51 = vrot.slane %v3543_v49, 5  ;;  %v3573_v29 = vshll.u32 %v10688_v50, 16  ;;  %v3577_v60 = vshrl.u32 %v10688_v50, 16 }
 0x37f   : > { %v3538_v11 = vsel %vm10239_vm6, %v3533_v2, %v3537_v3  ;;  %v3556_v31 = vor.u32 %v3555_v8, %v3551_v19  ;;  %v7549_v12 = vcombine.low %v10641_v15, %v10637_v22  ;;  %v3559_v16 = vshll.u32 %v10692_v18, 16  ;;  %v10738_v8 = vld [vmem:[#allocation2 + $0xb8] sm:$0xf]  ;;  %v10740_v3 = vld [vmem:[#allocation2 + $0xb0] sm:$0x1] }
 0x380   : > { %v3528_v62 = vsel %vm10239_vm6, %v3523_v56, %v3527_v26  ;;  %v3546_v33 = vor.u32 %v3545_v51, %v3542_v43  ;;  %v3564_v30 = vshrl.u32 %v10694_v53, 16  ;;  %v3567_v57 = vshll.u32 %v10694_v53, 16  ;;  %v10719_v26 = vld [vmem:[#allocation2 + $0xa4] sm:$0x1] }
 0x381   : > { %6335 = vmatmul.mubr.bf16.gmra.mrb[32].mxu1 %v7547_v40  ;;  %v7566_v0 = vcombine.low %v3528_v62, %v3538_v11  ;;  %v7491_v21 = vrot.slane %v3635_v58, 9  ;;  %v3557_v40 = vrot.slane %v3556_v31, 4  ;;  %v3575_v45 = vrot.slane %v3573_v29, 5 }
 0x382   : > { %6342 = vmatprep.mubr.bf16.mxu1 %v7564_v37  ;;  %v3579_v59 = vrot.slane %v3577_v60, 4  ;;  %v3561_v15 = vrot.slane %v3559_v16, 5  ;;  %v10717_v37 = vpop.f32.mrb[2].mxu1  ;;  %v3547_v4 = vrot.slane %v3546_v33, 4  ;;  %v3566_v24 = vrot.slane %v3564_v30, 4 }
 0x383   : > { %v10715_v36 = vsel %vm10251_vm9, %v7491_v21, %v3704_v17  ;;  %v3569_v54 = vrot.slane %v3567_v57, 5  ;;  %v10723_v28 = vpop.f32.mrb[3].mxu1  ;;  %v3597_v17 = vshll.u32 %v10709_v38, 16  ;;  %v3601_v47 = vshrl.u32 %v10709_v38, 16 }
 0x384   : > { %v7571_v9 = vcombine.low %v10715_v36, %v10257_v6  ;;  %v3562_v35 = vsel %vm10239_vm6, %v3557_v40, %v3561_v15  ;;  %v3580_v27 = vor.u32 %v3579_v59, %v3575_v45  ;;  %v7550_v63 = vcombine.low %v10658_v44, %v10654_v23  ;;  %v9282_v6 = vld [vmem:[%s12583_s3 + $0x108] sm:$0xff]  }
 0x385   : > { %v3583_v14 = vshll.u32 %v10719_v26, 16  ;;  %v3570_v52 = vor.u32 %v3569_v54, %v3566_v24  ;;  %v3588_v41 = vshrl.u32 %v10725_v34, 16  ;;  %v3591_v20 = vshll.u32 %v10725_v34, 16  ;;  %v10755_v24 = vld [vmem:[#allocation2 + $0xbc] sm:$0x1] }
 0x386   : > { %v3581_v49 = vrot.slane %v3580_v27, 4  ;;  %v3603_v2 = vrot.slane %v3601_v47, 4  ;;  %v3621_v29 = vshll.u32 %v10738_v8, 16  ;;  %v3625_v60 = vshrl.u32 %v10738_v8, 16 }
 0x387   : > { %v3571_v56 = vrot.slane %v3570_v52, 4  ;;  %v3585_v44 = vrot.slane %v3583_v14, 5  ;;  %v3590_v43 = vrot.slane %v3588_v41, 4  ;;  %v3593_v51 = vrot.slane %v3591_v20, 5  ;;  %v10766_v14 = vld [vmem:[#allocation2 + $0x10] sm:$0xf] }
 0x388   : > { %v7551_v58 = vcombine.low %v10675_v1, %v10671_v32  ;;  %v3623_v21 = vrot.slane %v3621_v29, 5  ;;  %v3627_v40 = vrot.slane %v3625_v60, 4  ;;  %v7552_v27 = vcombine.low %v10694_v53, %v10688_v50 }
 0x389   : > { %6343 = vmatmul.mubr.bf16.gmra.mrb[36].mxu1 %v7548_v61  ;;  %v3552_v61 = vsel %vm10239_vm6, %v3547_v4, %v3551_v19  ;;  %v10742_v19 = vld [vmem:[#allocation2 + $0xb4] sm:$0xf]  ;;  %v3586_v11 = vsel %vm10239_vm6, %v3581_v49, %v3585_v44  ;;  %v3576_v16 = vsel %vm10239_vm6, %v3571_v56, %v3575_v45  ;;  %v3594_v62 = vor.u32 %v3593_v51, %v3590_v43  ;;  %v3644_v43 = vld [vmem:[#allocation2 + $0x6c] sm:$0xe] }
 0x38a   : > { %6350 = vmatprep.mubr.bf16.mxu1 %v7565_v48  ;;  %v7567_v42 = vcombine.low %v3552_v61, %v3562_v35  ;;  %v3599_v48 = vrot.slane %v3597_v17, 5  ;;  %v3612_v33 = vshrl.u32 %v10742_v19, 16  ;;  %v3615_v30 = vshll.u32 %v10742_v19, 16  ;;  %v10759_v35 = vld [vmem:[#allocation2 + $0xc] sm:$0xf] }
 0x38b   : > { %v7568_v57 = vcombine.low %v3576_v16, %v3586_v11  ;;  %v3595_v59 = vrot.slane %v3594_v62, 4  ;;  %v3628_v54 = vor.u32 %v3627_v40, %v3623_v21  ;;  %v3863_v41 = vshrl.u32 %v10759_v35, 16  ;;  %v10786_v40 = vld [vmem:[#allocation2 + $0x1c] sm:$0xf] }
 0x38c   : > { %v3604_v31 = vor.u32 %v3603_v2, %v3599_v48  ;;  %v3614_v4 = vrot.slane %v3612_v33, 4  ;;  %v3617_v1 = vrot.slane %v3615_v30, 5  ;;  %v3866_v20 = vshll.u32 %v10759_v35, 16 }
 0x38d   : > { %v3600_v17 = vsel %vm10239_vm6, %v3595_v59, %v3599_v48  ;;  %v3629_v52 = vrot.slane %v3628_v54, 4  ;;  %v3876_v53 = vshrl.u32 %v10766_v14, 16  ;;  %v3865_v56 = vrot.slane %v3863_v41, 4 }
 0x38e   : > { %v3618_v47 = vor.u32 %v3617_v1, %v3614_v4  ;;  %v3868_v44 = vrot.slane %v3866_v20, 5  ;;  %v3767_v29 = vrot.slane %v10623_v39, 5  ;;  %v7553_v60 = vcombine.low %v10725_v34, %v10709_v38 }
 0x38f   : > { %v3878_v11 = vrot.slane %v3876_v53, 4  ;;  %v7500_v62 = vrot.slane %v3644_v43, 9  ;;  %v3770_v30 = vrot.slane %v10639_v7, 5  ;;  %v3774_v59 = vrot.slane %v10637_v22, 5  ;;  %v9344_v43 = vld [vmem:[#allocation2 + $0x14] sm:$0x1] }
 0x390   : > { %v3619_v49 = vrot.slane %v3618_v47, 4  ;;  %v3769_v33 = vrot.slane %v3767_v29, 4  ;;  %v7587_v54 = vcombine.low %v10759_v35, %v10766_v14  ;;  %v3781_v35 = vrot.slane %v10654_v23, 5 }
 0x391   : > { %6351 = vmatmul.mubr.bf16.gmra.mrb[40].mxu1 %v7549_v12  ;;  %v3607_v12 = vshll.u32 %v10740_v3, 16  ;;  %v3776_v22 = vrot.slane %v3774_v59, 4  ;;  %v3809_v36 = vrot.slane %v10738_v8, 5 }
 0x392   : > { %6358 = vmatprep.mubr.bf16.mxu1 %v7566_v0  ;;  %v3605_v0 = vrot.slane %v3604_v31, 4  ;;  %v10776_v31 = vld [vmem:[#allocation2 + $0x18] sm:$0xf]  ;;  %v10798_v7 = vsel %vm10251_vm9, %v3769_v33, %v3770_v30 }
 0x393   : > { %v3609_v15 = vrot.slane %v3607_v12, 5  ;;  %v7554_v12 = vcombine.low %v10742_v19, %v10738_v8  ;;  %v3887_v39 = vshrl.u32 %v10776_v31, 16  ;;  %v3890_v34 = vshll.u32 %v10776_v31, 16 }
 0x394   : > { %v10794_v19 = vsel %vm10251_vm9, %v7500_v62, %v3767_v29  ;;  %v7588_v53 = vcombine.low %v10776_v31, %v10786_v40  ;;  %v10838_v29 = vld [vmem:[#allocation2 + $0x28] sm:$0xf]  ;;  %v9349_v62 = vld [vmem:[#allocation2 + $0x34] sm:$0xf] }
 0x395   : > { %v3610_v45 = vsel %vm10239_vm6, %v3605_v0, %v3609_v15  ;;  %v3869_v0 = vor.u32 %v3868_v44, %v3865_v56  ;;  %v10802_v15 = vadd.f32 %v10707_v5, %v10690_v25  ;;  %v3646_v25 = vld [vmem:[#allocation2 + $0x84] sm:$0xe]  ;;  %v10827_v20 = vrot.slane %v3887_v39, 4  ;;  %v3647_v56 = vld [vmem:[#allocation2 + $0x90] sm:$0xe] }
 0x396   : > { %v7569_v61 = vcombine.low %v3600_v17, %v3610_v45  ;;  %v3777_v45 = vrot.slane %v10656_v13, 5  ;;  %v9343_v17 = vld [vmem:[#allocation2 + $0x10] sm:$0xf]  ;;  %v7503_v33 = vrot.slane %v3647_v56, 9  ;;  %v9346_v56 = vld [vmem:[#allocation2 + $0x20] sm:$0x1] }
 0x397   : > { %12631 = vst [vmem:[#allocation6_spill] sm:$0xff] %v10802_v15  ;;  %v3711_v47 = vrot.slane %v9343_v17, 5  ;;  %v10814_v5 = vrot.slane %v3869_v0, 4  ;;  %v3924_v0 = vshrl.u32 %v10838_v29, 16 }
 0x398   : > { %v10822_v13 = vsel %vm10251_vm9, %v3776_v22, %v3777_v45  ;;  %v10868_v45 = vld [vmem:[#allocation2 + $0x34] sm:$0xf] }
 0x399   : > { %6359 = vmatmul.mubr.bf16.gmra.mrb[44].mxu1 %v7550_v63  ;;  %v3631_v63 = vshll.u32 %v10755_v24, 16  ;;  %v3713_v44 = vrot.slane %v3711_v47, 4 }
 0x39a   : > { %6366 = vmatprep.mubr.bf16.mxu1 %v7567_v42  ;;  %v3872_v42 = vshll.u32 %v10766_v14, 16 }
 0x39b   : > { %v3633_v2 = vrot.slane %v3631_v63, 5  ;;  %v10812_v63 = vadd.f32 %v10723_v28, %v10717_v37  ;;  %v10829_v37 = vrot.slane %v3890_v34, 5  ;;  %v10831_v28 = vld [vmem:[#allocation2 + $0x24] sm:$0xf]  ;;  %v3637_v34 = vld [vmem:[#allocation2 + $0x18] sm:$0xe] }
 0x39c   : > { %v10774_v51 = vrot.slane %v3872_v42, 5  ;;  %v7589_v39 = vcombine.low %v10831_v28, %v10838_v29  ;;  %v3732_v42 = vrot.slane %v9349_v62, 5 }
 0x39d   : > { %v3634_v48 = vsel %vm10239_vm6, %v3629_v52, %v3633_v2  ;;  %12632 = vst [vmem:[#allocation7_spill] sm:$0xff] %v10812_v63  ;;  %v3783_v2 = vrot.slane %v3781_v35, 4 }
 0x3a1   : > { %6367 = vmatmul.mubr.bf16.gmra.mrb[48].mxu1 %v7551_v58  ;;  %v3624_v58 = vsel %vm10239_vm6, %v3619_v49, %v3623_v21  ;;  %v3879_v21 = vor.u32 %v3878_v11, %v10774_v51  ;;  %v7502_v49 = vrot.slane %v3646_v25, 9  ;;  %v3714_v11 = vrot.slane %v9344_v43, 5 }
 0x3a2   : > { %6374 = vmatprep.mubr.bf16.mxu1 %v7568_v57  ;;  %v7570_v16 = vcombine.low %v3624_v58, %v3634_v48  ;;  %v3645_v57 = vld [vmem:[#allocation2 + $0x78] sm:$0xe]  ;;  %v3784_v48 = vrot.slane %v10673_v10, 5  ;;  %v3911_v58 = vshrl.u32 %v10831_v28, 16 }
 0x3a3   : > { %v7501_v1 = vrot.slane %v3645_v57, 9  ;;  %v10825_v41 = vrot.slane %v3879_v21, 4  ;;  %v10845_v31 = vsel %vm10251_vm9, %v7502_v49, %v3781_v35  ;;  %v10864_v21 = vsel %vm10251_vm9, %v3713_v44, %v3714_v11  ;;  %v3649_v35 = vld [vmem:[#allocation2 + $0xa8] sm:$0xe]  ;;  %v9278_v44 = vld [vmem:[%s12583_s3 + $0x100] sm:$0xff]  }
 0x3a4   : > { %v10849_v10 = vsel %vm10251_vm9, %v3783_v2, %v3784_v48  ;;  %v10881_v49 = vrot.slane %v3911_v58, 4  ;;  %v7493_v48 = vrot.slane %v3637_v34, 9  ;;  %v9280_v11 = vld [vmem:[%s12583_s3 + $0x148] sm:$0xff]   ;;  %v3802_v58 = vrot.slane %v10709_v38, 5  ;;  %v3650_v34 = vld [vmem:[#allocation2 + $0xb4] sm:$0xe] }
 0x3a5   : > { %v10818_v52 = vsel %vm10251_vm9, %v7501_v1, %v3774_v59  ;;  %v3795_v59 = vrot.slane %v10688_v50, 5  ;;  %v9345_v1 = vld [vmem:[#allocation2 + $0x1c] sm:$0xf]  ;;  %v7506_v8 = vrot.slane %v3650_v34, 9 }
 0x3a6   : > { %v3718_v22 = vrot.slane %v9345_v1, 5  ;;  %v7505_v1 = vrot.slane %v3649_v35, 9  ;;  %v3804_v38 = vrot.slane %v3802_v58, 4 }
 0x3a7   : > { %v3797_v25 = vrot.slane %v3795_v59, 4 }
 0x3a8   : > { %v10931_v35 = vsel %vm10251_vm9, %v7505_v1, %v3802_v58  ;;  %v3875_v1 = vsel %vm10239_vm6, %v10814_v5, %v10774_v51  ;;  %v10965_v51 = vld [vmem:[#allocation2 + $0x40] sm:$0xf] }
 0x3a9   : > { %6375 = vmatmul.mubr.bf16.gmra.mrb[52].mxu1 %v7552_v27  ;;  %v3900_v27 = vshrl.u32 %v10786_v40, 16  ;;  %12633 = vst [vmem:[#allocation8_spill] sm:$0xff] %v10965_v51 }
 0x3aa   : > { %6382 = vmatprep.mubr.bf16.mxu1 %v7569_v61  ;;  %v3636_v61 = vld [vmem:[#allocation2 + $0xc] sm:$0xe] }
 0x3ab   : > { %v7492_v23 = vrot.slane %v3636_v61, 9  ;;  %v3798_v61 = vrot.slane %v10719_v26, 5 }
 0x3ad   : > { %v10856_v57 = vsel %vm10251_vm9, %v7492_v23, %v3711_v47  ;;  %v3721_v23 = vrot.slane %v9346_v56, 5 }
 0x3b1   : > { %6383 = vmatmul.mubr.bf16.gmra.mrb[56].mxu1 %v7553_v60  ;;  %v3788_v60 = vrot.slane %v10671_v32, 5  ;;  %v3791_v32 = vrot.slane %v10692_v18, 5  ;;  %v10866_v18 = vld [vmem:[#allocation2 + $0x30] sm:$0xf] }
 0x3b2   : > { %6390 = vmatprep.mubr.bf16.mxu1 %v7570_v16  ;;  %v3914_v16 = vshll.u32 %v10831_v28, 16  ;;  %v3935_v43 = vshrl.u32 %v10866_v18, 16  ;;  %v9292_v28 = vld [vmem:[%s12583_s3 + $0x160] sm:$0xff]  }
 0x3b3   : > { %v3790_v30 = vrot.slane %v3788_v60, 4 }
 0x3b4   : > { %v10883_v2 = vrot.slane %v3914_v16, 5  ;;  %v10901_v16 = vld [vmem:[#allocation2 + $0x14] sm:$0x1]  ;;  %v10944_v50 = vrot.slane %v3935_v43, 4 }
 0x3b5   : > { %v10876_v17 = vsel %vm10251_vm9, %v3790_v30, %v3791_v32  ;;  %v3938_v30 = vshll.u32 %v10866_v18, 16  ;;  %v3948_v32 = vshrl.u32 %v10868_v45, 16 }
 0x3b9   : > { %6391 = vmatmul.mubr.bf16.gmra.mrb[60].mxu1 %v7554_v12  ;;  %v3648_v12 = vld [vmem:[#allocation2 + $0x9c] sm:$0xe] }
 0x3ba   : > { %6431 = vmatprep.mubr.bf16.mxu1 %v7587_v54  ;;  %v10872_v54 = vsel %vm10251_vm9, %v7503_v33, %v3788_v60  ;;  %v7504_v47 = vrot.slane %v3648_v12, 9  ;;  %v10898_v60 = vsel %vm10251_vm9, %v3797_v25, %v3798_v61  ;;  %v7572_v33 = vcombine.low %v10856_v57, %v10864_v21  ;;  %v3638_v25 = vld [vmem:[#allocation2 + $0x24] sm:$0xe]  ;;  %v9347_v61 = vld [vmem:[#allocation2 + $0x28] sm:$0xf] }
 0x3bb   : > { %v10915_v57 = vsel %vm10251_vm9, %v7493_v48, %v3718_v22  ;;  %v7590_v21 = vcombine.low %v10866_v18, %v10868_v45  ;;  %v7494_v58 = vrot.slane %v3638_v25, 9  ;;  %v11064_v18 = vld [vmem:[#allocation2 + $0x3c] sm:$0xe] }
 0x3bc   : > { %v10894_v26 = vsel %vm10251_vm9, %v7504_v47, %v3795_v59  ;;  %v3720_v59 = vrot.slane %v3718_v22, 4  ;;  %v3805_v47 = vrot.slane %v10740_v3, 5  ;;  %v3725_v3 = vrot.slane %v9347_v61, 5  ;;  %v9284_v22 = vld [vmem:[%s12583_s3 + $0x150] sm:$0xff]  }
 0x3bd   : > { %v3812_v61 = vrot.slane %v10755_v24, 5  ;;  %v9286_v24 = vld [vmem:[%s12583_s3 + $0x110] sm:$0xff]  }
 0x3be   : > { %v10935_v48 = vsel %vm10251_vm9, %v3804_v38, %v3805_v47  ;;  %v10942_v12 = vsel %vm10251_vm9, %v3720_v59, %v3721_v23  ;;  %v10956_v38 = vsel %vm10251_vm9, %v7506_v8, %v3809_v36  ;;  %v9288_v59 = vld [vmem:[%s12583_s3 + $0x158] sm:$0xff]   ;;  %v9348_v8 = vld [vmem:[#allocation2 + $0x2c] sm:$0x1] }
 0x3c1   : > { %6432 = vmatmul.mubr.bf16.vlgmr.msra.gmra.mrb[64].mxu1 %v7571_v9  ;;  %v3882_v9 = vshll.u32 %v10901_v16, 16 }
 0x3c2   : > { %6439 = vmatprep.mubr.bf16.mxu1 %v7588_v53  ;;  %8169 = vmatpush3.bf16.msra.mxu1 %v9278_v44  ;;  %v10924_v53 = vld [vmem:[#allocation2 + $0x3c] sm:$0xf]  ;;  %v3811_v44 = vrot.slane %v3809_v36, 4  ;;  %v3893_v36 = vor.u32 %v10829_v37, %v10827_v20  ;;  %v3902_v20 = vrot.slane %v3900_v27, 4  ;;  %v10990_v37 = vld [vmem:[#allocation2 + $0x2c] sm:$0x1] }
 0x3c3   : > { %8170 = vmatprep.subr.bf16.mxu1 %v9280_v11  ;;  %v3884_v11 = vrot.slane %v3882_v9, 5  ;;  %v3959_v34 = vshrl.u32 %v10924_v53, 16  ;;  %v3962_v5 = vshll.u32 %v10924_v53, 16  ;;  %v3727_v9 = vrot.slane %v3725_v3, 4 }
 0x3c4   : > { %v10960_v23 = vsel %vm10251_vm9, %v3811_v44, %v3812_v61  ;;  %v3728_v44 = vrot.slane %v9348_v8, 5  ;;  %v7573_v61 = vcombine.low %v10915_v57, %v10942_v12  ;;  %v9290_v12 = vld [vmem:[%s12583_s3 + $0x118] sm:$0xff]  }
 0x3c5   : > { %v3885_v43 = vsel %vm10239_vm6, %v10825_v41, %v3884_v11  ;;  %v10979_v41 = vrot.slane %v3938_v30, 5  ;;  %v10986_v11 = vsel %vm10251_vm9, %v7494_v58, %v3725_v3  ;;  %v10995_v30 = vrot.slane %v3959_v34, 4 }
 0x3c6   : > { %8171 = vmatpush3.bf16.msra.mxu1 %v9282_v6  ;;  %v10973_v25 = vcombine.low %v3875_v1, %v3885_v43  ;;  %v10975_v6 = vld [vmem:[#allocation2 + $0x20] sm:$0x1]  ;;  %v3639_v1 = vld [vmem:[#allocation2 + $0x30] sm:$0xe]  ;;  %v3894_v43 = vrot.slane %v3893_v36, 4  ;;  %v11002_v58 = vrot.slane %v3962_v5, 5 }
 0x3c7   : > { %8172 = vmatprep.subr.bf16.mxu1 %v9284_v22  ;;  %v3896_v22 = vshll.u32 %v10786_v40, 16  ;;  %v3906_v3 = vshll.u32 %v10975_v6, 16  ;;  %v3920_v34 = vshll.u32 %v10838_v29, 16  ;;  %v7495_v36 = vrot.slane %v3639_v1, 9  ;;  %v11016_v5 = vld [vmem:[#allocation2 + $0x48] sm:$0xf] }
 0x3c8   : > { %v9294_v1 = vld [vmem:[%s12583_s3 + $0x120] sm:$0xff]  }
 0x3c9   : > { %6440 = vmatmul.mubr.bf16.gmra.mrb[68].mxu1 %v7572_v33  ;;  %v3972_v33 = vshrl.u32 %v10965_v51, 16  ;;  %v3898_v57 = vrot.slane %v3896_v22, 5  ;;  %v11020_v22 = vld [vmem:[#allocation2 + $0x4c] sm:$0xf]  ;;  %v3922_v56 = vrot.slane %v3920_v34, 5 }
 0x3ca   : > { %6447 = vmatprep.mubr.bf16.mxu1 %v7589_v39  ;;  %8173 = vmatpush3.bf16.msra.mxu1 %v9286_v24  ;;  %v3917_v39 = vor.u32 %v10883_v2, %v10881_v49  ;;  %v11014_v24 = vsel %vm10251_vm9, %v3727_v9, %v3728_v44  ;;  %v3926_v49 = vrot.slane %v3924_v0, 4  ;;  %v3930_v2 = vshll.u32 %v10990_v37, 16  ;;  %v9350_v9 = vld [vmem:[#allocation2 + $0x38] sm:$0x1]  ;;  %v9296_v0 = vld [vmem:[%s12583_s3 + $0x168] sm:$0xff]  }
 0x3cb   : > { %8174 = vmatprep.subr.bf16.mxu1 %v9288_v59  ;;  %v3899_v8 = vsel %vm10239_vm6, %v3894_v43, %v3898_v57  ;;  %v3903_v59 = vor.u32 %v3902_v20, %v3898_v57  ;;  %v3735_v44 = vrot.slane %v9350_v9, 5  ;;  %v3908_v20 = vrot.slane %v3906_v3, 5  ;;  %v11036_v34 = vld [vmem:[#allocation2 + $0x38] sm:$0x1] }
 0x3cc   : > { %v3918_v47 = vrot.slane %v3917_v39, 4  ;;  %v7574_v57 = vcombine.low %v10986_v11, %v11014_v24  ;;  %v3983_v39 = vshrl.u32 %v11016_v5, 16  ;;  %v3986_v9 = vshll.u32 %v11016_v5, 16 }
 0x3cd   : > { %v3904_v43 = vrot.slane %v3903_v59, 4  ;;  %v3932_v24 = vrot.slane %v3930_v2, 5  ;;  %v3734_v2 = vrot.slane %v3732_v42, 4 }
 0x3ce   : > { %8175 = vmatpush3.bf16.msra.mxu1 %v9290_v12  ;;  %v3923_v62 = vsel %vm10239_vm6, %v3918_v47, %v3922_v56  ;;  %v3927_v12 = vor.u32 %v3926_v49, %v3922_v56  ;;  %v3941_v47 = vor.u32 %v10979_v41, %v10944_v50  ;;  %v3944_v56 = vshll.u32 %v10868_v45, 16 }
 0x3cf   : > { %8176 = vmatprep.subr.bf16.mxu1 %v9292_v28  ;;  %v3909_v11 = vsel %vm10239_vm6, %v3904_v43, %v3908_v20  ;;  %v11042_v28 = vld [vmem:[#allocation2 + $0x54] sm:$0xf]  ;;  %v11054_v49 = vsel %vm10251_vm9, %v7495_v36, %v3732_v42  ;;  %v3950_v50 = vrot.slane %v3948_v32, 4  ;;  %v3954_v41 = vshll.u32 %v11036_v34, 16  ;;  %v11075_v42 = vld [vmem:[#allocation2 + $0x44] sm:$0x1] }
 0x3d0   : > { %v11044_v59 = vcombine.low %v3899_v8, %v3909_v11  ;;  %v3928_v4 = vrot.slane %v3927_v12, 4  ;;  %v9298_v8 = vld [vmem:[%s12583_s3 + $0x128] sm:$0xff]   ;;  %v3946_v43 = vrot.slane %v3944_v56, 5  ;;  %v3985_v20 = vrot.slane %v3983_v39, 4  ;;  %12635 = vst [vmem:[#allocation10_spill] sm:$0xff] %v11075_v42 }
 0x3d1   : > { %6448 = vmatmul.mubr.bf16.gmra.mrb[72].mxu1 %v7573_v61  ;;  %v4007_v12 = vshrl.u32 %v11042_v28, 16  ;;  %v4010_v32 = vshll.u32 %v11042_v28, 16  ;;  %v11077_v61 = vld [vmem:[#allocation2 + $0x60] sm:$0xf]  ;;  %v3988_v39 = vrot.slane %v3986_v9, 5  ;;  %v3956_v56 = vrot.slane %v3954_v41, 5 }
 0x3d2   : > { %6455 = vmatprep.mubr.bf16.mxu1 %v7590_v21  ;;  %8177 = vmatpush3.bf16.msra.mxu1 %v9294_v1  ;;  %v9299_v21 = vld [vmem:[%s12583_s3 + $0x170] sm:$0xff]   ;;  %v3933_v36 = vsel %vm10239_vm6, %v3928_v4, %v3932_v24  ;;  %v3942_v1 = vrot.slane %v3941_v47, 4  ;;  %v3951_v3 = vor.u32 %v3950_v50, %v3946_v43  ;;  %v3965_v4 = vor.u32 %v11002_v58, %v10995_v30  ;;  %v9301_v50 = vld [vmem:[%s12583_s3 + $0x178] sm:$0xff]   ;;  %v9352_v47 = vld [vmem:[#allocation2 + $0x44] sm:$0x1] }
 0x3d3   : > { %8178 = vmatprep.subr.bf16.mxu1 %v9296_v0  ;;  %v11073_v11 = vcombine.low %v3923_v62, %v3933_v36  ;;  %v3968_v24 = vshll.u32 %v10965_v51, 16  ;;  %v9300_v62 = vld [vmem:[%s12583_s3 + $0x130] sm:$0xff]   ;;  %v3974_v36 = vrot.slane %v3972_v33, 4  ;;  %v3978_v9 = vshll.u32 %v11075_v42, 16 }
 0x3d4   : > { %v3947_v0 = vsel %vm10239_vm6, %v3942_v1, %v3946_v43  ;;  %v3952_v30 = vrot.slane %v3951_v3, 4  ;;  %v3966_v58 = vrot.slane %v3965_v4, 4  ;;  %v11096_v43 = vld [vmem:[#allocation2 + $0x40] sm:$0xf]  ;;  %v3742_v27 = vrot.slane %v9352_v47, 5 }
 0x3d5   : > { %12634 = vst [vmem:[#allocation9_spill] sm:$0xff] %v11073_v11  ;;  %v3970_v1 = vrot.slane %v3968_v24, 5  ;;  %v12588_v41 = vrot.slane %v11096_v43, 5  ;;  %v4009_v33 = vrot.slane %v4007_v12, 4  ;;  %v4012_v63 = vrot.slane %v4010_v32, 5 }
 0x3d6   : > { %8179 = vmatpush3.bf16.msra.mxu1 %v9298_v8  ;;  %v3736_v8 = vsel %vm10251_vm9, %v3734_v2, %v3735_v44  ;;  %v3957_v3 = vsel %vm10239_vm6, %v3952_v30, %v3956_v56  ;;  %v12636_v44 = vcombine.low %v10924_v53, %v10965_v51  ;;  %v4031_v2 = vshrl.u32 %v11077_v61, 16  ;;  %v11115_v32 = vld [vmem:[#allocation2 + $0x50] sm:$0x1]  ;;  %v11117_v30 = vld [vmem:[#allocation2 + $0x6c] sm:$0xf] }
 0x3d7   : > { %8180 = vmatprep.subr.bf16.mxu1 %v9299_v21  ;;  %v11099_v21 = vld [vmem:[#allocation2 + $0x58] sm:$0xf]  ;;  %v3971_v4 = vsel %vm10239_vm6, %v3966_v58, %v3970_v1  ;;  %v3975_v24 = vor.u32 %v3974_v36, %v3970_v1  ;;  %v4034_v47 = vshll.u32 %v11077_v61, 16  ;;  %v11113_v12 = vcombine.low %v3947_v0, %v3957_v3  ;;  %12638 = vst [vmem:[#allocation12_spill] sm:$0xff] %v11115_v32  ;;  %v11126_v3 = vld [vmem:[#allocation2 + $0x64] sm:$0xf] }
 0x3d8   : > { %v3989_v56 = vor.u32 %v3988_v39, %v3985_v20  ;;  %v3980_v53 = vrot.slane %v3978_v9, 5  ;;  %v3992_v58 = vshll.u32 %v11020_v22, 16  ;;  %v12639_v1 = vshrl.u32 %v11020_v22, 16  ;;  %v11128_v39 = vld [vmem:[#allocation2 + $0x4c] sm:$0xf] }
 0x3d9   : > { %6456 = vmatmul.mubr.bf16.gmra.mrb[76].mxu1 %v7574_v57  ;;  %v9302_v57 = vld [vmem:[%s12583_s3 + $0x138] sm:$0xff]   ;;  %12637 = vst [vmem:[#allocation11_spill] sm:$0xff] %v11113_v12  ;;  %v3976_v36 = vrot.slane %v3975_v24, 4  ;;  %v3741_v15 = vrot.slane %v12588_v41, 4  ;;  %v4020_v0 = vshrl.u32 %v11099_v21, 16  ;;  %v4055_v41 = vshrl.u32 %v11117_v30, 16 }
 0x3da   : > { %6463 = vmatprep.mubr.bf16.mxu1 %v12636_v44  ;;  %8181 = vmatpush3.bf16.msra.mxu1 %v9300_v62  ;;  %v3998_v44 = vrot.slane %v12639_v1, 4  ;;  %v7575_v62 = vcombine.low %v11054_v49, %v3736_v8  ;;  %v3990_v20 = vrot.slane %v3989_v56, 4  ;;  %v3994_v24 = vrot.slane %v3992_v58, 5  ;;  %v11134_v12 = vld [vmem:[#allocation2 + $0x5c] sm:$0x1] }
 0x3db   : > { %8182 = vmatprep.subr.bf16.mxu1 %v9301_v50  ;;  %v3981_v9 = vsel %vm10239_vm6, %v3976_v36, %v3980_v53  ;;  %v4002_v1 = vshll.u32 %v11115_v32, 16  ;;  %12640 = vst [vmem:[#allocation13_spill] sm:$0xff] %v11134_v12  ;;  %v4033_v49 = vrot.slane %v4031_v2, 4  ;;  %v4036_v8 = vrot.slane %v4034_v47, 5  ;;  %v11139_v56 = vld [vmem:[#allocation2 + $0x70] sm:$0xf] }
 0x3dc   : > { %v11137_v42 = vcombine.low %v3971_v4, %v3981_v9  ;;  %v3995_v50 = vsel %vm10239_vm6, %v3990_v20, %v3994_v24  ;;  %v3999_v11 = vor.u32 %v3998_v44, %v3994_v24  ;;  %v4013_v51 = vor.u32 %v4012_v63, %v4009_v33  ;;  %v11156_v20 = vld [vmem:[#allocation2 + $0x68] sm:$0x1] }
 0x3dd   : > { %v4016_v36 = vshll.u32 %v11099_v21, 16  ;;  %v4044_v53 = vshrl.u32 %v11126_v3, 16  ;;  %v4058_v58 = vshll.u32 %v11117_v30, 16  ;;  %v4022_v2 = vrot.slane %v4020_v0, 4  ;;  %v9303_v0 = vld [vmem:[%s12583_s3 + $0x1c0] sm:$0xff]  }
 0x3de   : > { %8183 = vmatpush3.bf16.msra.mxu1 %v9302_v57  ;;  %12641 = vst [vmem:[#allocation14_spill] sm:$0xff] %v11137_v42  ;;  %v4026_v47 = vshll.u32 %v11134_v12, 16  ;;  %v4000_v57 = vrot.slane %v3999_v11, 4  ;;  %v4004_v4 = vrot.slane %v4002_v1, 5  ;;  %v4014_v9 = vrot.slane %v4013_v51, 4 }
 0x3df   : > { %v4018_v42 = vrot.slane %v4016_v36, 5  ;;  %v12642_v32 = vcombine.low %v11016_v5, %v11020_v22  ;;  %v3743_v63 = vsel %vm10251_vm9, %v3741_v15, %v3742_v27  ;;  %v4057_v33 = vrot.slane %v4055_v41, 4  ;;  %8280 = vmatprep.subr.bf16.mxu1 %v9303_v0  ;;  %v11182_v0 = vld [vmem:[#allocation2 + $0x74] sm:$0x1] }
 0x3e0   : > { %v4068_v44 = vshrl.u32 %v11139_v56, 16  ;;  %v4037_v11 = vor.u32 %v4036_v8, %v4033_v49  ;;  %v4005_v51 = vsel %vm10239_vm6, %v4000_v57, %v4004_v4  ;;  %v4060_v15 = vrot.slane %v4058_v58, 5 }
 0x3e1   : > { %6464 = vmatmul.mubr.bf16.gmra.mrb[80].mxu1 %v7575_v62  ;;  %v4019_v5 = vsel %vm10239_vm6, %v4014_v9, %v4018_v42  ;;  %v4040_v62 = vshll.u32 %v11126_v3, 16  ;;  %v11163_v27 = vcombine.low %v3995_v50, %v4005_v51  ;;  %v4028_v41 = vrot.slane %v4026_v47, 5 }
 0x3e2   : > { %6471 = vmatprep.mubr.bf16.mxu1 %v12642_v32  ;;  %v4023_v32 = vor.u32 %v4022_v2, %v4018_v42  ;;  %v4038_v24 = vrot.slane %v4037_v11, 4  ;;  %v4046_v12 = vrot.slane %v4044_v53, 4  ;;  %v4050_v49 = vshll.u32 %v11156_v20, 16 }
 0x3e3   : > { %v4042_v36 = vrot.slane %v4040_v62, 5  ;;  %v12643_v8 = vrot.slane %v11096_v43, 5  ;;  %v12644_v57 = vrot.slane %v11064_v18, 9  ;;  %v7593_v53 = vcombine.low %v11042_v28, %v11099_v21 }
 0x3e4   : > { %v4024_v1 = vrot.slane %v4023_v32, 4  ;;  %v12645_v4 = vrot.slane %v11128_v39, 5  ;;  %v4052_v18 = vrot.slane %v4050_v49, 5  ;;  %v4061_v51 = vor.u32 %v4060_v15, %v4057_v33 }
 0x3e5   : > { %v3740_v42 = vsel %vm10251_vm9, %v12644_v57, %v12643_v8  ;;  %v4043_v50 = vsel %vm10239_vm6, %v4038_v24, %v4042_v36  ;;  %v4047_v47 = vor.u32 %v4046_v12, %v4042_v36  ;;  %v4064_v32 = vshll.u32 %v11139_v56, 16  ;;  %v9354_v12 = vld [vmem:[#allocation2 + $0x50] sm:$0x1]  ;;  %v9355_v8 = vld [vmem:[#allocation2 + $0x58] sm:$0xf] }
 0x3e6   : > { %v7576_v2 = vcombine.low %v3740_v42, %v3743_v63  ;;  %v4029_v58 = vsel %vm10239_vm6, %v4024_v1, %v4028_v41  ;;  %v3748_v9 = vrot.slane %v12645_v4, 4  ;;  %v3641_v63 = vld [vmem:[#allocation2 + $0x48] sm:$0xe]  ;;  %v4070_v62 = vrot.slane %v4068_v44, 4 }
 0x3e7   : > { %v11180_v43 = vcombine.low %v4019_v5, %v4029_v58  ;;  %v4048_v11 = vrot.slane %v4047_v47, 4  ;;  %v3749_v41 = vrot.slane %v9354_v12, 5  ;;  %v4062_v24 = vrot.slane %v4061_v51, 4 }
 0x3e8   : > { %v4066_v1 = vrot.slane %v4064_v32, 5  ;;  %v4074_v5 = vshll.u32 %v11182_v0, 16  ;;  %v7497_v36 = vrot.slane %v3641_v63, 9  ;;  %v3753_v57 = vrot.slane %v9355_v8, 5  ;;  %v9356_v63 = vld [vmem:[#allocation2 + $0x5c] sm:$0x1] }
 0x3e9   : > { %6472 = vmatmul.mubr.bf16.gmra.mrb[84].mxu1 %v7576_v2  ;;  %v4053_v28 = vsel %vm10239_vm6, %v4048_v11, %v4052_v18  ;;  %v3750_v49 = vsel %vm10251_vm9, %v3748_v9, %v3749_v41  ;;  %v12646_v42 = vmov %v12645_v4  ;;  %v7594_v4 = vcombine.low %v11077_v61, %v11126_v3  ;;  %v3642_v18 = vld [vmem:[#allocation2 + $0x54] sm:$0xe] }
 0x3ea   : > { %6479 = vmatprep.mubr.bf16.mxu1 %v7593_v53  ;;  %v11190_v33 = vcombine.low %v4043_v50, %v4053_v28  ;;  %v4067_v44 = vsel %vm10239_vm6, %v4062_v24, %v4066_v1  ;;  %v4071_v15 = vor.u32 %v4070_v62, %v4066_v1  ;;  %v3747_v2 = vsel %vm10251_vm9, %v7497_v36, %v12646_v42  ;;  %v9357_v62 = vld [vmem:[#allocation2 + $0x64] sm:$0xf]  ;;  %v3643_v1 = vld [vmem:[#allocation2 + $0x60] sm:$0xe]  ;;  %v11216_v42 = vld [vmem:[#allocation2 + $0x78] sm:$0xf] }
 0x3eb   : > { %v7577_v58 = vcombine.low %v3747_v2, %v3750_v49  ;;  %v4076_v53 = vrot.slane %v4074_v5, 5  ;;  %v3755_v9 = vrot.slane %v3753_v57, 4  ;;  %v3756_v11 = vrot.slane %v9356_v63, 5  ;;  %v9358_v5 = vld [vmem:[#allocation2 + $0x68] sm:$0x1] }
 0x3ec   : > { %v4072_v47 = vrot.slane %v4071_v15, 4  ;;  %v7498_v39 = vrot.slane %v3642_v18, 9  ;;  %v3760_v12 = vrot.slane %v9357_v62, 5  ;;  %v7595_v28 = vcombine.low %v11117_v30, %v11139_v56  ;;  %v11220_v2 = vld [vmem:[#allocation2 + $0x88] sm:$0xf] }
 0x3ed   : > { %v3757_v32 = vsel %vm10251_vm9, %v3755_v9, %v3756_v11  ;;  %v3763_v36 = vrot.slane %v9358_v5, 5  ;;  %v7499_v49 = vrot.slane %v3643_v1, 9  ;;  %v11229_v18 = vld [vmem:[#allocation2 + $0x94] sm:$0xf]  ;;  %v4456_v5 = vld [vmem:[#allocation2 + $0x2c] sm:$0x1] }
 0x3ee   : > { %v4077_v50 = vsel %vm10239_vm6, %v4072_v47, %v4076_v53  ;;  %v3754_v61 = vsel %vm10251_vm9, %v7498_v39, %v3753_v57  ;;  %v3762_v24 = vrot.slane %v3760_v12, 4  ;;  %v12647_v53 = vcombine.low %v10794_v19, %v10798_v7  ;;  %v11233_v39 = vld [vmem:[#allocation2 + $0x90] sm:$0xf] }
 0x3ef   : > { %v11202_v51 = vcombine.low %v4067_v44, %v4077_v50  ;;  %v7578_v41 = vcombine.low %v3754_v61, %v3757_v32  ;;  %v11212_v44 = vld [vmem:[#allocation2 + $0x7c] sm:$0xf]  ;;  %v3761_v15 = vsel %vm10251_vm9, %v7499_v49, %v3760_v12  ;;  %v7598_v62 = vcombine.low %v11233_v39, %v11229_v18  ;;  %v4426_v12 = vld [vmem:[#allocation2 + $0x28] sm:$0xf] }
 0x3f0   : > { %v3764_v8 = vsel %vm10251_vm9, %v3762_v24, %v3763_v36  ;;  %v7596_v30 = vcombine.low %v11216_v42, %v11212_v44  ;;  %v12648_v19 = vcombine.low %v10818_v52, %v10822_v13  ;;  %v4856_v36 = vld [vmem:[#allocation2 + $0x24] sm:$0xe]  ;;  %v4928_v49 = vrot.slane %v4426_v12, 5 }
 0x3f1   : > { %6480 = vmatmul.mubr.bf16.gmra.mrb[88].mxu1 %v7577_v58  ;;  %v7579_v57 = vcombine.low %v3761_v15, %v3764_v8  ;;  %v11222_v58 = vld [vmem:[#allocation2 + $0x84] sm:$0xf]  ;;  %v11246_v8 = vld [vmem:[#allocation2 + $0x9c] sm:$0xf]  ;;  %v12649_v13 = vcombine.low %v10845_v31, %v10849_v10  ;;  %v4430_v10 = vld [vmem:[#allocation2 + $0x40] sm:$0xf] }
 0x3f2   : > { %6487 = vmatprep.mubr.bf16.mxu1 %v7594_v4  ;;  %v7597_v47 = vcombine.low %v11222_v58, %v11220_v2 }
 0x3f9   : > { %6488 = vmatmul.mubr.bf16.gmra.mrb[92].mxu1 %v7578_v41  ;;  %v11242_v41 = vld [vmem:[#allocation2 + $0xa0] sm:$0xf] }
 0x3fa   : > { %6495 = vmatprep.mubr.bf16.mxu1 %v7595_v28  ;;  %v7599_v52 = vcombine.low %v11246_v8, %v11242_v41 }
 0x401   : > { %6496 = vmatmul.mubr.bf16.gmra.mrb[96].mxu1 %v7579_v57  ;;  %v7524_v57 = vrot.slane %v4856_v36, 9  ;;  %v4942_v36 = vrot.slane %v4430_v10, 5 }
 0x402   : > { %6503 = vmatprep.mubr.bf16.mxu1 %v7596_v30  ;;  %v4930_v30 = vrot.slane %v4928_v49, 4 }
 0x409   : > { %6504 = vmatmul.mubr.bf16.gmra.mrb[100].mxu1 %v12647_v53  ;;  %v11257_v53 = vsel %vm10251_vm9, %v7524_v57, %v4928_v49  ;;  %v4944_v57 = vrot.slane %v4942_v36, 4 }
 0x40a   : > { %6511 = vmatprep.mubr.bf16.mxu1 %v7597_v47  ;;  %v4931_v47 = vrot.slane %v4456_v5, 5  ;;  %12650 = vst [vmem:[#allocation15_spill] sm:$0xff] %v11257_v53  ;;  %v4858_v5 = vld [vmem:[#allocation2 + $0x3c] sm:$0xe] }
 0x40b   : > { %v7966_v4 = vpop.f32.mrb[4].mxu1  ;;  %v12674_v53 = vld [vmem:[#allocation14_spill] sm:$0xff] }
 0x40c   : > { %v7967_v9 = vpop.f32.mrb[5].mxu1 }
 0x40d   : > { %v11231_v50 = vadd.f32 %v7967_v9, %v7966_v4  ;;  %v7969_v63 = vpop.f32.mrb[6].mxu1  ;;  %v11261_v4 = vsel %vm10251_vm9, %v4930_v30, %v4931_v47  ;;  %v11280_v47 = vld [vmem:[#allocation2 + $0xb4] sm:$0xf] }
 0x40e   : > { %v7970_v11 = vpop.f32.mrb[7].mxu1  ;;  %12651 = vst [vmem:[#allocation16_spill] sm:$0xff] %v11261_v4  ;;  %v4315_v4 = vrot.slane %v10901_v16, 5 }
 0x40f   : > { %v11235_v32 = vadd.f32 %v7970_v11, %v7969_v63  ;;  %v11265_v63 = vld [vmem:[#allocation2 + $0xac] sm:$0xf]  ;;  %v11267_v11 = vld [vmem:[#allocation2 + $0xa8] sm:$0xf] }
 0x411   : > { %6512 = vmatmul.mubr.bf16.gmra.mrb[104].mxu1 %v12648_v19 }
 0x412   : > { %6519 = vmatprep.mubr.bf16.mxu1 %v7598_v62  ;;  %v7600_v62 = vcombine.low %v11267_v11, %v11265_v63 }
 0x413   : > { %v7972_v7 = vpop.f32.mrb[8].mxu1 }
 0x414   : > { %v7973_v61 = vpop.f32.mrb[9].mxu1 }
 0x415   : > { %v11244_v28 = vadd.f32 %v7973_v61, %v7972_v7  ;;  %v7975_v24 = vpop.f32.mrb[10].mxu1  ;;  %v12652_v7 = vcombine.low %v10872_v54, %v10876_v17 }
 0x416   : > { %v7976_v1 = vpop.f32.mrb[11].mxu1 }
 0x417   : > { %v11248_v15 = vadd.f32 %v7976_v1, %v7975_v24  ;;  %v4458_v1 = vld [vmem:[#allocation2 + $0x44] sm:$0x1] }
 0x418   : > { %v4945_v30 = vrot.slane %v4458_v1, 5  ;;  %v4460_v1 = vld [vmem:[#allocation2 + $0x5c] sm:$0x1] }
 0x419   : > { %6520 = vmatmul.mubr.bf16.gmra.mrb[108].mxu1 %v12649_v13  ;;  %v7526_v13 = vrot.slane %v4858_v5, 9  ;;  %v4860_v5 = vld [vmem:[#allocation2 + $0x54] sm:$0xe] }
 0x41a   : > { %6527 = vmatprep.mubr.bf16.mxu1 %v7599_v52  ;;  %v11278_v52 = vld [vmem:[#allocation2 + $0xb8] sm:$0xf]  ;;  %v11288_v17 = vsel %vm10251_vm9, %v4944_v57, %v4945_v30 }
 0x41b   : > { %v11284_v54 = vsel %vm10251_vm9, %v7526_v13, %v4942_v36  ;;  %12654 = vst [vmem:[#allocation18_spill] sm:$0xff] %v11288_v17  ;;  %v11300_v13 = vld [vmem:[#allocation2 + $0xc0] sm:$0xf]  ;;  %v4959_v17 = vrot.slane %v4460_v1, 5 }
 0x41c   : > { %12653 = vst [vmem:[#allocation17_spill] sm:$0xff] %v11284_v54  ;;  %v4246_v54 = vld [vmem:[#allocation2 + $0xc] sm:$0xe] }
 0x41f   : > { %v7978_v31 = vpop.f32.mrb[12].mxu1 }
 0x420   : > { %v7979_v19 = vpop.f32.mrb[13].mxu1 }
 0x421   : > { %6528 = vmatmul.mubr.bf16.gmra.mrb[112].mxu1 %v12652_v7  ;;  %v11274_v12 = vadd.f32 %v7979_v19, %v7978_v31  ;;  %v7981_v61 = vpop.f32.mrb[14].mxu1  ;;  %v7601_v31 = vcombine.low %v11280_v47, %v11278_v52  ;;  %v4434_v19 = vld [vmem:[#allocation2 + $0x58] sm:$0xf]  ;;  %v11297_v7 = vld [vmem:[#allocation2 + $0xc4] sm:$0xf] }
 0x422   : > { %6535 = vmatprep.mubr.bf16.mxu1 %v7600_v62  ;;  %v7982_v24 = vpop.f32.mrb[15].mxu1  ;;  %v12655_v62 = vcombine.low %v10894_v26, %v10898_v60  ;;  %v4956_v36 = vrot.slane %v4434_v19, 5  ;;  %v7602_v30 = vcombine.low %v11300_v13, %v11297_v7  ;;  %v12656_v60 = vcombine.low %v10931_v35, %v10935_v48 }
 0x423   : > { %v11276_v49 = vadd.f32 %v7982_v24, %v7981_v61  ;;  %v4312_v61 = vrot.slane %v10766_v14, 5  ;;  %v7528_v14 = vrot.slane %v4860_v5, 9  ;;  %v7507_v48 = vrot.slane %v4246_v54, 9 }
 0x424   : > { %v4958_v9 = vrot.slane %v4956_v36, 4  ;;  %v4319_v5 = vrot.slane %v10786_v40, 5 }
 0x425   : > { %v4313_v16 = vsel %vm10251_vm9, %v7507_v48, %v4312_v61 }
 0x429   : > { %6536 = vmatmul.mubr.bf16.gmra.mrb[116].mxu1 %v12655_v62  ;;  %v4314_v62 = vrot.slane %v4312_v61, 4 }
 0x42a   : > { %6543 = vmatprep.mubr.bf16.mxu1 %v7601_v31 }
 0x42b   : > { %v4316_v1 = vsel %vm10251_vm9, %v4314_v62, %v4315_v4 }
 0x42e   : > { %v7984_v24 = vpop.f32.mrb[16].mxu1 }
 0x42f   : > { %v7985_v57 = vpop.f32.mrb[17].mxu1 }
 0x430   : > { %v11304_v10 = vadd.f32 %v7985_v57, %v7984_v24  ;;  %v7987_v26 = vpop.f32.mrb[18].mxu1  ;;  %v11314_v24 = vsel %vm10251_vm9, %v7528_v14, %v4956_v36  ;;  %v11318_v57 = vsel %vm10251_vm9, %v4958_v9, %v4959_v17  ;;  %v12659_v36 = vcombine.low %v10956_v38, %v10960_v23  ;;  %v4462_v17 = vld [vmem:[#allocation2 + $0x74] sm:$0x1] }
 0x431   : > { %6544 = vmatmul.mubr.bf16.gmra.mrb[120].mxu1 %v12656_v60  ;;  %v7988_v31 = vpop.f32.mrb[19].mxu1  ;;  %12657 = vst [vmem:[#allocation19_spill] sm:$0xff] %v11314_v24  ;;  %12658 = vst [vmem:[#allocation20_spill] sm:$0xff] %v11318_v57  ;;  %v4321_v9 = vrot.slane %v4319_v5, 4  ;;  %v4862_v60 = vld [vmem:[#allocation2 + $0x6c] sm:$0xe] }
 0x432   : > { %6551 = vmatprep.mubr.bf16.mxu1 %v7602_v30  ;;  %v11309_v19 = vadd.f32 %v7988_v31, %v7987_v26  ;;  %v4438_v30 = vld [vmem:[#allocation2 + $0x70] sm:$0xf]  ;;  %v7619_v26 = vcombine.low %v4313_v16, %v4316_v1  ;;  %v4247_v31 = vld [vmem:[#allocation2 + $0x18] sm:$0xe]  ;;  %v4322_v14 = vrot.slane %v10975_v6, 5  ;;  %v7530_v62 = vrot.slane %v4862_v60, 9 }
 0x433   : > { %v4970_v54 = vrot.slane %v4438_v30, 5  ;;  %v4973_v35 = vrot.slane %v4462_v17, 5  ;;  %v7508_v61 = vrot.slane %v4247_v31, 9  ;;  %v4326_v38 = vrot.slane %v10838_v29, 5  ;;  %v9304_v16 = vld [vmem:[%s12583_s3 + $0x180] sm:$0xff]   ;;  %v9305_v29 = vld [vmem:[%s12583_s3 + $0x1c8] sm:$0xff]  }
 0x434   : > { %v4323_v48 = vsel %vm10251_vm9, %v4321_v9, %v4322_v14  ;;  %v4442_v31 = vld [vmem:[#allocation2 + $0x88] sm:$0xf]  ;;  %v9307_v14 = vld [vmem:[%s12583_s3 + $0x1d0] sm:$0xff]  }
 0x435   : > { %v4972_v40 = vrot.slane %v4970_v54, 4  ;;  %v11341_v6 = vsel %vm10251_vm9, %v7530_v62, %v4970_v54  ;;  %v4328_v60 = vrot.slane %v4326_v38, 4  ;;  %v4329_v54 = vrot.slane %v10990_v37, 5  ;;  %v4464_v62 = vld [vmem:[#allocation2 + $0x8c] sm:$0x1]  ;;  %v9308_v37 = vld [vmem:[%s12583_s3 + $0x190] sm:$0xff]  }
 0x436   : > { %12660 = vst [vmem:[#allocation21_spill] sm:$0xff] %v11341_v6 }
 0x437   : > { %v11345_v30 = vsel %vm10251_vm9, %v4972_v40, %v4973_v35  ;;  %v4248_v35 = vld [vmem:[#allocation2 + $0x24] sm:$0xe] }
 0x438   : > { %12661 = vst [vmem:[#allocation22_spill] sm:$0xff] %v11345_v30  ;;  %v4864_v40 = vld [vmem:[#allocation2 + $0x84] sm:$0xe] }
 0x439   : > { %6552 = vmatmul.mubr.bf16.gmra.mrb[124].mxu1 %v12659_v36  ;;  %v4320_v36 = vsel %vm10251_vm9, %v7508_v61, %v4319_v5  ;;  %v9306_v5 = vld [vmem:[%s12583_s3 + $0x188] sm:$0xff]   ;;  %v7509_v61 = vrot.slane %v4248_v35, 9  ;;  %v7532_v35 = vrot.slane %v4864_v40, 9  ;;  %v4250_v40 = vld [vmem:[#allocation2 + $0x3c] sm:$0xe] }
 0x43a   : > { %6592 = vmatprep.mubr.bf16.mxu1 %v7619_v26  ;;  %v7620_v17 = vcombine.low %v4320_v36, %v4323_v48  ;;  %v4330_v48 = vsel %vm10251_vm9, %v4328_v60, %v4329_v54  ;;  %v9309_v60 = vld [vmem:[%s12583_s3 + $0x1d8] sm:$0xff]  }
 0x43c   : > { %v7990_v4 = vpop.f32.mrb[20].mxu1 }
 0x43d   : > { %v7991_v57 = vpop.f32.mrb[21].mxu1 }
 0x43e   : > { %v11334_v23 = vadd.f32 %v7991_v57, %v7990_v4  ;;  %v7993_v1 = vpop.f32.mrb[22].mxu1 }
 0x43f   : > { %v7994_v26 = vpop.f32.mrb[23].mxu1 }
 0x440   : > { %v11354_v9 = vadd.f32 %v7994_v26, %v7993_v1  ;;  %v4333_v1 = vrot.slane %v10868_v45, 5 }
 0x441   : > { %6593 = vmatmul.mubr.bf16.vlgmr.msra.gmra.mrb[128].mxu1 %v10973_v25 }
 0x442   : > { %6600 = vmatprep.mubr.bf16.mxu1 %v7620_v17  ;;  %8281 = vmatpush3.bf16.msra.mxu1 %v9304_v16  ;;  %v4984_v16 = vrot.slane %v4442_v31, 5  ;;  %v4327_v17 = vsel %vm10251_vm9, %v7509_v61, %v4326_v38  ;;  %v4987_v31 = vrot.slane %v4464_v62, 5  ;;  %v9310_v62 = vld [vmem:[%s12583_s3 + $0x198] sm:$0xff]   ;;  %v9311_v61 = vld [vmem:[%s12583_s3 + $0x1e0] sm:$0xff]  }
 0x443   : > { %8282 = vmatprep.subr.bf16.mxu1 %v9305_v29 }
 0x444   : > { %v7996_v4 = vpop.f32.mrb[24].mxu1  ;;  %v4986_v45 = vrot.slane %v4984_v16, 4 }
 0x445   : > { %v7997_v25 = vpop.f32.mrb[25].mxu1 }
 0x446   : > { %v11367_v26 = vadd.f32 %v7997_v25, %v7996_v4  ;;  %v7999_v36 = vpop.f32.mrb[26].mxu1  ;;  %8283 = vmatpush3.bf16.msra.mxu1 %v9306_v5  ;;  %v7621_v4 = vcombine.low %v4327_v17, %v4330_v48  ;;  %v4335_v5 = vrot.slane %v4333_v1, 4  ;;  %v11382_v25 = vsel %vm10251_vm9, %v7532_v35, %v4984_v16 }
 0x447   : > { %v8000_v29 = vpop.f32.mrb[27].mxu1  ;;  %8284 = vmatprep.subr.bf16.mxu1 %v9307_v14  ;;  %12662 = vst [vmem:[#allocation23_spill] sm:$0xff] %v11382_v25  ;;  %v11386_v38 = vsel %vm10251_vm9, %v4986_v45, %v4987_v31  ;;  %v4249_v14 = vld [vmem:[#allocation2 + $0x30] sm:$0xe]  ;;  %v4347_v25 = vrot.slane %v11020_v22, 5 }
 0x448   : > { %v11377_v54 = vadd.f32 %v8000_v29, %v7999_v36  ;;  %12663 = vst [vmem:[#allocation24_spill] sm:$0xff] %v11386_v38  ;;  %v7510_v36 = vrot.slane %v4249_v14, 9  ;;  %v12664_v29 = vld [vmem:[#allocation8_spill] sm:$0xff] }
 0x449   : > { %6601 = vmatmul.mubr.bf16.gmra.mrb[132].mxu1 %v11044_v59  ;;  %v4336_v59 = vrot.slane %v11036_v34, 5  ;;  %v4340_v17 = vrot.slane %v12664_v29, 5  ;;  %v9312_v34 = vld [vmem:[%s12583_s3 + $0x1a0] sm:$0xff]   ;;  %v4866_v29 = vld [vmem:[#allocation2 + $0x9c] sm:$0xe] }
 0x44a   : > { %6608 = vmatprep.mubr.bf16.mxu1 %v7621_v4  ;;  %8285 = vmatpush3.bf16.msra.mxu1 %v9308_v37  ;;  %v4334_v31 = vsel %vm10251_vm9, %v7510_v36, %v4333_v1  ;;  %v9313_v4 = vld [vmem:[%s12583_s3 + $0x1e8] sm:$0xff]   ;;  %v12666_v36 = vld [vmem:[#allocation10_spill] sm:$0xff] }
 0x44b   : > { %8286 = vmatprep.subr.bf16.mxu1 %v9309_v60  ;;  %v4337_v37 = vsel %vm10251_vm9, %v4335_v5, %v4336_v59  ;;  %v4446_v5 = vld [vmem:[#allocation2 + $0xa0] sm:$0xf]  ;;  %v9314_v1 = vld [vmem:[%s12583_s3 + $0x1a8] sm:$0xff]   ;;  %v4343_v57 = vrot.slane %v12666_v36, 5  ;;  %v4349_v36 = vrot.slane %v4347_v25, 4 }
 0x44c   : > { %v8002_v48 = vpop.f32.mrb[28].mxu1  ;;  %v7622_v59 = vcombine.low %v4334_v31, %v4337_v37  ;;  %v9315_v37 = vld [vmem:[%s12583_s3 + $0x1f0] sm:$0xff]  }
 0x44d   : > { %v8003_v16 = vpop.f32.mrb[29].mxu1 }
 0x44e   : > { %v11400_v35 = vadd.f32 %v8003_v16, %v8002_v48  ;;  %v8005_v45 = vpop.f32.mrb[30].mxu1  ;;  %8287 = vmatpush3.bf16.msra.mxu1 %v9310_v62  ;;  %v12665_v48 = vld [vmem:[#allocation9_spill] sm:$0xff]  ;;  %v4342_v62 = vrot.slane %v4340_v17, 4  ;;  %v4466_v16 = vld [vmem:[#allocation2 + $0xa4] sm:$0x1] }
 0x44f   : > { %v8006_v60 = vpop.f32.mrb[31].mxu1  ;;  %8288 = vmatprep.subr.bf16.mxu1 %v9311_v61  ;;  %v4998_v61 = vrot.slane %v4446_v5, 5 }
 0x450   : > { %v11410_v14 = vadd.f32 %v8006_v60, %v8005_v45  ;;  %v7534_v60 = vrot.slane %v4866_v29, 9 }
 0x451   : > { %6609 = vmatmul.mubr.bf16.gmra.mrb[136].mxu1 %v12665_v48  ;;  %v5000_v31 = vrot.slane %v4998_v61, 4  ;;  %v5001_v48 = vrot.slane %v4466_v16, 5 }
 0x452   : > { %6616 = vmatprep.mubr.bf16.mxu1 %v7622_v59  ;;  %8289 = vmatpush3.bf16.msra.mxu1 %v9312_v34  ;;  %v7511_v59 = vrot.slane %v4250_v40, 9  ;;  %v4344_v34 = vsel %vm10251_vm9, %v4342_v62, %v4343_v57  ;;  %v11430_v29 = vsel %vm10251_vm9, %v7534_v60, %v4998_v61  ;;  %v9317_v57 = vld [vmem:[%s12583_s3 + $0x1f8] sm:$0xff]   ;;  %v12670_v61 = vld [vmem:[#allocation11_spill] sm:$0xff]  ;;  %v12671_v60 = vld [vmem:[#allocation12_spill] sm:$0xff] }
 0x453   : > { %8290 = vmatprep.subr.bf16.mxu1 %v9313_v4  ;;  %v9316_v4 = vld [vmem:[%s12583_s3 + $0x1b0] sm:$0xff]   ;;  %12667 = vst [vmem:[#allocation8_spill] sm:$0xff] %v11430_v29  ;;  %v11434_v40 = vsel %vm10251_vm9, %v5000_v31, %v5001_v48  ;;  %v4350_v31 = vrot.slane %v12671_v60, 5 }
 0x454   : > { %v8008_v45 = vpop.f32.mrb[32].mxu1  ;;  %12668 = vst [vmem:[#allocation9_spill] sm:$0xff] %v11434_v40  ;;  %v4341_v22 = vsel %vm10251_vm9, %v7511_v59, %v4340_v17  ;;  %v9318_v17 = vld [vmem:[%s12583_s3 + $0x1b8] sm:$0xff]  }
 0x455   : > { %v8009_v38 = vpop.f32.mrb[33].mxu1  ;;  %v4468_v59 = vld [vmem:[#allocation2 + $0xbc] sm:$0x1] }
 0x456   : > { %v11423_v30 = vadd.f32 %v8009_v38, %v8008_v45  ;;  %v8011_v5 = vpop.f32.mrb[34].mxu1  ;;  %8291 = vmatpush3.bf16.msra.mxu1 %v9314_v1  ;;  %v7623_v1 = vcombine.low %v4341_v22, %v4344_v34  ;;  %v4251_v45 = vld [vmem:[#allocation2 + $0x48] sm:$0xe]  ;;  %v4868_v38 = vld [vmem:[#allocation2 + $0xb4] sm:$0xe]  ;;  %v4351_v34 = vsel %vm10251_vm9, %v4349_v36, %v4350_v31  ;;  %v4354_v22 = vrot.slane %v11099_v21, 5 }
 0x457   : > { %v8012_v16 = vpop.f32.mrb[35].mxu1  ;;  %8292 = vmatprep.subr.bf16.mxu1 %v9315_v37  ;;  %v4450_v37 = vld [vmem:[#allocation2 + $0xb8] sm:$0xf]  ;;  %v5015_v6 = vrot.slane %v4468_v59, 5  ;;  %v4368_v59 = vrot.slane %v11139_v56, 5 }
 0x458   : > { %v11443_v62 = vadd.f32 %v8012_v16, %v8011_v5  ;;  %v7512_v16 = vrot.slane %v4251_v45, 9  ;;  %v4356_v36 = vrot.slane %v4354_v22, 4 }
 0x459   : > { %6617 = vmatmul.mubr.bf16.gmra.mrb[140].mxu1 %v12670_v61  ;;  %v4370_v56 = vrot.slane %v4368_v59, 4 }
 0x45a   : > { %12669 = vst [vmem:[#allocation10_spill] sm:$0xff] %v11443_v62  ;;  %6624 = vmatprep.mubr.bf16.mxu1 %v7623_v1  ;;  %8293 = vmatpush3.bf16.msra.mxu1 %v9316_v4  ;;  %v5012_v1 = vrot.slane %v4450_v37, 5  ;;  %v4348_v60 = vsel %vm10251_vm9, %v7512_v16, %v4347_v25  ;;  %v4252_v37 = vld [vmem:[#allocation2 + $0x54] sm:$0xe]  ;;  %v11471_v25 = vld [vmem:[%s12583_s3 + $0x200] sm:$0xff]  }
 0x45b   : > { %8294 = vmatprep.subr.bf16.mxu1 %v9317_v57  ;;  %v7536_v57 = vrot.slane %v4868_v38, 9  ;;  %v7624_v45 = vcombine.low %v4348_v60, %v4351_v34  ;;  %v4452_v62 = vld [vmem:[#allocation2 + $0xc4] sm:$0xf] }
 0x45c   : > { %v8014_v48 = vpop.f32.mrb[36].mxu1  ;;  %v5014_v29 = vrot.slane %v5012_v1, 4 }
 0x45d   : > { %v8015_v5 = vpop.f32.mrb[37].mxu1  ;;  %v11462_v21 = vsel %vm10251_vm9, %v7536_v57, %v5012_v1 }
 0x45e   : > { %v11453_v4 = vadd.f32 %v8015_v5, %v8014_v48  ;;  %v8017_v61 = vpop.f32.mrb[38].mxu1  ;;  %8295 = vmatpush3.bf16.msra.mxu1 %v9318_v17  ;;  %12675 = vst [vmem:[#allocation14_spill] sm:$0xff] %v11462_v21  ;;  %v11466_v17 = vsel %vm10251_vm9, %v5014_v29, %v5015_v6  ;;  %v4361_v48 = vrot.slane %v11126_v3, 5  ;;  %v7513_v29 = vrot.slane %v4252_v37, 9  ;;  %v4253_v3 = vld [vmem:[#allocation2 + $0x60] sm:$0xe] }
 0x45f   : > { %v8018_v40 = vpop.f32.mrb[39].mxu1  ;;  %12676 = vst [vmem:[#allocation25_spill] sm:$0xff] %v11466_v17  ;;  %8774 = vmatprep.subr.bf16.mxu1 %v11471_v25  ;;  %v4863_v17 = vld [vmem:[#allocation2 + $0x78] sm:$0xe] }
 0x460   : > { %12672 = vst [vmem:[#allocation11_spill] sm:$0xff] %v11453_v4  ;;  %v11457_v24 = vadd.f32 %v8018_v40, %v8017_v61  ;;  %v4355_v61 = vsel %vm10251_vm9, %v7513_v29, %v4354_v22  ;;  %v4461_v22 = vld [vmem:[#allocation2 + $0x68] sm:$0x1]  ;;  %v4444_v29 = vld [vmem:[#allocation2 + $0x94] sm:$0xf] }
 0x461   : > { %6625 = vmatmul.mubr.bf16.gmra.mrb[144].mxu1 %v12674_v53  ;;  %v12677_v53 = vld [vmem:[#allocation13_spill] sm:$0xff] }
 0x462   : > { %12673 = vst [vmem:[#allocation12_spill] sm:$0xff] %v11457_v24  ;;  %6632 = vmatprep.mubr.bf16.mxu1 %v7624_v45  ;;  %v4357_v38 = vrot.slane %v12677_v53, 5  ;;  %v4363_v45 = vrot.slane %v4361_v48, 4  ;;  %v4865_v24 = vld [vmem:[#allocation2 + $0x90] sm:$0xe] }
 0x464   : > { %v8020_v31 = vpop.f32.mrb[40].mxu1  ;;  %v4358_v5 = vsel %vm10251_vm9, %v4356_v36, %v4357_v38  ;;  %v4254_v36 = vld [vmem:[#allocation2 + $0x6c] sm:$0xe]  ;;  %v4364_v38 = vrot.slane %v11156_v20, 5 }
 0x465   : > { %v8021_v6 = vpop.f32.mrb[41].mxu1  ;;  %v7625_v57 = vcombine.low %v4355_v61, %v4358_v5  ;;  %v7514_v5 = vrot.slane %v4253_v3, 9  ;;  %v7515_v37 = vrot.slane %v4254_v36, 9 }
 0x466   : > { %v11481_v16 = vadd.f32 %v8021_v6, %v8020_v31  ;;  %v8023_v34 = vpop.f32.mrb[42].mxu1  ;;  %v4371_v31 = vrot.slane %v11182_v0, 5  ;;  %v11492_v6 = vld [vmem:[#allocation2 + $0x64] sm:$0xf]  ;;  %v4365_v40 = vsel %vm10251_vm9, %v4363_v45, %v4364_v38  ;;  %v4463_v0 = vld [vmem:[#allocation2 + $0x80] sm:$0x1] }
 0x467   : > { %v8024_v1 = vpop.f32.mrb[43].mxu1  ;;  %v4362_v53 = vsel %vm10251_vm9, %v7514_v5, %v4361_v48  ;;  %v4963_v3 = vrot.slane %v11492_v6, 5  ;;  %v11509_v45 = vsel %vm10251_vm9, %v7515_v37, %v4368_v59  ;;  %v4966_v5 = vrot.slane %v4461_v22, 5 }
 0x468   : > { %12678 = vst [vmem:[#allocation13_spill] sm:$0xff] %v11481_v16  ;;  %v11485_v60 = vadd.f32 %v8024_v1, %v8023_v34  ;;  %v4440_v34 = vld [vmem:[#allocation2 + $0x7c] sm:$0xf]  ;;  %v4861_v1 = vld [vmem:[#allocation2 + $0x60] sm:$0xe]  ;;  %v7626_v20 = vcombine.low %v4362_v53, %v4365_v40  ;;  %v7531_v37 = vrot.slane %v4863_v17, 9 }
 0x469   : > { %6633 = vmatmul.mubr.bf16.gmra.mrb[148].mxu1 %v11163_v27  ;;  %v11499_v27 = vsel %vm10251_vm9, %v4370_v56, %v4371_v31  ;;  %v4465_v56 = vld [vmem:[#allocation2 + $0x98] sm:$0x1]  ;;  %v7529_v36 = vrot.slane %v4861_v1, 9  ;;  %v4977_v38 = vrot.slane %v4440_v34, 5  ;;  %v4965_v48 = vrot.slane %v4963_v3, 4 }
 0x46a   : > { %12679 = vst [vmem:[#allocation26_spill] sm:$0xff] %v11485_v60  ;;  %6640 = vmatprep.mubr.bf16.mxu1 %v7625_v57  ;;  %v7627_v16 = vcombine.low %v11509_v45, %v11499_v27  ;;  %v4980_v22 = vrot.slane %v4463_v0, 5  ;;  %v4867_v34 = vld [vmem:[#allocation2 + $0xa8] sm:$0xe]  ;;  %v4088_v1 = vshll.u32 %v11212_v44, 16  ;;  %v4994_v0 = vrot.slane %v4465_v56, 5 }
 0x46b   : > { %v11519_v59 = vsel %vm10251_vm9, %v7529_v36, %v4963_v3  ;;  %v11524_v40 = vsel %vm10251_vm9, %v4965_v48, %v4966_v5  ;;  %v4979_v53 = vrot.slane %v4977_v38, 4  ;;  %v4467_v27 = vld [vmem:[#allocation2 + $0xb0] sm:$0x1]  ;;  %v11531_v17 = vsel %vm10251_vm9, %v7531_v37, %v4977_v38  ;;  %v4869_v3 = vld [vmem:[#allocation2 + $0xc0] sm:$0xe] }
 0x46c   : > { %v8026_v61 = vpop.f32.mrb[44].mxu1  ;;  %12682 = vst [vmem:[#allocation28_spill] sm:$0xff] %v11519_v59  ;;  %12683 = vst [vmem:[#allocation29_spill] sm:$0xff] %v11524_v40  ;;  %v4469_v36 = vld [vmem:[#allocation2 + $0xc8] sm:$0x1]  ;;  %v7535_v38 = vrot.slane %v4867_v34, 9 }
 0x46d   : > { %v8027_v57 = vpop.f32.mrb[45].mxu1  ;;  %12684 = vst [vmem:[#allocation30_spill] sm:$0xff] %v11531_v17  ;;  %v5019_v37 = vrot.slane %v4452_v62, 5  ;;  %v7537_v40 = vrot.slane %v4869_v3, 9  ;;  %v5022_v17 = vrot.slane %v4469_v36, 5  ;;  %v11551_v34 = vrot.slane %v4088_v1, 5 }
 0x46e   : > { %v11505_v21 = vadd.f32 %v8027_v57, %v8026_v61  ;;  %v8029_v60 = vpop.f32.mrb[46].mxu1  ;;  %v12681_v61 = vrot.slane %v11212_v44, 5  ;;  %v12688_v62 = vshrl.u32 %v11212_v44, 16  ;;  %v12695_v36 = vrot.slane %v11212_v44, 5 }
 0x46f   : > { %v8030_v31 = vpop.f32.mrb[47].mxu1  ;;  %v11569_v1 = vsel %vm10251_vm9, %v7537_v40, %v5019_v37  ;;  %v4116_v40 = vshrl.u32 %v11220_v2, 16 }
 0x470   : > { %12680 = vst [vmem:[#allocation27_spill] sm:$0xff] %v11505_v21  ;;  %v11513_v4 = vadd.f32 %v8030_v31, %v8029_v60  ;;  %v4377_v57 = vrot.slane %v12681_v61, 4  ;;  %v4448_v21 = vld [vmem:[#allocation2 + $0xac] sm:$0xf]  ;;  %v4991_v60 = vrot.slane %v4444_v29, 5  ;;  %v11535_v31 = vsel %vm10251_vm9, %v4979_v53, %v4980_v22  ;;  %12691 = vst [vmem:[#allocation36_spill] sm:$0xff] %v11569_v1 }
 0x471   : > { %6641 = vmatmul.mubr.bf16.gmra.mrb[152].mxu1 %v11180_v43  ;;  %v7533_v43 = vrot.slane %v4865_v24, 9  ;;  %12685 = vst [vmem:[#allocation31_spill] sm:$0xff] %v11535_v31  ;;  %v5008_v22 = vrot.slane %v4467_v27, 5  ;;  %v5021_v31 = vrot.slane %v5019_v37, 4  ;;  %v4094_v59 = vrot.slane %v12688_v62, 4 }
 0x472   : > { %6648 = vmatprep.mubr.bf16.mxu1 %v7626_v20  ;;  %v4993_v29 = vrot.slane %v4991_v60, 4  ;;  %v5005_v20 = vrot.slane %v4448_v21, 5  ;;  %v4382_v37 = vrot.slane %v11220_v2, 5  ;;  %v4112_v62 = vshll.u32 %v11220_v2, 16 }
 0x473   : > { %v11541_v61 = vsel %vm10251_vm9, %v7533_v43, %v4991_v60  ;;  %v3855_v43 = vld [vmem:[#allocation2 + $0x80] sm:$0x1] }
 0x474   : > { %v8032_v48 = vpop.f32.mrb[48].mxu1  ;;  %12686 = vst [vmem:[#allocation32_spill] sm:$0xff] %v11541_v61  ;;  %v11545_v45 = vsel %vm10251_vm9, %v4993_v29, %v4994_v0  ;;  %v5007_v53 = vrot.slane %v5005_v20, 4  ;;  %v11557_v29 = vsel %vm10251_vm9, %v7535_v38, %v5005_v20  ;;  %v11573_v0 = vsel %vm10251_vm9, %v5021_v31, %v5022_v17  ;;  %v4255_v20 = vld [vmem:[#allocation2 + $0x78] sm:$0xe] }
 0x475   : > { %v8033_v24 = vpop.f32.mrb[49].mxu1  ;;  %12687 = vst [vmem:[#allocation33_spill] sm:$0xff] %v11545_v45  ;;  %12689 = vst [vmem:[#allocation34_spill] sm:$0xff] %v11557_v29  ;;  %v12693_v38 = vshrl.u32 %v11216_v42, 16  ;;  %v7516_v31 = vrot.slane %v4255_v20, 9  ;;  %v4384_v1 = vrot.slane %v4382_v37, 4 }
 0x476   : > { %v11547_v56 = vadd.f32 %v8033_v24, %v8032_v48  ;;  %v8035_v21 = vpop.f32.mrb[50].mxu1  ;;  %v11561_v27 = vsel %vm10251_vm9, %v5007_v53, %v5008_v22  ;;  %12692 = vst [vmem:[#allocation37_spill] sm:$0xff] %v11573_v0  ;;  %v12694_v53 = vshll.u32 %v11216_v42, 16  ;;  %v4106_v42 = vshll.u32 %v11222_v58, 16  ;;  %v4256_v29 = vld [vmem:[#allocation2 + $0x84] sm:$0xe] }
 0x477   : > { %v8036_v60 = vpop.f32.mrb[51].mxu1  ;;  %12690 = vst [vmem:[#allocation35_spill] sm:$0xff] %v11561_v27  ;;  %v4081_v24 = vrot.slane %v12693_v38, 4  ;;  %v4103_v38 = vshrl.u32 %v11222_v58, 16  ;;  %v4376_v20 = vsel %vm10251_vm9, %v7516_v31, %v12695_v36  ;;  %v4098_v0 = vshll.u32 %v3855_v43, 16 }
 0x478   : > { %v11563_v3 = vadd.f32 %v8036_v60, %v8035_v21  ;;  %v4084_v22 = vrot.slane %v12694_v53, 5  ;;  %v4378_v21 = vrot.slane %v3855_v43, 5  ;;  %v4095_v60 = vor.u32 %v4094_v59, %v11551_v34  ;;  %v3856_v59 = vld [vmem:[#allocation2 + $0x8c] sm:$0x1] }
 0x479   : > { %6649 = vmatmul.mubr.bf16.gmra.mrb[156].mxu1 %v11190_v33  ;;  %v11598_v58 = vrot.slane %v4112_v62, 5  ;;  %v4108_v44 = vrot.slane %v4106_v42, 5  ;;  %v4100_v36 = vrot.slane %v4098_v0, 5  ;;  %v4140_v43 = vshrl.u32 %v11229_v18, 16 }
 0x47a   : > { %6656 = vmatprep.mubr.bf16.mxu1 %v7627_v16  ;;  %v4379_v33 = vsel %vm10251_vm9, %v4377_v57, %v4378_v21  ;;  %v4085_v5 = vor.u32 %v4084_v22, %v4081_v24  ;;  %v4096_v27 = vrot.slane %v4095_v60, 4  ;;  %v4385_v24 = vrot.slane %v3856_v59, 5 }
 0x47b   : > { %v7628_v21 = vcombine.low %v4376_v20, %v4379_v33  ;;  %v7517_v22 = vrot.slane %v4256_v29, 9  ;;  %v4136_v60 = vshll.u32 %v11229_v18, 16  ;;  %v4389_v29 = vrot.slane %v11229_v18, 5  ;;  %v3857_v18 = vld [vmem:[#allocation2 + $0x98] sm:$0x1] }
 0x47c   : > { %v8038_v17 = vpop.f32.mrb[52].mxu1  ;;  %v4086_v45 = vrot.slane %v4085_v5, 4  ;;  %v4386_v33 = vsel %vm10251_vm9, %v4384_v1, %v4385_v24  ;;  %v4130_v5 = vshll.u32 %v11233_v39, 16  ;;  %v4122_v20 = vshll.u32 %v3856_v59, 16 }
 0x47d   : > { %v8039_v53 = vpop.f32.mrb[53].mxu1  ;;  %v4383_v62 = vsel %vm10251_vm9, %v7517_v22, %v4382_v37  ;;  %v11622_v22 = vrot.slane %v4136_v60, 5  ;;  %v4164_v59 = vshrl.u32 %v11242_v41, 16 }
 0x47e   : > { %v11590_v16 = vadd.f32 %v8039_v53, %v8038_v17  ;;  %v8041_v48 = vpop.f32.mrb[54].mxu1  ;;  %v4118_v17 = vrot.slane %v4116_v40, 4  ;;  %v4105_v53 = vrot.slane %v4103_v38, 4  ;;  %v4091_v1 = vsel %vm10239_vm6, %v4086_v45, %v11551_v34  ;;  %v4257_v45 = vld [vmem:[#allocation2 + $0x90] sm:$0xe] }
 0x47f   : > { %v8042_v57 = vpop.f32.mrb[55].mxu1  ;;  %v4132_v61 = vrot.slane %v4130_v5, 5  ;;  %v4391_v34 = vrot.slane %v4389_v29, 4 }
 0x480   : > { %v11596_v2 = vadd.f32 %v8042_v57, %v8041_v48  ;;  %v4101_v48 = vsel %vm10239_vm6, %v4096_v27, %v4100_v36  ;;  %v4119_v40 = vor.u32 %v4118_v17, %v11598_v58  ;;  %v4109_v42 = vor.u32 %v4108_v44, %v4105_v53 }
 0x481   : > { %6657 = vmatmul.mubr.bf16.gmra.mrb[160].mxu1 %v11202_v51  ;;  %v4127_v51 = vshrl.u32 %v11233_v39, 16  ;;  %v4151_v57 = vshrl.u32 %v11246_v8, 16  ;;  %v7612_v17 = vcombine.low %v4091_v1, %v4101_v48  ;;  %v7629_v36 = vcombine.low %v4383_v62, %v4386_v33 }
 0x482   : > { %12696 = vst [vmem:[#allocation38_spill] sm:$0xff] %v11596_v2  ;;  %6664 = vmatprep.mubr.bf16.mxu1 %v7628_v21  ;;  %v4154_v21 = vshll.u32 %v11246_v8, 16  ;;  %v4120_v37 = vrot.slane %v4119_v40, 4  ;;  %v4110_v53 = vrot.slane %v4109_v42, 4  ;;  %v4124_v8 = vrot.slane %v4122_v20, 5 }
 0x483   : > { %v4153_v44 = vrot.slane %v4151_v57, 4  ;;  %v4392_v48 = vrot.slane %v3857_v18, 5  ;;  %v4396_v33 = vrot.slane %v11242_v41, 5  ;;  %v4160_v40 = vshll.u32 %v11242_v41, 16 }
 0x484   : > { %v8044_v31 = vpop.f32.mrb[56].mxu1  ;;  %v4156_v62 = vrot.slane %v4154_v21, 5  ;;  %v4178_v1 = vshll.u32 %v11267_v11, 16  ;;  %v4115_v21 = vsel %vm10239_vm6, %v4110_v53, %v11598_v58 }
 0x485   : > { %v8045_v0 = vpop.f32.mrb[57].mxu1  ;;  %v4393_v20 = vsel %vm10251_vm9, %v4391_v34, %v4392_v48  ;;  %v4258_v48 = vld [vmem:[#allocation2 + $0x9c] sm:$0xe] }
 0x486   : > { %v11613_v38 = vadd.f32 %v8045_v0, %v8044_v31  ;;  %v8047_v27 = vpop.f32.mrb[58].mxu1  ;;  %v4142_v31 = vrot.slane %v4140_v43, 4  ;;  %v4129_v0 = vrot.slane %v4127_v51, 4  ;;  %v4125_v43 = vsel %vm10239_vm6, %v4120_v37, %v4124_v8  ;;  %v3858_v37 = vld [vmem:[#allocation2 + $0xa4] sm:$0x1] }
 0x487   : > { %v8048_v39 = vpop.f32.mrb[59].mxu1  ;;  %v7518_v51 = vrot.slane %v4257_v45, 9  ;;  %v7613_v45 = vcombine.low %v4115_v21, %v4125_v43  ;;  %v11641_v8 = vrot.slane %v4160_v40, 5  ;;  %v4399_v53 = vrot.slane %v3858_v37, 5 }
 0x488   : > { %12697 = vst [vmem:[#allocation39_spill] sm:$0xff] %v11613_v38  ;;  %v11620_v24 = vadd.f32 %v8048_v39, %v8047_v27  ;;  %v4143_v5 = vor.u32 %v4142_v31, %v11622_v22  ;;  %v4175_v27 = vshrl.u32 %v11267_v11, 16  ;;  %v4133_v57 = vor.u32 %v4132_v61, %v4129_v0 }
 0x489   : > { %6665 = vmatmul.mubr.bf16.gmra.mrb[164].mxu1 %v7612_v17  ;;  %v4390_v17 = vsel %vm10251_vm9, %v7518_v51, %v4389_v29  ;;  %v4398_v11 = vrot.slane %v4396_v33, 4  ;;  %v11648_v29 = vrot.slane %v4178_v1, 5  ;;  %v4157_v43 = vor.u32 %v4156_v62, %v4153_v44 }
 0x48a   : > { %12698 = vst [vmem:[#allocation40_spill] sm:$0xff] %v11620_v24  ;;  %6672 = vmatprep.mubr.bf16.mxu1 %v7629_v36  ;;  %v4146_v36 = vshll.u32 %v3857_v18, 16  ;;  %v4166_v24 = vrot.slane %v4164_v59, 4  ;;  %v7630_v61 = vcombine.low %v4390_v17, %v4393_v20  ;;  %v4144_v0 = vrot.slane %v4143_v5, 4  ;;  %v11653_v59 = vld [vmem:[%s12584_s4] ss:$0 sm:$0xff] }
 0x48b   : > { %v4134_v58 = vrot.slane %v4133_v57, 4  ;;  %v7519_v40 = vrot.slane %v4258_v48, 9  ;;  %v4400_v51 = vsel %vm10251_vm9, %v4398_v11, %v4399_v53  ;;  %v4403_v20 = vrot.slane %v11265_v63, 5  ;;  %v3859_v48 = vld [vmem:[#allocation2 + $0xb0] sm:$0x1] }
 0x48c   : > { %v8050_v60 = vpop.f32.mrb[60].mxu1  ;;  %v4148_v18 = vrot.slane %v4146_v36, 5  ;;  %v4167_v5 = vor.u32 %v4166_v24, %v11641_v8  ;;  %v4202_v1 = vshll.u32 %v11280_v47, 16  ;;  %v4184_v62 = vshll.u32 %v11265_v63, 16 }
 0x48d   : > { %v8051_v42 = vpop.f32.mrb[61].mxu1  ;;  %v4139_v17 = vsel %vm10239_vm6, %v4134_v58, %v11622_v22  ;;  %v4397_v24 = vsel %vm10251_vm9, %v7519_v40, %v4396_v33  ;;  %v4170_v36 = vshll.u32 %v3858_v37, 16  ;;  %v12702_v22 = vld [vmem:[#allocation7_spill] sm:$0xff] }
 0x48e   : > { %v11634_v39 = vadd.f32 %v8051_v42, %v8050_v60  ;;  %v8053_v41 = vpop.f32.mrb[62].mxu1  ;;  %v4188_v60 = vshrl.u32 %v11265_v63, 16  ;;  %v11646_v42 = vrot.slane %v4175_v27, 4  ;;  %v4199_v27 = vshrl.u32 %v11280_v47, 16 }
 0x48f   : > { %v8054_v31 = vpop.f32.mrb[63].mxu1  ;;  %v4149_v44 = vsel %vm10239_vm6, %v4144_v0, %v4148_v18  ;;  %v4158_v0 = vrot.slane %v4157_v43, 4  ;;  %v4168_v18 = vrot.slane %v4167_v5, 4  ;;  %v6276_v33 = vadd.f32 %v12702_v22, %v11653_v59 }
 0x490   : > { %12699 = vst [vmem:[#allocation41_spill] sm:$0xff] %v11634_v39  ;;  %v11643_v34 = vadd.f32 %v8054_v31, %v8053_v41  ;;  %v4212_v41 = vshrl.u32 %v11278_v52, 16  ;;  %v12701_v31 = vld [vmem:[#allocation6_spill] sm:$0xff]  ;;  %v7614_v53 = vcombine.low %v4139_v17, %v4149_v44  ;;  %v4405_v39 = vrot.slane %v4403_v20, 4 }
 0x491   : > { %6673 = vmatmul.mubr.bf16.gmra.mrb[168].mxu1 %v7613_v45  ;;  %v6273_v47 = vadd.f32 %v12701_v31, %v11653_v59  ;;  %v4190_v38 = vrot.slane %v4188_v60, 4  ;;  %v11676_v58 = vrot.slane %v4184_v62, 5  ;;  %v4201_v40 = vrot.slane %v4199_v27, 4 }
 0x492   : > { %12700 = vst [vmem:[#allocation42_spill] sm:$0xff] %v11643_v34  ;;  %6680 = vmatprep.mubr.bf16.mxu1 %v7630_v61  ;;  %v7631_v61 = vcombine.low %v4397_v24, %v4400_v51  ;;  %v4259_v34 = vld [vmem:[#allocation2 + $0xa8] sm:$0xe]  ;;  %v4410_v43 = vrot.slane %v11278_v52, 5  ;;  %v4208_v51 = vshll.u32 %v11278_v52, 16  ;;  %v4172_v5 = vrot.slane %v4170_v36, 5 }
 0x493   : > { %v7520_v60 = vrot.slane %v4259_v34, 9  ;;  %v4204_v17 = vrot.slane %v4202_v1, 5  ;;  %v4223_v24 = vshrl.u32 %v11300_v13, 16  ;;  %v4226_v62 = vshll.u32 %v11300_v13, 16 }
 0x494   : > { %v8072_v57 = vpop.f32.mrb[64].mxu1  ;;  %v4163_v52 = vsel %vm10239_vm6, %v4158_v0, %v11641_v8  ;;  %v4173_v36 = vsel %vm10239_vm6, %v4168_v18, %v4172_v5  ;;  %v4412_v13 = vrot.slane %v4410_v43, 4 }
 0x495   : > { %v8073_v21 = vpop.f32.mrb[65].mxu1  ;;  %v4404_v34 = vsel %vm10251_vm9, %v7520_v60, %v4403_v20  ;;  %v7615_v22 = vcombine.low %v4163_v52, %v4173_v36  ;;  %v4417_v60 = vrot.slane %v11297_v7, 5 }
 0x496   : > { %v8074_v45 = vadd.f32 %v8073_v21, %v8072_v57  ;;  %v8075_v11 = vpop.f32.mrb[66].mxu1  ;;  %v4406_v57 = vrot.slane %v3859_v48, 5  ;;  %v4181_v21 = vor.u32 %v11648_v29, %v11646_v42  ;;  %v4191_v42 = vor.u32 %v4190_v38, %v11676_v58  ;;  %v3860_v29 = vld [vmem:[#allocation2 + $0xbc] sm:$0x1] }
 0x497   : > { %v8076_v63 = vpop.f32.mrb[67].mxu1  ;;  %v4413_v20 = vrot.slane %v3860_v29, 5  ;;  %v4218_v38 = vshll.u32 %v3860_v29, 16 }
 0x498   : > { %v11672_v2 = vadd.f32 %v8074_v45, %v6273_v47  ;;  %v8077_v37 = vadd.f32 %v8076_v63, %v8075_v11  ;;  %v4407_v27 = vsel %vm10251_vm9, %v4405_v39, %v4406_v57  ;;  %v4194_v47 = vshll.u32 %v3859_v48, 16 }
 0x499   : > { %6681 = vmatmul.mubr.bf16.gmra.mrb[172].mxu1 %v7614_v53  ;;  %v11696_v45 = vrot.slane %v4208_v51, 5  ;;  %v4214_v39 = vrot.slane %v4212_v41, 4  ;;  %v6281_v11 = vadd.f32 %v11231_v50, %v11653_v59  ;;  %v7632_v0 = vcombine.low %v4404_v34, %v4407_v27  ;;  %v4260_v53 = vld [vmem:[#allocation2 + $0xb4] sm:$0xe] }
 0x49a   : > { %v11680_v44 = vadd.f32 %v8077_v37, %v6276_v33  ;;  %6688 = vmatprep.mubr.bf16.mxu1 %v7631_v61  ;;  %v4182_v63 = vrot.slane %v4181_v21, 4  ;;  %v4205_v33 = vor.u32 %v4204_v17, %v4201_v40  ;;  %v6284_v48 = vadd.f32 %v11235_v32, %v11653_v59 }
 0x49b   : > { %v4192_v41 = vrot.slane %v4191_v42, 4  ;;  %v7521_v51 = vrot.slane %v4260_v53, 9  ;;  %v4414_v50 = vsel %vm10251_vm9, %v4412_v13, %v4413_v20  ;;  %v4215_v5 = vor.u32 %v4214_v39, %v11696_v45  ;;  %v11719_v42 = vld [vmem:[#allocation2 + $0x18] sm:$0xf]  ;;  %v11723_v39 = vld [vmem:[#allocation2 + $0xc8] sm:$0x1] }
 0x49c   : > { %v8078_v31 = vpop.f32.mrb[68].mxu1  ;;  %v4225_v21 = vrot.slane %v4223_v24, 4  ;;  %v4236_v40 = vshrl.u32 %v11297_v7, 16  ;;  %v4196_v27 = vrot.slane %v4194_v47, 5  ;;  %v4228_v32 = vrot.slane %v4226_v62, 5 }
 0x49d   : > { %v8079_v1 = vpop.f32.mrb[69].mxu1  ;;  %v4187_v52 = vsel %vm10239_vm6, %v4182_v63, %v11676_v58  ;;  %v4411_v36 = vsel %vm10251_vm9, %v7521_v51, %v4410_v43  ;;  %v4232_v34 = vshll.u32 %v11297_v7, 16  ;;  %v4206_v47 = vrot.slane %v4205_v33, 4  ;;  %v4261_v63 = vld [vmem:[#allocation2 + $0xc0] sm:$0xe] }
 0x49e   : > { %v8080_v61 = vadd.f32 %v8079_v1, %v8078_v31  ;;  %v8081_v8 = vpop.f32.mrb[70].mxu1  ;;  %v11711_v31 = vld [vmem:[#allocation2 + $0x1c] sm:$0xf]  ;;  %v4197_v29 = vsel %vm10239_vm6, %v4192_v41, %v4196_v27  ;;  %v7633_v1 = vcombine.low %v4411_v36, %v4414_v50  ;;  %v4220_v13 = vrot.slane %v4218_v38, 5  ;;  %v11738_v50 = vld [vmem:[#allocation2 + $0x24] sm:$0xf] }
 0x49f   : > { %v8082_v18 = vpop.f32.mrb[71].mxu1  ;;  %v4481_v58 = vshll.u32 %v11711_v31, 16  ;;  %v4485_v43 = vshrl.u32 %v11711_v31, 16  ;;  %v6289_v7 = vadd.f32 %v11244_v28, %v11653_v59  ;;  %v4472_v53 = vshrl.u32 %v11719_v42, 16 }
 0x4a0   : > { %v11700_v37 = vadd.f32 %v8080_v61, %v6281_v11  ;;  %v8083_v57 = vadd.f32 %v8082_v18, %v8081_v8  ;;  %v4216_v11 = vrot.slane %v4215_v5, 4  ;;  %v4419_v61 = vrot.slane %v4417_v60, 4 }
 0x4a1   : > { %6689 = vmatmul.mubr.bf16.gmra.mrb[176].mxu1 %v7615_v22  ;;  %v4475_v18 = vshll.u32 %v11719_v42, 16  ;;  %v7616_v20 = vcombine.low %v4187_v52, %v4197_v29  ;;  %v4420_v33 = vrot.slane %v11723_v39, 5  ;;  %v4229_v38 = vor.u32 %v4228_v32, %v4225_v21 }
 0x4a2   : > { %v11709_v17 = vadd.f32 %v8083_v57, %v6284_v48  ;;  %6696 = vmatprep.mubr.bf16.mxu1 %v7632_v0  ;;  %v11732_v48 = vrot.slane %v4232_v34, 5  ;;  %v6292_v41 = vadd.f32 %v11248_v15, %v11653_v59  ;;  %v4238_v51 = vrot.slane %v4236_v40, 4 }
 0x4a3   : > { %v7522_v5 = vrot.slane %v4261_v63, 9  ;;  %v4421_v27 = vsel %vm10251_vm9, %v4419_v61, %v4420_v33  ;;  %v11742_v52 = vrot.slane %v4481_v58, 5  ;;  %v4487_v36 = vrot.slane %v4485_v43, 4 }
 0x4a4   : > { %v8084_v24 = vpop.f32.mrb[72].mxu1  ;;  %v4221_v32 = vsel %vm10239_vm6, %v4216_v11, %v4220_v13  ;;  %v4474_v34 = vrot.slane %v4472_v53, 4  ;;  %v4477_v15 = vrot.slane %v4475_v18, 5  ;;  %v4496_v40 = vshrl.u32 %v11738_v50, 16 }
 0x4a5   : > { %v8085_v62 = vpop.f32.mrb[73].mxu1  ;;  %v4499_v29 = vshll.u32 %v11738_v50, 16  ;;  %v4418_v13 = vsel %vm10251_vm9, %v7522_v5, %v4417_v60  ;;  %v4230_v11 = vrot.slane %v4229_v38, 4  ;;  %v4242_v53 = vshll.u32 %v11723_v39, 16 }
 0x4a6   : > { %v8086_v8 = vadd.f32 %v8085_v62, %v8084_v24  ;;  %v8087_v0 = vpop.f32.mrb[74].mxu1  ;;  %v4455_v24 = vld [vmem:[#allocation2 + $0x20] sm:$0x1]  ;;  %v11750_v62 = vld [vmem:[#allocation2 + $0x28] sm:$0xf]  ;;  %v7634_v63 = vcombine.low %v4418_v13, %v4421_v27  ;;  %v4488_v18 = vor.u32 %v4487_v36, %v11742_v52  ;;  %v6300_v39 = vadd.f32 %v11276_v49, %v11653_v59 }
 0x4a7   : > { %v8088_v22 = vpop.f32.mrb[75].mxu1  ;;  %v4505_v61 = vshll.u32 %v11750_v62, 16  ;;  %v4509_v58 = vshrl.u32 %v11750_v62, 16  ;;  %v4501_v60 = vrot.slane %v4499_v29, 5  ;;  %v4235_v49 = vsel %vm10239_vm6, %v4230_v11, %v11732_v48 }
 0x4a8   : > { %v11734_v57 = vadd.f32 %v8086_v8, %v6289_v7  ;;  %v8089_v28 = vadd.f32 %v8088_v22, %v8087_v0  ;;  %v4239_v7 = vor.u32 %v4238_v51, %v11732_v48  ;;  %v6297_v22 = vadd.f32 %v11274_v12, %v11653_v59 }
 0x4a9   : > { %6697 = vmatmul.mubr.bf16.gmra.mrb[180].mxu1 %v7616_v20  ;;  %v11764_v38 = vrot.slane %v4505_v61, 5  ;;  %v4511_v51 = vrot.slane %v4509_v58, 4  ;;  %v11775_v58 = vld [vmem:[#allocation2 + $0x30] sm:$0xf] }
 0x4aa   : > { %v11744_v21 = vadd.f32 %v8089_v28, %v6292_v41  ;;  %6704 = vmatprep.mubr.bf16.mxu1 %v7633_v1  ;;  %v4211_v1 = vsel %vm10239_vm6, %v4206_v47, %v11696_v45  ;;  %v4478_v41 = vor.u32 %v4477_v15, %v4474_v34  ;;  %v4491_v45 = vshll.u32 %v4455_v24, 16  ;;  %v11772_v15 = vld [vmem:[#allocation2 + $0x34] sm:$0xf] }
 0x4ab   : > { %v7617_v0 = vcombine.low %v4211_v1, %v4221_v32  ;;  %v4498_v28 = vrot.slane %v4496_v40, 4  ;;  %v4240_v36 = vrot.slane %v4239_v7, 4  ;;  %v4489_v32 = vrot.slane %v4488_v18, 4 }
 0x4ac   : > { %v8090_v43 = vpop.f32.mrb[76].mxu1  ;;  %v4244_v34 = vrot.slane %v4242_v53, 5  ;;  %v4479_v24 = vrot.slane %v4478_v41, 4  ;;  %v4493_v40 = vrot.slane %v4491_v45, 5  ;;  %v4512_v61 = vor.u32 %v4511_v51, %v11764_v38 }
 0x4ad   : > { %v8091_v8 = vpop.f32.mrb[77].mxu1  ;;  %v4502_v29 = vor.u32 %v4501_v60, %v4498_v28  ;;  %v4533_v53 = vshrl.u32 %v11772_v15, 16  ;;  %v6305_v18 = vadd.f32 %v11304_v10, %v11653_v59  ;;  %v4520_v48 = vshrl.u32 %v11775_v58, 16 }
 0x4ae   : > { %v8092_v20 = vadd.f32 %v8091_v8, %v8090_v43  ;;  %v8093_v33 = vpop.f32.mrb[78].mxu1  ;;  %v4245_v1 = vsel %vm10239_vm6, %v4240_v36, %v4244_v34  ;;  %v4494_v7 = vsel %vm10239_vm6, %v4489_v32, %v4493_v40  ;;  %v9360_v8 = vld [vmem:[#allocation2 + $0x2c] sm:$0x1]  ;;  %v4523_v11 = vshll.u32 %v11775_v58, 16  ;;  %v11799_v34 = vld [vmem:[#allocation2 + $0x3c] sm:$0xf] }
 0x4af   : > { %v8094_v47 = vpop.f32.mrb[79].mxu1  ;;  %v7618_v41 = vcombine.low %v4235_v49, %v4245_v1  ;;  %v4484_v45 = vsel %vm10239_vm6, %v4479_v24, %v11742_v52  ;;  %v4513_v28 = vrot.slane %v4512_v61, 4  ;;  %v6308_v51 = vadd.f32 %v11309_v19, %v11653_v59  ;;  %v11803_v52 = vld [vmem:[#allocation2 + $0x38] sm:$0x1]  ;;  %v11812_v49 = vld [vmem:[#allocation2 + $0xd4] sm:$0x1] }
 0x4b0   : > { %v11766_v5 = vadd.f32 %v8092_v20, %v6297_v22  ;;  %v8095_v27 = vadd.f32 %v8094_v47, %v8093_v33  ;;  %v4503_v47 = vrot.slane %v4502_v29, 4  ;;  %v4535_v32 = vrot.slane %v4533_v53, 4  ;;  %v4870_v1 = vld [vmem:[#allocation2 + $0xcc] sm:$0xe] }
 0x4b1   : > { %6705 = vmatmul.mubr.bf16.gmra.mrb[184].mxu1 %v7617_v0  ;;  %v4515_v0 = vshll.u32 %v9360_v8, 16  ;;  %v4522_v24 = vrot.slane %v4520_v48, 4  ;;  %v4525_v29 = vrot.slane %v4523_v11, 5  ;;  %v7538_v8 = vrot.slane %v4870_v1, 9 }
 0x4b2   : > { %v11770_v12 = vadd.f32 %v8095_v27, %v6300_v39  ;;  %6712 = vmatprep.mubr.bf16.mxu1 %v7634_v63  ;;  %v4529_v63 = vshll.u32 %v11772_v15, 16  ;;  %v7651_v39 = vcombine.low %v4484_v45, %v4494_v7  ;;  %v4508_v19 = vsel %vm10239_vm6, %v4503_v47, %v11764_v38 }
 0x4b3   : > { %v4517_v27 = vrot.slane %v4515_v0, 5  ;;  %v4544_v7 = vshrl.u32 %v11799_v34, 16  ;;  %v4547_v38 = vshll.u32 %v11799_v34, 16  ;;  %v6313_v11 = vadd.f32 %v11334_v23, %v11653_v59 }
 0x4b4   : > { %v8096_v43 = vpop.f32.mrb[80].mxu1  ;;  %v11797_v36 = vrot.slane %v4529_v63, 5  ;;  %v5029_v63 = vrot.slane %v11812_v49, 5  ;;  %v6316_v1 = vadd.f32 %v11354_v9, %v11653_v59 }
 0x4b5   : > { %v8097_v13 = vpop.f32.mrb[81].mxu1  ;;  %v4518_v61 = vsel %vm10239_vm6, %v4513_v28, %v4517_v27  ;;  %v4539_v27 = vshll.u32 %v11803_v52, 16 }
 0x4b6   : > { %v8098_v22 = vadd.f32 %v8097_v13, %v8096_v43  ;;  %v8099_v20 = vpop.f32.mrb[82].mxu1  ;;  %v11810_v43 = vld [vmem:[#allocation2 + $0xd0] sm:$0xf] }
 0x4b7   : > { %v8100_v33 = vpop.f32.mrb[83].mxu1  ;;  %v5026_v0 = vrot.slane %v11810_v43, 5 }
 0x4b8   : > { %v11793_v60 = vadd.f32 %v8098_v22, %v6305_v18  ;;  %v8101_v10 = vadd.f32 %v8100_v33, %v8099_v20  ;;  %v4536_v18 = vor.u32 %v4535_v32, %v11797_v36  ;;  %v11819_v22 = vld [vmem:[#allocation2 + $0x40] sm:$0xf]  ;;  %v9327_v32 = vld [vmem:[%s12583_s3 + $0x208] sm:$0xff]  }
 0x4b9   : > { %6713 = vmatmul.mubr.bf16.gmra.mrb[188].mxu1 %v7618_v41  ;;  %v4553_v20 = vshll.u32 %v11819_v22, 16  ;;  %v4557_v48 = vshrl.u32 %v11819_v22, 16  ;;  %v11827_v45 = vsel %vm10251_vm9, %v7538_v8, %v5026_v0  ;;  %v5028_v47 = vrot.slane %v5026_v0, 4 }
 0x4ba   : > { %v11801_v40 = vadd.f32 %v8101_v10, %v6308_v51  ;;  %6753 = vmatprep.mubr.bf16.mxu1 %v7651_v39  ;;  %12703 = vst [vmem:[#allocation6_spill] sm:$0xff] %v11827_v45  ;;  %v7635_v51 = vcombine.low %v11719_v42, %v11711_v31  ;;  %v7652_v10 = vcombine.low %v4508_v19, %v4518_v61  ;;  %v4537_v31 = vrot.slane %v4536_v18, 4  ;;  %v9330_v18 = vld [vmem:[%s12583_s3 + $0x210] sm:$0xff]   ;;  %v11949_v45 = vld [vmem:[#allocation2 + $0x6c] sm:$0xf] }
 0x4bb   : > { %v4526_v39 = vor.u32 %v4525_v29, %v4522_v24  ;;  %v11841_v8 = vsel %vm10251_vm9, %v5028_v47, %v5029_v63  ;;  %v11843_v42 = vrot.slane %v4553_v20, 5  ;;  %v4559_v24 = vrot.slane %v4557_v48, 4  ;;  %v11855_v48 = vld [vmem:[#allocation2 + $0x48] sm:$0xf] }
 0x4bc   : > { %v8102_v13 = vpop.f32.mrb[84].mxu1  ;;  %12704 = vst [vmem:[#allocation7_spill] sm:$0xff] %v11841_v8  ;;  %v4546_v61 = vrot.slane %v4544_v7, 4  ;;  %v4549_v0 = vrot.slane %v4547_v38, 5  ;;  %v4541_v63 = vrot.slane %v4539_v27, 5 }
 0x4bd   : > { %v8103_v53 = vpop.f32.mrb[85].mxu1  ;;  %v4527_v9 = vrot.slane %v4526_v39, 4  ;;  %v4560_v7 = vor.u32 %v4559_v24, %v11843_v42  ;;  %v4571_v24 = vshll.u32 %v11855_v48, 16 }
 0x4be   : > { %v8104_v33 = vadd.f32 %v8103_v53, %v8102_v13  ;;  %v8105_v41 = vpop.f32.mrb[86].mxu1  ;;  %v11849_v53 = vld [vmem:[#allocation2 + $0x4c] sm:$0xf] }
 0x4bf   : > { %v8106_v28 = vpop.f32.mrb[87].mxu1  ;;  %v4577_v38 = vshll.u32 %v11849_v53, 16  ;;  %v4532_v27 = vsel %vm10239_vm6, %v4527_v9, %v11797_v36  ;;  %v4561_v36 = vrot.slane %v4560_v7, 4  ;;  %v4573_v29 = vrot.slane %v4571_v24, 5  ;;  %v11887_v7 = vld [vmem:[#allocation2 + $0x54] sm:$0xf] }
 0x4c0   : > { %v11835_v23 = vadd.f32 %v8104_v33, %v6313_v11  ;;  %v8107_v13 = vadd.f32 %v8106_v28, %v8105_v41  ;;  %v4542_v33 = vsel %vm10239_vm6, %v4537_v31, %v4541_v63  ;;  %v6321_v41 = vadd.f32 %v11367_v26, %v11653_v59  ;;  %v9333_v26 = vld [vmem:[%s12583_s3 + $0x218] sm:$0xff]  }
 0x4c1   : > { %6754 = vmatmul.mubr.bf16.vlgmr.msra.gmra.mrb[192].mxu1 %v7635_v51  ;;  %v7636_v51 = vcombine.low %v11738_v50, %v11750_v62  ;;  %v4568_v31 = vshrl.u32 %v11855_v48, 16  ;;  %v6324_v50 = vadd.f32 %v11377_v54, %v11653_v59  ;;  %v9336_v54 = vld [vmem:[%s12583_s3 + $0x220] sm:$0xff]  }
 0x4c2   : > { %v11847_v19 = vadd.f32 %v8107_v13, %v6316_v1  ;;  %6761 = vmatprep.mubr.bf16.mxu1 %v7652_v10  ;;  %8775 = vmatpush3.bf16.msra.mxu1 %v11471_v25  ;;  %v4581_v25 = vshrl.u32 %v11849_v53, 16  ;;  %v4550_v10 = vor.u32 %v4549_v0, %v4546_v61  ;;  %v9362_v1 = vld [vmem:[#allocation2 + $0x44] sm:$0x1]  ;;  %v11878_v61 = vrot.slane %v4577_v38, 5 }
 0x4c3   : > { %8776 = vmatprep.subr.bf16.mxu1 %v9327_v32  ;;  %v4563_v13 = vshll.u32 %v9362_v1, 16  ;;  %v4570_v1 = vrot.slane %v4568_v31, 4 }
 0x4c4   : > { %v8108_v20 = vpop.f32.mrb[88].mxu1  ;;  %v4583_v0 = vrot.slane %v4581_v25, 4 }
 0x4c5   : > { %v8109_v11 = vpop.f32.mrb[89].mxu1 }
 0x4c6   : > { %v8110_v47 = vadd.f32 %v8109_v11, %v8108_v20  ;;  %v8111_v28 = vpop.f32.mrb[90].mxu1  ;;  %8777 = vmatpush3.bf16.msra.mxu1 %v9327_v32  ;;  %v7653_v32 = vcombine.low %v4532_v27, %v4542_v33  ;;  %v4551_v20 = vrot.slane %v4550_v10, 4  ;;  %v4565_v11 = vrot.slane %v4563_v13, 5  ;;  %v11885_v33 = vld [vmem:[#allocation2 + $0x50] sm:$0x1] }
 0x4c7   : > { %v8112_v39 = vpop.f32.mrb[91].mxu1  ;;  %8778 = vmatprep.subr.bf16.mxu1 %v9330_v18  ;;  %v6329_v10 = vadd.f32 %v11400_v35, %v11653_v59  ;;  %v7637_v13 = vcombine.low %v11775_v58, %v11772_v15  ;;  %v9339_v35 = vld [vmem:[%s12583_s3 + $0x228] sm:$0xff]   ;;  %v6332_v15 = vadd.f32 %v11410_v14, %v11653_v59  ;;  %v9341_v14 = vld [vmem:[%s12583_s3 + $0x230] sm:$0xff]  }
 0x4c8   : > { %v11874_v63 = vadd.f32 %v8110_v47, %v6321_v41  ;;  %v8113_v62 = vadd.f32 %v8112_v39, %v8111_v28  ;;  %v4566_v25 = vsel %vm10239_vm6, %v4561_v36, %v4565_v11  ;;  %v4584_v47 = vor.u32 %v4583_v0, %v11878_v61 }
 0x4c9   : > { %6762 = vmatmul.mubr.bf16.gmra.mrb[196].mxu1 %v7636_v51  ;;  %v4556_v31 = vsel %vm10239_vm6, %v4551_v20, %v11843_v42  ;;  %v4595_v36 = vshll.u32 %v11887_v7, 16 }
 0x4ca   : > { %v11880_v9 = vadd.f32 %v8113_v62, %v6324_v50  ;;  %6769 = vmatprep.mubr.bf16.mxu1 %v7653_v32  ;;  %8779 = vmatpush3.bf16.msra.mxu1 %v9330_v18  ;;  %v11892_v18 = vld [vmem:[#allocation2 + $0x58] sm:$0xf]  ;;  %v4574_v50 = vor.u32 %v4573_v29, %v4570_v1  ;;  %v4587_v62 = vshll.u32 %v11885_v33, 16  ;;  %v4592_v32 = vshrl.u32 %v11887_v7, 16 }
 0x4cb   : > { %8780 = vmatprep.subr.bf16.mxu1 %v9333_v26  ;;  %v4601_v28 = vshll.u32 %v11892_v18, 16  ;;  %v4605_v51 = vshrl.u32 %v11892_v18, 16  ;;  %v7654_v42 = vcombine.low %v4556_v31, %v4566_v25  ;;  %v4585_v29 = vrot.slane %v4584_v47, 4  ;;  %v11920_v25 = vld [vmem:[#allocation2 + $0x60] sm:$0xf] }
 0x4cc   : > { %v8114_v41 = vpop.f32.mrb[92].mxu1  ;;  %v4575_v1 = vrot.slane %v4574_v50, 4  ;;  %v4597_v8 = vrot.slane %v4595_v36, 5  ;;  %v7638_v50 = vcombine.low %v11799_v34, %v11819_v22  ;;  %v12705_v34 = vld [vmem:[#allocation10_spill] sm:$0xff] }
 0x4cd   : > { %v8115_v38 = vpop.f32.mrb[93].mxu1  ;;  %v4607_v20 = vrot.slane %v4605_v51, 4  ;;  %v6340_v22 = vadd.f32 %v12705_v34, %v11653_v59 }
 0x4ce   : > { %v8116_v39 = vadd.f32 %v8115_v38, %v8114_v41  ;;  %v8117_v27 = vpop.f32.mrb[94].mxu1  ;;  %8781 = vmatpush3.bf16.msra.mxu1 %v9333_v26  ;;  %v11913_v26 = vrot.slane %v4601_v28, 5  ;;  %v4589_v41 = vrot.slane %v4587_v62, 5  ;;  %v4594_v38 = vrot.slane %v4592_v32, 4  ;;  %v9365_v62 = vld [vmem:[#allocation2 + $0x5c] sm:$0x1] }
 0x4cf   : > { %v8118_v24 = vpop.f32.mrb[95].mxu1  ;;  %8782 = vmatprep.subr.bf16.mxu1 %v9336_v54  ;;  %v4611_v32 = vshll.u32 %v9365_v62, 16 }
 0x4d0   : > { %v11909_v0 = vadd.f32 %v8116_v39, %v6329_v10  ;;  %v8119_v58 = vadd.f32 %v8118_v24, %v8117_v27  ;;  %v4590_v28 = vsel %vm10239_vm6, %v4585_v29, %v4589_v41  ;;  %v4608_v51 = vor.u32 %v4607_v20, %v11913_v26  ;;  %v11926_v39 = vld [vmem:[#allocation2 + $0x64] sm:$0xf] }
 0x4d1   : > { %6770 = vmatmul.mubr.bf16.gmra.mrb[200].mxu1 %v7637_v13  ;;  %v4629_v27 = vshrl.u32 %v11926_v39, 16  ;;  %v6337_v13 = vadd.f32 %v11423_v30, %v11653_v59  ;;  %v9342_v30 = vld [vmem:[%s12583_s3 + $0x238] sm:$0xff]  }
 0x4d2   : > { %v11915_v11 = vadd.f32 %v8119_v58, %v6332_v15  ;;  %6777 = vmatprep.mubr.bf16.mxu1 %v7654_v42  ;;  %8783 = vmatpush3.bf16.msra.mxu1 %v9336_v54  ;;  %v4625_v54 = vshll.u32 %v11492_v6, 16  ;;  %v4580_v6 = vsel %vm10239_vm6, %v4575_v1, %v11878_v61  ;;  %v4598_v15 = vor.u32 %v4597_v8, %v4594_v38 }
 0x4d3   : > { %8784 = vmatprep.subr.bf16.mxu1 %v9339_v35  ;;  %v4616_v58 = vshrl.u32 %v11920_v25, 16  ;;  %v4619_v42 = vshll.u32 %v11920_v25, 16  ;;  %v7655_v20 = vcombine.low %v4580_v6, %v4590_v28  ;;  %v4609_v41 = vrot.slane %v4608_v51, 4 }
 0x4d4   : > { %v8120_v10 = vpop.f32.mrb[96].mxu1  ;;  %v11945_v61 = vrot.slane %v4625_v54, 5  ;;  %v4631_v8 = vrot.slane %v4629_v27, 4  ;;  %v4599_v38 = vrot.slane %v4598_v15, 4  ;;  %v11954_v54 = vld [vmem:[#allocation2 + $0x70] sm:$0xf] }
 0x4d5   : > { %v8121_v47 = vpop.f32.mrb[97].mxu1  ;;  %v4621_v62 = vrot.slane %v4619_v42, 5  ;;  %v4649_v27 = vshll.u32 %v11954_v54, 16  ;;  %v4640_v6 = vshrl.u32 %v11949_v45, 16  ;;  %v4643_v15 = vshll.u32 %v11949_v45, 16 }
 0x4d6   : > { %v8122_v31 = vadd.f32 %v8121_v47, %v8120_v10  ;;  %v8123_v24 = vpop.f32.mrb[98].mxu1  ;;  %8785 = vmatpush3.bf16.msra.mxu1 %v9339_v35  ;;  %v4613_v10 = vrot.slane %v4611_v32, 5  ;;  %v4618_v47 = vrot.slane %v4616_v58, 4  ;;  %v4632_v51 = vor.u32 %v4631_v8, %v11945_v61 }
 0x4d7   : > { %v8124_v36 = vpop.f32.mrb[99].mxu1  ;;  %8786 = vmatprep.subr.bf16.mxu1 %v9341_v14  ;;  %v7639_v42 = vcombine.low %v11855_v48, %v11849_v53  ;;  %v4604_v34 = vsel %vm10239_vm6, %v4599_v38, %v11913_v26  ;;  %v4645_v26 = vrot.slane %v4643_v15, 5 }
 0x4d8   : > { %v11943_v29 = vadd.f32 %v8122_v31, %v6337_v13  ;;  %v8125_v35 = vadd.f32 %v8124_v36, %v8123_v24  ;;  %v4614_v28 = vsel %vm10239_vm6, %v4609_v41, %v4613_v10  ;;  %v12708_v24 = vld [vmem:[#allocation11_spill] sm:$0xff]  ;;  %v12709_v41 = vld [vmem:[#allocation12_spill] sm:$0xff] }
 0x4d9   : > { %6778 = vmatmul.mubr.bf16.gmra.mrb[204].mxu1 %v7638_v50  ;;  %v6345_v50 = vadd.f32 %v12708_v24, %v11653_v59  ;;  %v6348_v8 = vadd.f32 %v12709_v41, %v11653_v59  ;;  %v11971_v24 = vrot.slane %v4649_v27, 5 }
 0x4da   : > { %12706 = vst [vmem:[#allocation10_spill] sm:$0xff] %v11943_v29  ;;  %v11947_v1 = vadd.f32 %v8125_v35, %v6340_v22  ;;  %6785 = vmatprep.mubr.bf16.mxu1 %v7655_v20  ;;  %8787 = vmatpush3.bf16.msra.mxu1 %v9341_v14  ;;  %v4653_v14 = vshrl.u32 %v11954_v54, 16  ;;  %v4622_v22 = vor.u32 %v4621_v62, %v4618_v47  ;;  %v9367_v35 = vld [vmem:[#allocation2 + $0x68] sm:$0x1]  ;;  %v4642_v29 = vrot.slane %v4640_v6, 4 }
 0x4db   : > { %8788 = vmatprep.subr.bf16.mxu1 %v9342_v30  ;;  %v4635_v20 = vshll.u32 %v9367_v35, 16  ;;  %v11975_v35 = vld [vmem:[#allocation2 + $0x78] sm:$0xf] }
 0x4dc   : > { %12707 = vst [vmem:[#allocation43_spill] sm:$0xff] %v11947_v1  ;;  %v8126_v13 = vpop.f32.mrb[100].mxu1  ;;  %v4655_v1 = vrot.slane %v4653_v14, 4  ;;  %v4623_v38 = vrot.slane %v4622_v22, 4  ;;  %v9369_v22 = vld [vmem:[#allocation2 + $0x74] sm:$0x1] }
 0x4dd   : > { %v8127_v31 = vpop.f32.mrb[101].mxu1  ;;  %v4637_v47 = vrot.slane %v4635_v20, 5  ;;  %v4659_v20 = vshll.u32 %v9369_v22, 16 }
 0x4de   : > { %v8128_v32 = vadd.f32 %v8127_v31, %v8126_v13  ;;  %v8129_v36 = vpop.f32.mrb[102].mxu1  ;;  %8789 = vmatpush3.bf16.msra.mxu1 %v9342_v30  ;;  %v7656_v31 = vcombine.low %v4604_v34, %v4614_v28  ;;  %v4633_v30 = vrot.slane %v4632_v51, 4  ;;  %v4656_v28 = vor.u32 %v4655_v1, %v11971_v24  ;;  %v11980_v51 = vld [vmem:[#allocation2 + $0x7c] sm:$0xf] }
 0x4df   : > { %v8130_v58 = vpop.f32.mrb[103].mxu1  ;;  %v4673_v27 = vshll.u32 %v11980_v51, 16  ;;  %v4677_v14 = vshrl.u32 %v11980_v51, 16  ;;  %v4628_v1 = vsel %vm10239_vm6, %v4623_v38, %v11945_v61  ;;  %v4661_v38 = vrot.slane %v4659_v20, 5 }
 0x4e0   : > { %v11969_v10 = vadd.f32 %v8128_v32, %v6345_v50  ;;  %v8131_v13 = vadd.f32 %v8130_v58, %v8129_v36  ;;  %v4638_v50 = vsel %vm10239_vm6, %v4633_v30, %v4637_v47  ;;  %v12712_v32 = vld [vmem:[#allocation13_spill] sm:$0xff]  ;;  %v7640_v58 = vcombine.low %v11887_v7, %v11892_v18 }
 0x4e1   : > { %6786 = vmatmul.mubr.bf16.gmra.mrb[208].mxu1 %v7639_v42  ;;  %v6353_v36 = vadd.f32 %v12712_v32, %v11653_v59  ;;  %v4646_v42 = vor.u32 %v4645_v26, %v4642_v29  ;;  %v4657_v7 = vrot.slane %v4656_v28, 4  ;;  %v11997_v18 = vrot.slane %v4673_v27, 5  ;;  %v12006_v28 = vld [vmem:[#allocation2 + $0x88] sm:$0xf] }
 0x4e2   : > { %12710 = vst [vmem:[#allocation11_spill] sm:$0xff] %v11969_v10  ;;  %v11973_v48 = vadd.f32 %v8131_v13, %v6348_v8  ;;  %6793 = vmatprep.mubr.bf16.mxu1 %v7656_v31  ;;  %v4664_v8 = vshrl.u32 %v11975_v35, 16  ;;  %v4667_v13 = vshll.u32 %v11975_v35, 16  ;;  %v12713_v31 = vld [vmem:[#allocation26_spill] sm:$0xff]  ;;  %v4679_v29 = vrot.slane %v4677_v14, 4 }
 0x4e3   : > { %v6356_v30 = vadd.f32 %v12713_v31, %v11653_v59  ;;  %v4647_v61 = vrot.slane %v4646_v42, 4  ;;  %v12001_v10 = vld [vmem:[#allocation2 + $0x84] sm:$0xf]  ;;  %v4697_v27 = vshll.u32 %v12006_v28, 16  ;;  %v4701_v14 = vshrl.u32 %v12006_v28, 16 }
 0x4e4   : > { %12711 = vst [vmem:[#allocation12_spill] sm:$0xff] %v11973_v48  ;;  %v8132_v62 = vpop.f32.mrb[104].mxu1  ;;  %v4666_v32 = vrot.slane %v4664_v8, 4  ;;  %v4669_v22 = vrot.slane %v4667_v13, 5  ;;  %v9371_v13 = vld [vmem:[#allocation2 + $0x80] sm:$0x1] }
 0x4e5   : > { %v8133_v41 = vpop.f32.mrb[105].mxu1 }
 0x4e6   : > { %v8134_v6 = vadd.f32 %v8133_v41, %v8132_v62  ;;  %v8135_v15 = vpop.f32.mrb[106].mxu1  ;;  %v7657_v41 = vcombine.low %v4628_v1, %v4638_v50  ;;  %v4680_v50 = vor.u32 %v4679_v29, %v11997_v18  ;;  %v4652_v1 = vsel %vm10239_vm6, %v4647_v61, %v11971_v24 }
 0x4e7   : > { %v8136_v34 = vpop.f32.mrb[107].mxu1  ;;  %v4670_v8 = vor.u32 %v4669_v22, %v4666_v32  ;;  %v4703_v24 = vrot.slane %v4701_v14, 4 }
 0x4e8   : > { %v11995_v47 = vadd.f32 %v8134_v6, %v6353_v36  ;;  %v8137_v62 = vadd.f32 %v8136_v34, %v8135_v15  ;;  %v4662_v36 = vsel %vm10239_vm6, %v4657_v7, %v4661_v38  ;;  %v12715_v6 = vld [vmem:[#allocation27_spill] sm:$0xff]  ;;  %v7641_v34 = vcombine.low %v11920_v25, %v11926_v39 }
 0x4e9   : > { %6794 = vmatmul.mubr.bf16.gmra.mrb[212].mxu1 %v7640_v58  ;;  %v6361_v15 = vadd.f32 %v12715_v6, %v11653_v59  ;;  %v6364_v7 = vadd.f32 %v11513_v4, %v11653_v59  ;;  %v7658_v38 = vcombine.low %v4652_v1, %v4662_v36  ;;  %v4681_v25 = vrot.slane %v4680_v50, 4  ;;  %v12032_v50 = vld [vmem:[#allocation2 + $0x94] sm:$0xf] }
 0x4ea   : > { %v11999_v26 = vadd.f32 %v8137_v62, %v6356_v30  ;;  %6801 = vmatprep.mubr.bf16.mxu1 %v7657_v41  ;;  %v4683_v30 = vshll.u32 %v9371_v13, 16  ;;  %v4688_v62 = vshrl.u32 %v12001_v10, 16  ;;  %v4691_v41 = vshll.u32 %v12001_v10, 16  ;;  %v12027_v13 = vld [vmem:[#allocation2 + $0x90] sm:$0xf] }
 0x4eb   : > { %v12023_v39 = vrot.slane %v4697_v27, 5  ;;  %v4671_v32 = vrot.slane %v4670_v8, 4  ;;  %v4721_v27 = vshll.u32 %v12032_v50, 16  ;;  %v4725_v14 = vshrl.u32 %v12032_v50, 16 }
 0x4ec   : > { %12714 = vst [vmem:[#allocation13_spill] sm:$0xff] %v11999_v26  ;;  %v8138_v48 = vpop.f32.mrb[108].mxu1  ;;  %v4685_v22 = vrot.slane %v4683_v30, 5  ;;  %v4693_v6 = vrot.slane %v4691_v41, 5  ;;  %v4712_v1 = vshrl.u32 %v12027_v13, 16  ;;  %v7642_v30 = vcombine.low %v11949_v45, %v11954_v54 }
 0x4ed   : > { %v8139_v31 = vpop.f32.mrb[109].mxu1  ;;  %v4704_v36 = vor.u32 %v4703_v24, %v12023_v39 }
 0x4ee   : > { %v8140_v58 = vadd.f32 %v8139_v31, %v8138_v48  ;;  %v8141_v42 = vpop.f32.mrb[110].mxu1  ;;  %v4690_v31 = vrot.slane %v4688_v62, 4  ;;  %v4676_v62 = vsel %vm10239_vm6, %v4671_v32, %v11997_v18  ;;  %v4714_v54 = vrot.slane %v4712_v1, 4 }
 0x4ef   : > { %v8142_v20 = vpop.f32.mrb[111].mxu1  ;;  %v4705_v24 = vrot.slane %v4704_v36, 4  ;;  %v12058_v36 = vld [vmem:[#allocation2 + $0xa0] sm:$0xf] }
 0x4f0   : > { %v12021_v48 = vadd.f32 %v8140_v58, %v6361_v15  ;;  %v8143_v29 = vadd.f32 %v8142_v20, %v8141_v42  ;;  %v4686_v15 = vsel %vm10239_vm6, %v4681_v25, %v4685_v22  ;;  %v6369_v58 = vadd.f32 %v11547_v56, %v11653_v59 }
 0x4f1   : > { %6802 = vmatmul.mubr.bf16.gmra.mrb[216].mxu1 %v7641_v34  ;;  %v4715_v20 = vshll.u32 %v12027_v13, 16  ;;  %v4694_v41 = vor.u32 %v4693_v6, %v4690_v31  ;;  %v6372_v56 = vadd.f32 %v11563_v3, %v11653_v59  ;;  %v7659_v25 = vcombine.low %v4676_v62, %v4686_v15 }
 0x4f2   : > { %v12025_v61 = vadd.f32 %v8143_v29, %v6364_v7  ;;  %6809 = vmatprep.mubr.bf16.mxu1 %v7658_v38  ;;  %v9373_v7 = vld [vmem:[#allocation2 + $0x8c] sm:$0x1]  ;;  %v12049_v22 = vrot.slane %v4721_v27, 5  ;;  %v4745_v27 = vshll.u32 %v12058_v36, 16 }
 0x4f3   : > { %v4707_v29 = vshll.u32 %v9373_v7, 16  ;;  %v4717_v18 = vrot.slane %v4715_v20, 5  ;;  %v4695_v32 = vrot.slane %v4694_v41, 4  ;;  %v12053_v7 = vld [vmem:[#allocation2 + $0x9c] sm:$0xf]  ;;  %v7643_v20 = vcombine.low %v11975_v35, %v11980_v51 }
 0x4f4   : > { %v8144_v26 = vpop.f32.mrb[112].mxu1  ;;  %v9375_v41 = vld [vmem:[#allocation2 + $0x98] sm:$0x1]  ;;  %v12075_v51 = vrot.slane %v4745_v27, 5 }
 0x4f5   : > { %v8145_v4 = vpop.f32.mrb[113].mxu1  ;;  %v4709_v31 = vrot.slane %v4707_v29, 5  ;;  %v4700_v62 = vsel %vm10239_vm6, %v4695_v32, %v12023_v39  ;;  %v4731_v29 = vshll.u32 %v9375_v41, 16 }
 0x4f6   : > { %v8146_v42 = vadd.f32 %v8145_v4, %v8144_v26  ;;  %v8147_v34 = vpop.f32.mrb[114].mxu1  ;;  %v4727_v4 = vrot.slane %v4725_v14, 4  ;;  %v4749_v14 = vshrl.u32 %v12058_v36, 16 }
 0x4f7   : > { %v8148_v8 = vpop.f32.mrb[115].mxu1  ;;  %v4733_v32 = vrot.slane %v4731_v29, 5 }
 0x4f8   : > { %v12047_v26 = vadd.f32 %v8146_v42, %v6369_v58  ;;  %v8149_v38 = vadd.f32 %v8148_v8, %v8147_v34  ;;  %v4710_v58 = vsel %vm10239_vm6, %v4705_v24, %v4709_v31  ;;  %v4728_v15 = vor.u32 %v4727_v4, %v12049_v22 }
 0x4f9   : > { %6810 = vmatmul.mubr.bf16.gmra.mrb[220].mxu1 %v7642_v30  ;;  %v6377_v42 = vadd.f32 %v11590_v16, %v11653_v59  ;;  %v4718_v8 = vor.u32 %v4717_v18, %v4714_v54  ;;  %v7660_v31 = vcombine.low %v4700_v62, %v4710_v58  ;;  %v4751_v54 = vrot.slane %v4749_v14, 4 }
 0x4fa   : > { %12716 = vst [vmem:[#allocation26_spill] sm:$0xff] %v12047_v26  ;;  %v12051_v45 = vadd.f32 %v8149_v38, %v6372_v56  ;;  %6817 = vmatprep.mubr.bf16.mxu1 %v7659_v25  ;;  %v4736_v56 = vshrl.u32 %v12053_v7, 16  ;;  %v4739_v38 = vshll.u32 %v12053_v7, 16  ;;  %v12718_v25 = vld [vmem:[#allocation38_spill] sm:$0xff]  ;;  %v4729_v35 = vrot.slane %v4728_v15, 4 }
 0x4fb   : > { %v6380_v16 = vadd.f32 %v12718_v25, %v11653_v59  ;;  %v4719_v39 = vrot.slane %v4718_v8, 4  ;;  %v4752_v58 = vor.u32 %v4751_v54, %v12075_v51  ;;  %v12084_v15 = vld [vmem:[#allocation2 + $0xac] sm:$0xf]  ;;  %v7644_v62 = vcombine.low %v12001_v10, %v12006_v28  ;;  %v9378_v25 = vld [vmem:[#allocation2 + $0xa4] sm:$0x1] }
 0x4fc   : > { %12717 = vst [vmem:[#allocation27_spill] sm:$0xff] %v12051_v45  ;;  %v8150_v6 = vpop.f32.mrb[116].mxu1  ;;  %v12079_v45 = vld [vmem:[#allocation2 + $0xa8] sm:$0xf]  ;;  %v4769_v27 = vshll.u32 %v12084_v15, 16  ;;  %v4773_v14 = vshrl.u32 %v12084_v15, 16 }
 0x4fd   : > { %v8151_v3 = vpop.f32.mrb[117].mxu1  ;;  %v4724_v29 = vsel %vm10239_vm6, %v4719_v39, %v12049_v22  ;;  %v4753_v10 = vrot.slane %v4752_v58, 4 }
 0x4fe   : > { %v8152_v34 = vadd.f32 %v8151_v3, %v8150_v6  ;;  %v8153_v1 = vpop.f32.mrb[118].mxu1  ;;  %v4738_v6 = vrot.slane %v4736_v56, 4  ;;  %v4741_v3 = vrot.slane %v4739_v38, 5  ;;  %v4771_v28 = vrot.slane %v4769_v27, 5 }
 0x4ff   : > { %v8154_v30 = vpop.f32.mrb[119].mxu1 }
 0x500   : > { %v12073_v24 = vadd.f32 %v8152_v34, %v6377_v42  ;;  %v8155_v4 = vadd.f32 %v8154_v30, %v8153_v1  ;;  %v4734_v42 = vsel %vm10239_vm6, %v4729_v35, %v4733_v32  ;;  %v9377_v34 = vld [vmem:[%s12584_s4] ss:$0 sm:$0xff]  ;;  %v12721_v1 = vld [vmem:[#allocation39_spill] sm:$0xff]  ;;  %v4742_v38 = vor.u32 %v4741_v3, %v4738_v6  ;;  %v12722_v35 = vld [vmem:[#allocation40_spill] sm:$0xff] }
 0x501   : > { %6818 = vmatmul.mubr.bf16.gmra.mrb[224].mxu1 %v7643_v20  ;;  %v6385_v20 = vadd.f32 %v9377_v34, %v12721_v1  ;;  %v6388_v54 = vadd.f32 %v9377_v34, %v12722_v35  ;;  %v4775_v1 = vrot.slane %v4773_v14, 4  ;;  %v12725_v14 = vld [vmem:[#allocation41_spill] sm:$0xff] }
 0x502   : > { %12719 = vst [vmem:[#allocation38_spill] sm:$0xff] %v12073_v24  ;;  %v12077_v18 = vadd.f32 %v8155_v4, %v6380_v16  ;;  %6825 = vmatprep.mubr.bf16.mxu1 %v7660_v31  ;;  %v4755_v16 = vshll.u32 %v9378_v25, 16  ;;  %v4760_v4 = vshrl.u32 %v12079_v45, 16  ;;  %v4763_v31 = vshll.u32 %v12079_v45, 16  ;;  %v12104_v25 = vld [vmem:[#allocation2 + $0xb4] sm:$0xf] }
 0x503   : > { %v4743_v22 = vrot.slane %v4742_v38, 4  ;;  %v4787_v38 = vshll.u32 %v12104_v25, 16 }
 0x504   : > { %12720 = vst [vmem:[#allocation44_spill] sm:$0xff] %v12077_v18  ;;  %v8156_v41 = vpop.f32.mrb[120].mxu1  ;;  %v4757_v39 = vrot.slane %v4755_v16, 5  ;;  %v4762_v6 = vrot.slane %v4760_v4, 4  ;;  %v4765_v3 = vrot.slane %v4763_v31, 5  ;;  %v7645_v4 = vcombine.low %v12027_v13, %v12032_v50 }
 0x505   : > { %v8157_v59 = vpop.f32.mrb[121].mxu1  ;;  %v4748_v31 = vsel %vm10239_vm6, %v4743_v22, %v12075_v51  ;;  %v4789_v50 = vrot.slane %v4787_v38, 5 }
 0x506   : > { %v8158_v8 = vadd.f32 %v8157_v59, %v8156_v41  ;;  %v8159_v30 = vpop.f32.mrb[122].mxu1  ;;  %v7661_v59 = vcombine.low %v4724_v29, %v4734_v42  ;;  %v12108_v42 = vld [vmem:[#allocation2 + $0xb8] sm:$0xf]  ;;  %v4766_v35 = vor.u32 %v4765_v3, %v4762_v6  ;;  %v12127_v6 = vld [vmem:[#allocation2 + $0xc0] sm:$0xf] }
 0x507   : > { %v8160_v56 = vpop.f32.mrb[123].mxu1  ;;  %v4793_v58 = vshll.u32 %v12108_v42, 16  ;;  %v4797_v27 = vshrl.u32 %v12108_v42, 16 }
 0x508   : > { %v12100_v32 = vadd.f32 %v8158_v8, %v6385_v20  ;;  %v8161_v41 = vadd.f32 %v8160_v56, %v8159_v30  ;;  %v4758_v20 = vsel %vm10239_vm6, %v4753_v10, %v4757_v39  ;;  %v4776_v8 = vor.u32 %v4775_v1, %v4771_v28 }
 0x509   : > { %6826 = vmatmul.mubr.bf16.gmra.mrb[228].mxu1 %v7644_v62  ;;  %v6393_v30 = vadd.f32 %v9377_v34, %v12725_v14  ;;  %v4784_v56 = vshrl.u32 %v12104_v25, 16  ;;  %v12123_v14 = vrot.slane %v4793_v58, 5  ;;  %v4767_v51 = vrot.slane %v4766_v35, 4  ;;  %v12132_v58 = vld [vmem:[#allocation2 + $0xc4] sm:$0xf] }
 0x50a   : > { %12723 = vst [vmem:[#allocation39_spill] sm:$0xff] %v12100_v32  ;;  %v12102_v18 = vadd.f32 %v8161_v41, %v6388_v54  ;;  %6833 = vmatprep.mubr.bf16.mxu1 %v7661_v59  ;;  %v9380_v54 = vld [vmem:[#allocation2 + $0xb0] sm:$0x1]  ;;  %v12726_v59 = vld [vmem:[#allocation42_spill] sm:$0xff]  ;;  %v4777_v39 = vrot.slane %v4776_v8, 4 }
 0x50b   : > { %v4779_v41 = vshll.u32 %v9380_v54, 16  ;;  %v6396_v10 = vadd.f32 %v9377_v34, %v12726_v59  ;;  %v4786_v13 = vrot.slane %v4784_v56, 4  ;;  %v9381_v34 = vld [vmem:[#allocation2 + $0xbc] sm:$0x1]  ;;  %v7646_v54 = vcombine.low %v12053_v7, %v12058_v36 }
 0x50c   : > { %12724 = vst [vmem:[#allocation40_spill] sm:$0xff] %v12102_v18  ;;  %v8162_v24 = vpop.f32.mrb[124].mxu1  ;;  %v4799_v18 = vrot.slane %v4797_v27, 4  ;;  %v4817_v27 = vshll.u32 %v12132_v58, 16 }
 0x50d   : > { %v8163_v26 = vpop.f32.mrb[125].mxu1  ;;  %v4781_v22 = vrot.slane %v4779_v41, 5 }
 0x50e   : > { %v8164_v62 = vadd.f32 %v8163_v26, %v8162_v24  ;;  %v8165_v29 = vpop.f32.mrb[126].mxu1  ;;  %v7662_v24 = vcombine.low %v4748_v31, %v4758_v20  ;;  %v4800_v8 = vor.u32 %v4799_v18, %v12123_v14  ;;  %v4811_v31 = vshll.u32 %v12127_v6, 16 }
 0x50f   : > { %v8166_v16 = vpop.f32.mrb[127].mxu1  ;;  %v4782_v20 = vsel %vm10239_vm6, %v4777_v39, %v4781_v22  ;;  %v4772_v18 = vsel %vm10239_vm6, %v4767_v51, %v4771_v28  ;;  %v4841_v51 = vshll.u32 %v11810_v43, 16 }
 0x510   : > { %v12121_v1 = vadd.f32 %v8164_v62, %v6393_v30  ;;  %v8167_v26 = vadd.f32 %v8166_v16, %v8165_v29  ;;  %v4803_v30 = vshll.u32 %v9381_v34, 16  ;;  %v4821_v29 = vshrl.u32 %v12132_v58, 16 }
 0x511   : > { %6834 = vmatmul.mubr.bf16.gmra.mrb[232].mxu1 %v7645_v4  ;;  %v4790_v16 = vor.u32 %v4789_v50, %v4786_v13  ;;  %v4808_v4 = vshrl.u32 %v12127_v6, 16  ;;  %v4819_v13 = vrot.slane %v4817_v27, 5  ;;  %v4845_v34 = vshrl.u32 %v11810_v43, 16 }
 0x512   : > { %v12125_v32 = vadd.f32 %v8167_v26, %v6396_v10  ;;  %6841 = vmatprep.mubr.bf16.mxu1 %v7662_v24  ;;  %v7663_v10 = vcombine.low %v4772_v18, %v4782_v20  ;;  %v12145_v26 = vld [vmem:[#allocation2 + $0xcc] sm:$0xf]  ;;  %v4801_v24 = vrot.slane %v4800_v8, 4  ;;  %v4805_v39 = vrot.slane %v4803_v30, 5 }
 0x513   : > { %v4823_v50 = vrot.slane %v4821_v29, 4  ;;  %v4791_v7 = vrot.slane %v4790_v16, 4  ;;  %v4810_v36 = vrot.slane %v4808_v4, 4  ;;  %v4832_v28 = vshrl.u32 %v12145_v26, 16  ;;  %v9383_v16 = vld [vmem:[#allocation2 + $0xc8] sm:$0x1] }
 0x514   : > { %v8184_v3 = vpop.f32.mrb[128].mxu1  ;;  %v7647_v30 = vcombine.low %v12079_v45, %v12084_v15  ;;  %v4827_v4 = vshll.u32 %v9383_v16, 16  ;;  %v4843_v18 = vrot.slane %v4841_v51, 5  ;;  %v9384_v16 = vld [vmem:[#allocation2 + $0x1c] sm:$0xf] }
 0x515   : > { %v8185_v62 = vpop.f32.mrb[129].mxu1  ;;  %v4824_v8 = vor.u32 %v4823_v50, %v4819_v13 }
 0x516   : > { %v8186_v56 = vadd.f32 %v8185_v62, %v8184_v3  ;;  %v8187_v38 = vpop.f32.mrb[130].mxu1  ;;  %v4813_v3 = vrot.slane %v4811_v31, 5 }
 0x517   : > { %v8188_v35 = vpop.f32.mrb[131].mxu1 }
 0x518   : > { %v12143_v41 = vadd.f32 %v8186_v56, %v11672_v2  ;;  %v8189_v59 = vadd.f32 %v8188_v35, %v8187_v38  ;;  %v4835_v2 = vshll.u32 %v12145_v26, 16  ;;  %v4796_v56 = vsel %vm10239_vm6, %v4791_v7, %v12123_v14 }
 0x519   : > { %6842 = vmatmul.mubr.bf16.gmra.mrb[236].mxu1 %v7646_v54  ;;  %v4814_v38 = vor.u32 %v4813_v3, %v4810_v36  ;;  %v4834_v35 = vrot.slane %v4832_v28, 4  ;;  %v4829_v14 = vrot.slane %v4827_v4, 5  ;;  %v4851_v3 = vshll.u32 %v11812_v49, 16 }
 0x51a   : > { %v12148_v22 = vadd.f32 %v8189_v59, %v11680_v44  ;;  %6849 = vmatprep.mubr.bf16.mxu1 %v7663_v10  ;;  %v4806_v44 = vsel %vm10239_vm6, %v4801_v24, %v4805_v39  ;;  %v4837_v54 = vrot.slane %v4835_v2, 5  ;;  %v4847_v59 = vrot.slane %v4845_v34, 4 }
 0x51b   : > { %v7664_v10 = vcombine.low %v4796_v56, %v4806_v44  ;;  %v4825_v24 = vrot.slane %v4824_v8, 4  ;;  %v4815_v50 = vrot.slane %v4814_v38, 4  ;;  %v4853_v8 = vrot.slane %v4851_v3, 5 }
 0x51c   : > { %v8190_v62 = vpop.f32.mrb[132].mxu1  ;;  %v4838_v7 = vor.u32 %v4837_v54, %v4834_v35  ;;  %v4848_v36 = vor.u32 %v4847_v59, %v4843_v18  ;;  %v4921_v4 = vrot.slane %v9384_v16, 5  ;;  %v7649_v59 = vcombine.low %v12127_v6, %v12132_v58  ;;  %v9386_v6 = vld [vmem:[#allocation2 + $0x34] sm:$0xf] }
 0x51d   : > { %v8191_v20 = vpop.f32.mrb[133].mxu1  ;;  %v4935_v58 = vrot.slane %v9386_v6, 5 }
 0x51e   : > { %v8192_v27 = vadd.f32 %v8191_v20, %v8190_v62  ;;  %v8193_v29 = vpop.f32.mrb[134].mxu1  ;;  %v7648_v62 = vcombine.low %v12104_v25, %v12108_v42  ;;  %v4849_v44 = vrot.slane %v4848_v36, 4  ;;  %v7650_v36 = vcombine.low %v12145_v26, %v11810_v43  ;;  %v4857_v26 = vld [vmem:[#allocation2 + $0x30] sm:$0xe] }
 0x51f   : > { %v8194_v31 = vpop.f32.mrb[135].mxu1 }
 0x520   : > { %v12162_v45 = vadd.f32 %v8192_v27, %v11700_v37  ;;  %v8195_v15 = vadd.f32 %v8194_v31, %v8193_v29  ;;  %v4830_v37 = vsel %vm10239_vm6, %v4825_v24, %v4829_v14  ;;  %v4854_v42 = vsel %vm10239_vm6, %v4849_v44, %v4853_v8  ;;  %v9385_v24 = vld [vmem:[#allocation2 + $0x20] sm:$0x1] }
 0x521   : > { %6850 = vmatmul.mubr.bf16.gmra.mrb[240].mxu1 %v7647_v30  ;;  %v4839_v30 = vrot.slane %v4838_v7, 4  ;;  %v4924_v14 = vrot.slane %v9385_v24, 5  ;;  %v7525_v8 = vrot.slane %v4857_v26, 9 }
 0x522   : > { %v12165_v39 = vadd.f32 %v8195_v15, %v11709_v17  ;;  %6857 = vmatprep.mubr.bf16.mxu1 %v7664_v10  ;;  %v4820_v17 = vsel %vm10239_vm6, %v4815_v50, %v4819_v13  ;;  %v4855_v10 = vld [vmem:[#allocation2 + $0x18] sm:$0xe] }
 0x523   : > { %v7665_v29 = vcombine.low %v4820_v17, %v4830_v37  ;;  %v4844_v25 = vsel %vm10239_vm6, %v4839_v30, %v4843_v18  ;;  %v4923_v18 = vrot.slane %v4921_v4, 4  ;;  %v7523_v3 = vrot.slane %v4855_v10, 9 }
 0x524   : > { %v8196_v28 = vpop.f32.mrb[136].mxu1  ;;  %v7666_v35 = vcombine.low %v4844_v25, %v4854_v42  ;;  %v4938_v17 = vrot.slane %v11803_v52, 5  ;;  %v12727_v52 = vld [vmem:[#allocation15_spill] sm:$0xff] }
 0x525   : > { %v8197_v2 = vpop.f32.mrb[137].mxu1 }
 0x526   : > { %v8198_v51 = vadd.f32 %v8197_v2, %v8196_v28  ;;  %v8199_v34 = vpop.f32.mrb[138].mxu1 }
 0x527   : > { %v8200_v20 = vpop.f32.mrb[139].mxu1 }
 0x528   : > { %v12175_v27 = vadd.f32 %v8198_v51, %v11734_v57  ;;  %v8201_v49 = vadd.f32 %v8200_v20, %v8199_v34  ;;  %v4937_v20 = vrot.slane %v4935_v58, 4 }
 0x529   : > { %6858 = vmatmul.mubr.bf16.gmra.mrb[244].mxu1 %v7648_v62 }
 0x52a   : > { %v12178_v56 = vadd.f32 %v8201_v49, %v11744_v21  ;;  %6865 = vmatprep.mubr.bf16.mxu1 %v7665_v29  ;;  %v4939_v49 = vsel %vm10251_vm9, %v4937_v20, %v4938_v17  ;;  %v12736_v17 = vld [vmem:[#allocation28_spill] sm:$0xff] }
 0x52c   : > { %v8202_v13 = vpop.f32.mrb[140].mxu1 }
 0x52d   : > { %v8203_v38 = vpop.f32.mrb[141].mxu1 }
 0x52e   : > { %v8204_v31 = vadd.f32 %v8203_v38, %v8202_v13  ;;  %v8205_v57 = vpop.f32.mrb[142].mxu1  ;;  %v4936_v13 = vsel %vm10251_vm9, %v7525_v8, %v4935_v58 }
 0x52f   : > { %v8206_v54 = vpop.f32.mrb[143].mxu1  ;;  %v7669_v16 = vcombine.low %v4936_v13, %v4939_v49  ;;  %v12740_v13 = vld [vmem:[#allocation21_spill] sm:$0xff] }
 0x530   : > { %v12187_v21 = vadd.f32 %v8204_v31, %v11766_v5  ;;  %v8207_v15 = vadd.f32 %v8206_v54, %v8205_v57  ;;  %v4925_v5 = vsel %vm10251_vm9, %v4923_v18, %v4924_v14  ;;  %v4952_v54 = vrot.slane %v11885_v33, 5 }
 0x531   : > { %6866 = vmatmul.mubr.bf16.gmra.mrb[248].mxu1 %v7649_v59 }
 0x532   : > { %v12190_v55 = vadd.f32 %v8207_v15, %v11770_v12  ;;  %6873 = vmatprep.mubr.bf16.mxu1 %v7666_v35  ;;  %v4922_v12 = vsel %vm10251_vm9, %v7523_v3, %v4921_v4  ;;  %v12728_v4 = vld [vmem:[#allocation16_spill] sm:$0xff]  ;;  %v12730_v3 = vld [vmem:[#allocation17_spill] sm:$0xff] }
 0x533   : > { %v7667_v62 = vcombine.low %v4922_v12, %v4925_v5  ;;  %v12729_v31 = vcombine.low %v12727_v52, %v12728_v4  ;;  %v12731_v5 = vld [vmem:[#allocation18_spill] sm:$0xff]  ;;  %v12743_v52 = vld [vmem:[#allocation43_spill] sm:$0xff] }
 0x534   : > { %v8208_v50 = vpop.f32.mrb[144].mxu1  ;;  %v12732_v33 = vcombine.low %v12730_v3, %v12731_v5  ;;  %v12744_v4 = vld [vmem:[#allocation30_spill] sm:$0xff]  ;;  %v12752_v5 = vld [vmem:[#allocation32_spill] sm:$0xff] }
 0x535   : > { %v8209_v7 = vpop.f32.mrb[145].mxu1 }
 0x536   : > { %v8210_v28 = vadd.f32 %v8209_v7, %v8208_v50  ;;  %v8211_v2 = vpop.f32.mrb[146].mxu1 }
 0x537   : > { %v8212_v37 = vpop.f32.mrb[147].mxu1 }
 0x538   : > { %v12199_v51 = vadd.f32 %v8210_v28, %v11793_v60  ;;  %v8213_v34 = vadd.f32 %v8212_v37, %v8211_v2  ;;  %v4949_v60 = vrot.slane %v11849_v53, 5  ;;  %v4859_v53 = vld [vmem:[#allocation2 + $0x48] sm:$0xe] }
 0x539   : > { %6874 = vmatmul.mubr.bf16.gmra.mrb[252].mxu1 %v7650_v36  ;;  %v7527_v18 = vrot.slane %v4859_v53, 9 }
 0x53a   : > { %v12202_v43 = vadd.f32 %v8213_v34, %v11801_v40  ;;  %8790 = vmatprep.mubr.bf16.mxu1 %v7667_v62  ;;  %v4951_v57 = vrot.slane %v4949_v60, 4  ;;  %v12733_v34 = vld [vmem:[#allocation19_spill] sm:$0xff]  ;;  %v12734_v62 = vld [vmem:[#allocation20_spill] sm:$0xff] }
 0x53b   : > { %v4950_v50 = vsel %vm10251_vm9, %v7527_v18, %v4949_v60  ;;  %v12735_v20 = vcombine.low %v12733_v34, %v12734_v62 }
 0x53c   : > { %v8214_v30 = vpop.f32.mrb[148].mxu1 }
 0x53d   : > { %v8215_v44 = vpop.f32.mrb[149].mxu1 }
 0x53e   : > { %v8216_v29 = vadd.f32 %v8215_v44, %v8214_v30  ;;  %v8217_v25 = vpop.f32.mrb[150].mxu1 }
 0x53f   : > { %v8218_v42 = vpop.f32.mrb[151].mxu1 }
 0x540   : > { %v12211_v40 = vadd.f32 %v8216_v29, %v11835_v23  ;;  %v8219_v38 = vadd.f32 %v8218_v42, %v8217_v25  ;;  %v4953_v23 = vsel %vm10251_vm9, %v4951_v57, %v4952_v54  ;;  %v12739_v25 = vld [vmem:[#allocation10_spill] sm:$0xff] }
 0x541   : > { %8791 = vmatmul.mubr.bf16.vlgmr.msra.gmra.mrb[0].mxu1 %v12729_v31  ;;  %v7671_v36 = vcombine.low %v4950_v50, %v4953_v23  ;;  %v12745_v31 = vld [vmem:[#allocation31_spill] sm:$0xff]  ;;  %v12749_v50 = vld [vmem:[#allocation24_spill] sm:$0xff] }
 0x542   : > { %v12217_v35 = vadd.f32 %v8219_v38, %v11847_v19  ;;  %8794 = vmatprep.mubr.bf16.mxu1 %v7669_v16  ;;  %v12741_v38 = vld [vmem:[#allocation22_spill] sm:$0xff]  ;;  %v12746_v57 = vcombine.low %v12744_v4, %v12745_v31  ;;  %v12747_v23 = vld [vmem:[#allocation11_spill] sm:$0xff]  ;;  %v12763_v4 = vld [vmem:[#allocation25_spill] sm:$0xff] }
 0x543   : > { %v12742_v16 = vcombine.low %v12740_v13, %v12741_v38 }
 0x544   : > { %v8220_v59 = vpop.f32.mrb[152].mxu1 }
 0x545   : > { %v8221_v15 = vpop.f32.mrb[153].mxu1 }
 0x546   : > { %v8222_v10 = vadd.f32 %v8221_v15, %v8220_v59  ;;  %v8223_v24 = vpop.f32.mrb[154].mxu1 }
 0x547   : > { %v8224_v14 = vpop.f32.mrb[155].mxu1 }
 0x548   : > { %v12225_v7 = vadd.f32 %v8222_v10, %v11874_v63  ;;  %v8225_v19 = vadd.f32 %v8224_v14, %v8223_v24  ;;  %v12748_v14 = vld [vmem:[#allocation23_spill] sm:$0xff] }
 0x549   : > { %8795 = vmatmul.mubr.bf16.gmra.mrb[4].mxu1 %v12732_v33  ;;  %v12753_v33 = vld [vmem:[#allocation33_spill] sm:$0xff] }
 0x54a   : > { %v12231_v6 = vadd.f32 %v8225_v19, %v11880_v9  ;;  %8798 = vmatprep.mubr.bf16.mxu1 %v7671_v36  ;;  %v12737_v9 = vld [vmem:[#allocation29_spill] sm:$0xff]  ;;  %v12750_v19 = vcombine.low %v12748_v14, %v12749_v50  ;;  %v12751_v36 = vld [vmem:[#allocation12_spill] sm:$0xff]  ;;  %v12768_v50 = vld [vmem:[#allocation26_spill] sm:$0xff] }
 0x54b   : > { %v12738_v30 = vcombine.low %v12736_v17, %v12737_v9  ;;  %v12756_v17 = vld [vmem:[#allocation9_spill] sm:$0xff] }
 0x54c   : > { %v8226_v58 = vpop.f32.mrb[156].mxu1 }
 0x54d   : > { %v8227_v28 = vpop.f32.mrb[157].mxu1 }
 0x54e   : > { %v8228_v2 = vadd.f32 %v8227_v28, %v8226_v58  ;;  %v8229_v37 = vpop.f32.mrb[158].mxu1  ;;  %v12754_v58 = vcombine.low %v12752_v5, %v12753_v33  ;;  %v12770_v5 = vld [vmem:[#allocation7_spill] sm:$0xff] }
 0x54f   : > { %v8230_v12 = vpop.f32.mrb[159].mxu1 }
 0x550   : > { %v12234_v46 = vadd.f32 %v8228_v2, %v11909_v0  ;;  %v8231_v63 = vadd.f32 %v8230_v12, %v8229_v37 }
 0x551   : > { %8799 = vmatmul.mubr.bf16.gmra.mrb[8].mxu1 %v12735_v20  ;;  %v12755_v20 = vld [vmem:[#allocation8_spill] sm:$0xff] }
 0x552   : > { %v12240_v26 = vadd.f32 %v8231_v63, %v11915_v11  ;;  %8802 = vmatprep.mubr.bf16.mxu1 %v12738_v30  ;;  %v12757_v9 = vcombine.low %v12755_v20, %v12756_v17  ;;  %v12758_v30 = vld [vmem:[#allocation13_spill] sm:$0xff] }
 0x554   : > { %v8232_v44 = vpop.f32.mrb[160].mxu1 }
 0x555   : > { %v8233_v8 = vpop.f32.mrb[161].mxu1 }
 0x556   : > { %v8234_v49 = vadd.f32 %v8233_v8, %v8232_v44  ;;  %v8235_v60 = vpop.f32.mrb[162].mxu1  ;;  %v12759_v8 = vld [vmem:[#allocation34_spill] sm:$0xff] }
 0x557   : > { %v8236_v29 = vpop.f32.mrb[163].mxu1 }
 0x558   : > { %v12246_v0 = vadd.f32 %v8234_v49, %v12739_v25  ;;  %v8237_v42 = vadd.f32 %v8236_v29, %v8235_v60  ;;  %v12760_v49 = vld [vmem:[#allocation35_spill] sm:$0xff] }
 0x559   : > { %8803 = vmatmul.mubr.bf16.gmra.mrb[12].mxu1 %v12742_v16  ;;  %v12761_v60 = vcombine.low %v12759_v8, %v12760_v49 }
 0x55a   : > { %v12252_v11 = vadd.f32 %v8237_v42, %v12743_v52  ;;  %8806 = vmatprep.mubr.bf16.mxu1 %v12746_v57  ;;  %v12762_v52 = vld [vmem:[#allocation14_spill] sm:$0xff] }
 0x55b   : > { %v12764_v31 = vcombine.low %v12762_v52, %v12763_v4 }
 0x55c   : > { %v8238_v53 = vpop.f32.mrb[164].mxu1 }
 0x55d   : > { %v8239_v54 = vpop.f32.mrb[165].mxu1 }
 0x55e   : > { %v8240_v59 = vadd.f32 %v8239_v54, %v8238_v53  ;;  %v8241_v15 = vpop.f32.mrb[166].mxu1  ;;  %v12765_v53 = vld [vmem:[#allocation36_spill] sm:$0xff]  ;;  %v12766_v54 = vld [vmem:[#allocation37_spill] sm:$0xff] }
 0x55f   : > { %v8242_v18 = vpop.f32.mrb[167].mxu1 }
 0x560   : > { %v12258_v10 = vadd.f32 %v8240_v59, %v12747_v23  ;;  %v8243_v24 = vadd.f32 %v8242_v18, %v8241_v15  ;;  %v12767_v59 = vcombine.low %v12765_v53, %v12766_v54 }
 0x561   : > { %8807 = vmatmul.mubr.bf16.gmra.mrb[16].mxu1 %v12750_v19 }
 0x562   : > { %v12264_v3 = vadd.f32 %v8243_v24, %v12751_v36  ;;  %8810 = vmatprep.mubr.bf16.mxu1 %v12754_v58  ;;  %v12769_v36 = vld [vmem:[#allocation6_spill] sm:$0xff]  ;;  %v12772_v58 = vld [vmem:[#allocation27_spill] sm:$0xff] }
 0x563   : > { %v12771_v33 = vcombine.low %v12769_v36, %v12770_v5 }
 0x564   : > { %v8244_v28 = vpop.f32.mrb[168].mxu1 }
 0x565   : > { %v8245_v2 = vpop.f32.mrb[169].mxu1 }
 0x566   : > { %v8246_v37 = vadd.f32 %v8245_v2, %v8244_v28  ;;  %v8247_v12 = vpop.f32.mrb[170].mxu1 }
 0x567   : > { %v8248_v63 = vpop.f32.mrb[171].mxu1 }
 0x568   : > { %v12270_v34 = vadd.f32 %v8246_v37, %v11995_v47  ;;  %v8249_v62 = vadd.f32 %v8248_v63, %v8247_v12 }
 0x569   : > { %8811 = vmatmul.mubr.bf16.gmra.mrb[20].mxu1 %v12757_v9  ;;  %v12774_v9 = vld [vmem:[#allocation44_spill] sm:$0xff] }
 0x56a   : > { %v12276_v44 = vadd.f32 %v8249_v62, %v12758_v30  ;;  %8814 = vmatprep.mubr.bf16.mxu1 %v12761_v60  ;;  %v12773_v62 = vld [vmem:[#allocation38_spill] sm:$0xff] }
 0x56c   : > { %v8250_v29 = vpop.f32.mrb[172].mxu1 }
 0x56d   : > { %v8251_v25 = vpop.f32.mrb[173].mxu1 }
 0x56e   : > { %v8252_v42 = vadd.f32 %v8251_v25, %v8250_v29  ;;  %v8253_v13 = vpop.f32.mrb[174].mxu1 }
 0x56f   : > { %v8254_v38 = vpop.f32.mrb[175].mxu1 }
 0x570   : > { %v12282_v47 = vadd.f32 %v8252_v42, %v12021_v48  ;;  %v8255_v16 = vadd.f32 %v8254_v38, %v8253_v13  ;;  %v12775_v42 = vld [vmem:[#allocation39_spill] sm:$0xff] }
 0x571   : > { %8815 = vmatmul.mubr.bf16.gmra.mrb[24].mxu1 %v12764_v31 }
 0x572   : > { %v12288_v57 = vadd.f32 %v8255_v16, %v12025_v61  ;;  %8818 = vmatprep.mubr.bf16.mxu1 %v12767_v59  ;;  %v12776_v16 = vld [vmem:[#allocation40_spill] sm:$0xff] }
 0x574   : > { %v8256_v15 = vpop.f32.mrb[176].mxu1 }
 0x575   : > { %v8257_v18 = vpop.f32.mrb[177].mxu1 }
 0x576   : > { %v8258_v23 = vadd.f32 %v8257_v18, %v8256_v15  ;;  %v8259_v24 = vpop.f32.mrb[178].mxu1 }
 0x577   : > { %v8260_v14 = vpop.f32.mrb[179].mxu1 }
 0x578   : > { %v12294_v48 = vadd.f32 %v8258_v23, %v12768_v50  ;;  %v8261_v19 = vadd.f32 %v8260_v14, %v8259_v24 }
 0x579   : > { %8819 = vmatmul.mubr.bf16.gmra.mrb[28].mxu1 %v12771_v33 }
 0x57a   : > { %v12300_v61 = vadd.f32 %v8261_v19, %v12772_v58 }
 0x57c   : > { %v8262_v28 = vpop.f32.mrb[180].mxu1 }
 0x57d   : > { %v8263_v2 = vpop.f32.mrb[181].mxu1 }
 0x57e   : > { %v8264_v37 = vadd.f32 %v8263_v2, %v8262_v28  ;;  %v8265_v12 = vpop.f32.mrb[182].mxu1 }
 0x57f   : > { %v8266_v63 = vpop.f32.mrb[183].mxu1 }
 0x580   : > { %v12303_v20 = vadd.f32 %v8264_v37, %v12773_v62  ;;  %v8267_v17 = vadd.f32 %v8266_v63, %v8265_v12 }
 0x582   : > { %v12306_v30 = vadd.f32 %v8267_v17, %v12774_v9 }
 0x584   : > { %v8268_v8 = vpop.f32.mrb[184].mxu1 }
 0x585   : > { %v8269_v49 = vpop.f32.mrb[185].mxu1 }
 0x586   : > { %v8270_v60 = vadd.f32 %v8269_v49, %v8268_v8  ;;  %v8271_v29 = vpop.f32.mrb[186].mxu1 }
 0x587   : > { %v8272_v25 = vpop.f32.mrb[187].mxu1 }
 0x588   : > { %v12309_v13 = vadd.f32 %v8270_v60, %v12775_v42  ;;  %v8273_v38 = vadd.f32 %v8272_v25, %v8271_v29 }
 0x58a   : > { %v12312_v52 = vadd.f32 %v8273_v38, %v12776_v16 }
 0x58c   : > { %v8274_v4 = vpop.f32.mrb[188].mxu1 }
 0x58d   : > { %v8275_v31 = vpop.f32.mrb[189].mxu1 }
 0x58e   : > { %v8276_v53 = vadd.f32 %v8275_v31, %v8274_v4  ;;  %v8277_v54 = vpop.f32.mrb[190].mxu1 }
 0x58f   : > { %v8278_v59 = vpop.f32.mrb[191].mxu1 }
 0x590   : > { %v12315_v15 = vadd.f32 %v8276_v53, %v12121_v1  ;;  %v8279_v18 = vadd.f32 %v8278_v59, %v8277_v54 }
 0x592   : > { %v12318_v23 = vadd.f32 %v8279_v18, %v12125_v32 }
 0x594   : > { %v8296_v24 = vpop.f32.mrb[192].mxu1 }
 0x595   : > { %v8297_v14 = vpop.f32.mrb[193].mxu1 }
 0x596   : > { %v8298_v50 = vadd.f32 %v8297_v14, %v8296_v24  ;;  %v8299_v19 = vpop.f32.mrb[194].mxu1 }
 0x597   : > { %v8300_v36 = vpop.f32.mrb[195].mxu1 }
 0x598   : > { %v8301_v5 = vadd.f32 %v8300_v36, %v8299_v19  ;;  %v12321_v33 = vadd.f32 %v8298_v50, %v12143_v41 }
 0x59a   : > { %v12324_v58 = vadd.f32 %v8301_v5, %v12148_v22 }
 0x59c   : > { %v8302_v28 = vpop.f32.mrb[196].mxu1 }
 0x59d   : > { %v8303_v2 = vpop.f32.mrb[197].mxu1 }
 0x59e   : > { %v8304_v1 = vadd.f32 %v8303_v2, %v8302_v28  ;;  %v8305_v37 = vpop.f32.mrb[198].mxu1 }
 0x59f   : > { %v8306_v12 = vpop.f32.mrb[199].mxu1 }
 0x5a0   : > { %v8307_v63 = vadd.f32 %v8306_v12, %v8305_v37  ;;  %v12327_v32 = vadd.f32 %v8304_v1, %v12162_v45 }
 0x5a2   : > { %v12330_v62 = vadd.f32 %v8307_v63, %v12165_v39 }
 0x5a4   : > { %v8308_v17 = vpop.f32.mrb[200].mxu1 }
 0x5a5   : > { %v8309_v9 = vpop.f32.mrb[201].mxu1 }
 0x5a6   : > { %v8310_v8 = vadd.f32 %v8309_v9, %v8308_v17  ;;  %v8311_v41 = vpop.f32.mrb[202].mxu1 }
 0x5a7   : > { %v8312_v49 = vpop.f32.mrb[203].mxu1 }
 0x5a8   : > { %v8313_v60 = vadd.f32 %v8312_v49, %v8311_v41  ;;  %v12333_v22 = vadd.f32 %v8310_v8, %v12175_v27 }
 0x5aa   : > { %v12336_v29 = vadd.f32 %v8313_v60, %v12178_v56 }
 0x5ac   : > { %v8314_v25 = vpop.f32.mrb[204].mxu1 }
 0x5ad   : > { %v8315_v42 = vpop.f32.mrb[205].mxu1 }
 0x5ae   : > { %v8316_v38 = vadd.f32 %v8315_v42, %v8314_v25  ;;  %v8317_v45 = vpop.f32.mrb[206].mxu1 }
 0x5af   : > { %v8318_v16 = vpop.f32.mrb[207].mxu1 }
 0x5b0   : > { %v8319_v4 = vadd.f32 %v8318_v16, %v8317_v45  ;;  %v12339_v39 = vadd.f32 %v8316_v38, %v12187_v21 }
 0x5b2   : > { %v12342_v31 = vadd.f32 %v8319_v4, %v12190_v55 }
 0x5b4   : > { %v8320_v53 = vpop.f32.mrb[208].mxu1 }
 0x5b5   : > { %v8321_v54 = vpop.f32.mrb[209].mxu1 }
 0x5b6   : > { %v8322_v59 = vadd.f32 %v8321_v54, %v8320_v53  ;;  %v8323_v27 = vpop.f32.mrb[210].mxu1 }
 0x5b7   : > { %v8324_v18 = vpop.f32.mrb[211].mxu1 }
 0x5b8   : > { %v8325_v24 = vadd.f32 %v8324_v18, %v8323_v27  ;;  %v12345_v56 = vadd.f32 %v8322_v59, %v12199_v51  ;;  %v9452_v27 = vmov 0.00390625  }
 0x5b9   : > { %7139 = vmatprep.mubr.f32.mxu0 %v9452_v27 }
 0x5ba   : > { %v12348_v14 = vadd.f32 %v8325_v24, %v12202_v43  ;;  %v7145_v24 = vld [vmem:[%s12585_s5] sm:$0xff] }
 0x5bc   : > { %v8326_v50 = vpop.f32.mrb[212].mxu1 }
 0x5bd   : > { %v8327_v19 = vpop.f32.mrb[213].mxu1 }
 0x5be   : > { %v8328_v36 = vadd.f32 %v8327_v19, %v8326_v50  ;;  %v8329_v21 = vpop.f32.mrb[214].mxu1  ;;  %v7146_v50 = vld [vmem:[%s12585_s5 + $0x8] sm:$0xff]  ;;  %v9453_v19 = vmov 0.0|0.0  }
 0x5bf   : > { %v8330_v5 = vpop.f32.mrb[215].mxu1  ;;  %8889 = vmatprep.subr.bf16.mxu1 %v9453_v19 }
 0x5c0   : > { %v8331_v28 = vadd.f32 %v8330_v5, %v8329_v21  ;;  %v12351_v55 = vadd.f32 %v8328_v36, %v12211_v40  ;;  %v8890_v36 = vpack.c.bf16 %v7146_v50, %v7145_v24  ;;  %v7148_v21 = vld [vmem:[%s12585_s5 + $0x18] sm:$0xff] }
 0x5c2   : > { %v12354_v2 = vadd.f32 %v8331_v28, %v12217_v35  ;;  %8891 = vmatpush3.bf16.msra.mxu1 %v8890_v36  ;;  %v7157_v36 = vld [vmem:[%s12585_s5 + $0x60] sm:$0xff] }
 0x5c3   : > { %8892 = vmatprep.subr.bf16.mxu1 %v9453_v19 }
 0x5c4   : > { %v8332_v1 = vpop.f32.mrb[216].mxu1 }
 0x5c5   : > { %v8333_v37 = vpop.f32.mrb[217].mxu1 }
 0x5c6   : > { %v8334_v12 = vadd.f32 %v8333_v37, %v8332_v1  ;;  %v8335_v51 = vpop.f32.mrb[218].mxu1 }
 0x5c7   : > { %v8336_v63 = vpop.f32.mrb[219].mxu1 }
 0x5c8   : > { %v8337_v17 = vadd.f32 %v8336_v63, %v8335_v51  ;;  %v12357_v43 = vadd.f32 %v8334_v12, %v12225_v7  ;;  %v7149_v12 = vld [vmem:[%s12585_s5 + $0x20] sm:$0xff]  ;;  %v7150_v51 = vld [vmem:[%s12585_s5 + $0x28] sm:$0xff] }
 0x5ca   : > { %v12360_v9 = vadd.f32 %v8337_v17, %v12231_v6 }
 0x5cc   : > { %v8338_v8 = vpop.f32.mrb[220].mxu1 }
 0x5cd   : > { %v8339_v41 = vpop.f32.mrb[221].mxu1 }
 0x5ce   : > { %v8340_v49 = vadd.f32 %v8339_v41, %v8338_v8  ;;  %v8341_v40 = vpop.f32.mrb[222].mxu1 }
 0x5cf   : > { %v8342_v60 = vpop.f32.mrb[223].mxu1 }
 0x5d0   : > { %v8343_v25 = vadd.f32 %v8342_v60, %v8341_v40  ;;  %v12363_v35 = vadd.f32 %v8340_v49, %v12234_v46  ;;  %v7152_v49 = vld [vmem:[%s12585_s5 + $0x38] sm:$0xff] }
 0x5d2   : > { %v12366_v42 = vadd.f32 %v8343_v25, %v12240_v26 }
 0x5d4   : > { %v8344_v38 = vpop.f32.mrb[224].mxu1 }
 0x5d5   : > { %v8345_v45 = vpop.f32.mrb[225].mxu1 }
 0x5d6   : > { %v8346_v16 = vadd.f32 %v8345_v45, %v8344_v38  ;;  %v8347_v7 = vpop.f32.mrb[226].mxu1 }
 0x5d7   : > { %v8348_v4 = vpop.f32.mrb[227].mxu1 }
 0x5d8   : > { %v8349_v53 = vadd.f32 %v8348_v4, %v8347_v7  ;;  %v12369_v6 = vadd.f32 %v8346_v16, %v12246_v0  ;;  %v7147_v0 = vld [vmem:[%s12585_s5 + $0x10] sm:$0xff]  ;;  %v7153_v16 = vld [vmem:[%s12585_s5 + $0x40] sm:$0xff]  ;;  %v7154_v7 = vld [vmem:[%s12585_s5 + $0x48] sm:$0xff] }
 0x5d9   : > { %v8893_v1 = vpack.c.bf16 %v7148_v21, %v7147_v0  ;;  %v7158_v21 = vld [vmem:[%s12585_s5 + $0x68] sm:$0xff] }
 0x5da   : > { %v12372_v54 = vadd.f32 %v8349_v53, %v12252_v11 }
 0x5db   : > { %8894 = vmatpush3.bf16.msra.mxu1 %v8893_v1 }
 0x5dc   : > { %v8350_v59 = vpop.f32.mrb[228].mxu1  ;;  %8895 = vmatprep.subr.bf16.mxu1 %v9453_v19 }
 0x5dd   : > { %v8351_v46 = vpop.f32.mrb[229].mxu1 }
 0x5de   : > { %v8352_v18 = vadd.f32 %v8351_v46, %v8350_v59  ;;  %v8353_v26 = vpop.f32.mrb[230].mxu1 }
 0x5df   : > { %v8354_v11 = vpop.f32.mrb[231].mxu1 }
 0x5e0   : > { %v8355_v5 = vadd.f32 %v8354_v11, %v8353_v26  ;;  %v12389_v28 = vadd.f32 %v8352_v18, %v12258_v10  ;;  %v8896_v10 = vpack.c.bf16 %v7150_v51, %v7149_v12  ;;  %v7156_v18 = vld [vmem:[%s12585_s5 + $0x58] sm:$0xff] }
 0x5e2   : > { %v12392_v37 = vadd.f32 %v8355_v5, %v12264_v3  ;;  %v7151_v3 = vld [vmem:[%s12585_s5 + $0x30] sm:$0xff]  ;;  %8897 = vmatpush3.bf16.msra.mxu1 %v8896_v10 }
 0x5e3   : > { %v8899_v38 = vpack.c.bf16 %v7152_v49, %v7151_v3  ;;  %8898 = vmatprep.subr.bf16.mxu1 %v9453_v19 }
 0x5e4   : > { %v8356_v63 = vpop.f32.mrb[232].mxu1 }
 0x5e5   : > { %v8357_v17 = vpop.f32.mrb[233].mxu1 }
 0x5e6   : > { %v8358_v8 = vadd.f32 %v8357_v17, %v8356_v63  ;;  %v8359_v41 = vpop.f32.mrb[234].mxu1  ;;  %8900 = vmatpush3.bf16.msra.mxu1 %v8899_v38  ;;  %v7160_v63 = vld [vmem:[%s12585_s5 + $0x78] sm:$0xff] }
 0x5e7   : > { %v8360_v40 = vpop.f32.mrb[235].mxu1  ;;  %8901 = vmatprep.subr.bf16.mxu1 %v9453_v19 }
 0x5e8   : > { %v8361_v60 = vadd.f32 %v8360_v40, %v8359_v41  ;;  %v12409_v25 = vadd.f32 %v8358_v8, %v12270_v34  ;;  %v8902_v34 = vpack.c.bf16 %v7154_v7, %v7153_v16 }
 0x5ea   : > { %v12412_v45 = vadd.f32 %v8361_v60, %v12276_v44  ;;  %v7155_v44 = vld [vmem:[%s12585_s5 + $0x50] sm:$0xff]  ;;  %8903 = vmatpush3.bf16.msra.mxu1 %v8902_v34 }
 0x5eb   : > { %v8905_v0 = vpack.c.bf16 %v7156_v18, %v7155_v44  ;;  %8904 = vmatprep.subr.bf16.mxu1 %v9453_v19 }
 0x5ec   : > { %v8362_v4 = vpop.f32.mrb[236].mxu1 }
 0x5ed   : > { %v8363_v53 = vpop.f32.mrb[237].mxu1 }
 0x5ee   : > { %v8364_v59 = vadd.f32 %v8363_v53, %v8362_v4  ;;  %v8365_v46 = vpop.f32.mrb[238].mxu1  ;;  %8906 = vmatpush3.bf16.msra.mxu1 %v8905_v0 }
 0x5ef   : > { %v8366_v26 = vpop.f32.mrb[239].mxu1  ;;  %8907 = vmatprep.subr.bf16.mxu1 %v9453_v19 }
 0x5f0   : > { %v8367_v24 = vadd.f32 %v8366_v26, %v8365_v46  ;;  %v12429_v50 = vadd.f32 %v8364_v59, %v12282_v47  ;;  %v8908_v47 = vpack.c.bf16 %v7158_v21, %v7157_v36 }
 0x5f2   : > { %v12432_v11 = vadd.f32 %v8367_v24, %v12288_v57  ;;  %v7159_v57 = vld [vmem:[%s12585_s5 + $0x70] sm:$0xff]  ;;  %8909 = vmatpush3.bf16.msra.mxu1 %v8908_v47 }
 0x5f3   : > { %v8911_v41 = vpack.c.bf16 %v7160_v63, %v7159_v57  ;;  %8910 = vmatprep.subr.bf16.mxu1 %v9453_v19 }
 0x5f4   : > { %v8368_v5 = vpop.f32.mrb[240].mxu1 }
 0x5f5   : > { %v8369_v1 = vpop.f32.mrb[241].mxu1 }
 0x5f6   : > { %v8370_v12 = vadd.f32 %v8369_v1, %v8368_v5  ;;  %v8371_v51 = vpop.f32.mrb[242].mxu1  ;;  %8912 = vmatpush3.bf16.msra.mxu1 %v8911_v41 }
 0x5f7   : > { %v8372_v17 = vpop.f32.mrb[243].mxu1 }
 0x5f8   : > { %v8373_v10 = vadd.f32 %v8372_v17, %v8371_v51  ;;  %v12449_v8 = vadd.f32 %v8370_v12, %v12294_v48 }
 0x5fa   : > { %v12452_v3 = vadd.f32 %v8373_v10, %v12300_v61 }
 0x5fc   : > { %v8374_v49 = vpop.f32.mrb[244].mxu1 }
 0x5fd   : > { %v8375_v40 = vpop.f32.mrb[245].mxu1 }
 0x5fe   : > { %v8376_v60 = vadd.f32 %v8375_v40, %v8374_v49  ;;  %v8377_v38 = vpop.f32.mrb[246].mxu1 }
 0x5ff   : > { %v8378_v16 = vpop.f32.mrb[247].mxu1 }
 0x600   : > { %v8379_v7 = vadd.f32 %v8378_v16, %v8377_v38  ;;  %v12456_v4 = vadd.f32 %v8376_v60, %v12303_v20 }
 0x602   : > { %v12459_v48 = vadd.f32 %v8379_v7, %v12306_v30 }
 0x604   : > { %v8380_v53 = vpop.f32.mrb[248].mxu1 }
 0x605   : > { %v8381_v34 = vpop.f32.mrb[249].mxu1 }
 0x606   : > { %v8382_v59 = vadd.f32 %v8381_v34, %v8380_v53  ;;  %v8383_v61 = vpop.f32.mrb[250].mxu1 }
 0x607   : > { %v8384_v46 = vpop.f32.mrb[251].mxu1 }
 0x608   : > { %v8385_v44 = vadd.f32 %v8384_v46, %v8383_v61  ;;  %v12462_v19 = vadd.f32 %v8382_v59, %v12309_v13 }
 0x60a   : > { %v12465_v18 = vadd.f32 %v8385_v44, %v12312_v52 }
 0x60c   : > { %v8386_v26 = vpop.f32.mrb[252].mxu1 }
 0x60d   : > { %v8387_v24 = vpop.f32.mrb[253].mxu1 }
 0x60e   : > { %v8388_v0 = vadd.f32 %v8387_v24, %v8386_v26  ;;  %v8389_v20 = vpop.f32.mrb[254].mxu1 }
 0x60f   : > { %v8390_v36 = vpop.f32.mrb[255].mxu1 }
 0x610   : > { %v8391_v21 = vadd.f32 %v8390_v36, %v8389_v20  ;;  %v12468_v30 = vadd.f32 %v8388_v0, %v12315_v15 }
 0x612   : > { %v12471_v5 = vadd.f32 %v8391_v21, %v12318_v23 }
 0x614   : > { %v8792_v1 = vpop.f32.mrb[0].mxu1 }
 0x615   : > { %v6925_v47 = vadd.f32 %v8792_v1, %v12327_v32  ;;  %v6916_v13 = vpop.f32.mrb[1].mxu1 }
 0x616   : > { %v6917_v12 = vadd.f32 %v6916_v13, %v12321_v33  ;;  %v8793_v52 = vpop.f32.mrb[2].mxu1 }
 0x617   : > { %v6928_v51 = vadd.f32 %v8793_v52, %v12330_v62  ;;  %v6919_v57 = vpop.f32.mrb[3].mxu1  ;;  %v7045_v17 = vmax.f32 %v6925_v47, 0.0 }
 0x618   : > { %v6920_v63 = vadd.f32 %v6919_v57, %v12324_v58  ;;  %v7043_v41 = vmax.f32 %v6917_v12, 0.0 }
 0x619   : > { %v7046_v10 = vmax.f32 %v6928_v51, 0.0 }
 0x61a   : > { %v7044_v15 = vmax.f32 %v6920_v63, 0.0 }
 0x61b   : > { %v12477_v49 = vpack.c.bf16 %v7046_v10, %v7045_v17 }
 0x61c   : > { %v12479_v23 = vpack.c.bf16 %v7044_v15, %v7043_v41  ;;  %v8796_v40 = vpop.f32.mrb[4].mxu1 }
 0x61d   : > { %v6941_v32 = vadd.f32 %v8796_v40, %v12339_v39  ;;  %v6932_v60 = vpop.f32.mrb[5].mxu1 }
 0x61e   : > { %v6933_v33 = vadd.f32 %v6932_v60, %v12333_v22  ;;  %v8797_v38 = vpop.f32.mrb[6].mxu1 }
 0x61f   : > { %v6944_v62 = vadd.f32 %v8797_v38, %v12342_v31  ;;  %v6935_v16 = vpop.f32.mrb[7].mxu1  ;;  %v7049_v7 = vmax.f32 %v6941_v32, 0.0 }
 0x620   : > { %v6936_v58 = vadd.f32 %v6935_v16, %v12336_v29  ;;  %v7047_v34 = vmax.f32 %v6933_v33, 0.0 }
 0x621   : > { %v7050_v53 = vmax.f32 %v6944_v62, 0.0 }
 0x622   : > { %v7048_v59 = vmax.f32 %v6936_v58, 0.0 }
 0x623   : > { %v12485_v61 = vpack.c.bf16 %v7050_v53, %v7049_v7 }
 0x624   : > { %v12487_v46 = vpack.c.bf16 %v7048_v59, %v7047_v34  ;;  %v8800_v44 = vpop.f32.mrb[8].mxu1 }
 0x625   : > { %v6957_v39 = vadd.f32 %v8800_v44, %v12351_v55  ;;  %v6948_v26 = vpop.f32.mrb[9].mxu1 }
 0x626   : > { %v6949_v22 = vadd.f32 %v6948_v26, %v12345_v56  ;;  %v8801_v24 = vpop.f32.mrb[10].mxu1 }
 0x627   : > { %v6960_v31 = vadd.f32 %v8801_v24, %v12354_v2  ;;  %v6951_v0 = vpop.f32.mrb[11].mxu1  ;;  %v7053_v20 = vmax.f32 %v6957_v39, 0.0 }
 0x628   : > { %v6952_v29 = vadd.f32 %v6951_v0, %v12348_v14  ;;  %v7051_v21 = vmax.f32 %v6949_v22, 0.0 }
 0x629   : > { %v7054_v36 = vmax.f32 %v6960_v31, 0.0 }
 0x62a   : > { %v7052_v1 = vmax.f32 %v6952_v29, 0.0 }
 0x62b   : > { %v12493_v47 = vpack.c.bf16 %v7054_v36, %v7053_v20 }
 0x62c   : > { %v12495_v13 = vpack.c.bf16 %v7052_v1, %v7051_v21  ;;  %v8804_v12 = vpop.f32.mrb[12].mxu1 }
 0x62d   : > { %v6973_v55 = vadd.f32 %v8804_v12, %v12363_v35  ;;  %v6964_v52 = vpop.f32.mrb[13].mxu1 }
 0x62e   : > { %v6965_v56 = vadd.f32 %v6964_v52, %v12357_v43  ;;  %v8805_v51 = vpop.f32.mrb[14].mxu1 }
 0x62f   : > { %v6976_v2 = vadd.f32 %v8805_v51, %v12366_v42  ;;  %v6967_v57 = vpop.f32.mrb[15].mxu1  ;;  %v7057_v63 = vmax.f32 %v6973_v55, 0.0 }
 0x630   : > { %v6968_v14 = vadd.f32 %v6967_v57, %v12360_v9  ;;  %v7055_v10 = vmax.f32 %v6965_v56, 0.0 }
 0x631   : > { %v7058_v17 = vmax.f32 %v6976_v2, 0.0 }
 0x632   : > { %v7056_v41 = vmax.f32 %v6968_v14, 0.0 }
 0x633   : > { %v12501_v15 = vpack.c.bf16 %v7058_v17, %v7057_v63 }
 0x634   : > { %v12503_v40 = vpack.c.bf16 %v7056_v41, %v7055_v10  ;;  %v8808_v32 = vpop.f32.mrb[16].mxu1 }
 0x635   : > { %v6989_v35 = vadd.f32 %v8808_v32, %v12389_v28  ;;  %v6980_v60 = vpop.f32.mrb[17].mxu1 }
 0x636   : > { %v6981_v43 = vadd.f32 %v6980_v60, %v12369_v6  ;;  %v8809_v33 = vpop.f32.mrb[18].mxu1 }
 0x637   : > { %v6992_v42 = vadd.f32 %v8809_v33, %v12392_v37  ;;  %v6983_v38 = vpop.f32.mrb[19].mxu1  ;;  %v7061_v62 = vmax.f32 %v6989_v35, 0.0 }
 0x638   : > { %v6984_v9 = vadd.f32 %v6983_v38, %v12372_v54  ;;  %v7059_v58 = vmax.f32 %v6981_v43, 0.0 }
 0x639   : > { %v7062_v16 = vmax.f32 %v6992_v42, 0.0 }
 0x63a   : > { %v7060_v7 = vmax.f32 %v6984_v9, 0.0 }
 0x63b   : > { %v8861_v53 = vpack.c.bf16 %v7062_v16, %v7061_v62 }
 0x63c   : > { %v8857_v34 = vpack.c.bf16 %v7060_v7, %v7059_v58  ;;  %v8812_v59 = vpop.f32.mrb[20].mxu1 }
 0x63d   : > { %v7005_v44 = vadd.f32 %v8812_v59, %v12429_v50  ;;  %v6996_v39 = vpop.f32.mrb[21].mxu1 }
 0x63e   : > { %v6997_v28 = vadd.f32 %v6996_v39, %v12409_v25  ;;  %v8813_v26 = vpop.f32.mrb[22].mxu1  ;;  %8858 = vmatprep.subr.bf16.mxu0 %v8857_v34 }
 0x63f   : > { %v7008_v6 = vadd.f32 %v8813_v26, %v12432_v11  ;;  %v6999_v37 = vpop.f32.mrb[23].mxu1  ;;  %8860 = vmatpush3.bf16.msra.mxu0 %v12479_v23  ;;  %v7065_v22 = vmax.f32 %v7005_v44, 0.0 }
 0x640   : > { %v7000_v54 = vadd.f32 %v6999_v37, %v12412_v45  ;;  %8862 = vmatprep.subr.bf16.mxu0 %v8861_v53  ;;  %v7063_v31 = vmax.f32 %v6997_v28, 0.0 }
 0x641   : > { %v7066_v24 = vmax.f32 %v7008_v6, 0.0 }
 0x642   : > { %v7064_v0 = vmax.f32 %v7000_v54, 0.0 }
 0x643   : > { %v8869_v29 = vpack.c.bf16 %v7066_v24, %v7065_v22  ;;  %8864 = vmatpush3.bf16.msra.mxu0 %v12477_v49 }
 0x644   : > { %v8865_v50 = vpack.c.bf16 %v7064_v0, %v7063_v31  ;;  %v8816_v20 = vpop.f32.mrb[24].mxu1 }
 0x645   : > { %v7021_v25 = vadd.f32 %v8816_v20, %v12456_v4  ;;  %v7012_v36 = vpop.f32.mrb[25].mxu1 }
 0x646   : > { %v7013_v11 = vadd.f32 %v7012_v36, %v12449_v8  ;;  %v8817_v21 = vpop.f32.mrb[26].mxu1  ;;  %8866 = vmatprep.subr.bf16.mxu0 %v8865_v50 }
 0x647   : > { %v7024_v23 = vadd.f32 %v8817_v21, %v12459_v48  ;;  %v7015_v45 = vpop.f32.mrb[27].mxu1  ;;  %8868 = vmatpush3.bf16.msra.mxu0 %v12487_v46  ;;  %v7069_v12 = vmax.f32 %v7021_v25, 0.0 }
 0x648   : > { %v7016_v1 = vadd.f32 %v7015_v45, %v12452_v3  ;;  %8870 = vmatprep.subr.bf16.mxu0 %v8869_v29  ;;  %v7067_v49 = vmax.f32 %v7013_v11, 0.0 }
 0x649   : > { %v7070_v55 = vmax.f32 %v7024_v23, 0.0 }
 0x64a   : > { %v7068_v52 = vmax.f32 %v7016_v1, 0.0 }
 0x64b   : > { %v8877_v56 = vpack.c.bf16 %v7070_v55, %v7069_v12  ;;  %8872 = vmatpush3.bf16.msra.mxu0 %v12485_v61 }
 0x64c   : > { %v8873_v4 = vpack.c.bf16 %v7068_v52, %v7067_v49  ;;  %v8820_v51 = vpop.f32.mrb[28].mxu1 }
 0x64d   : > { %v7037_v8 = vadd.f32 %v8820_v51, %v12468_v30  ;;  %v7028_v2 = vpop.f32.mrb[29].mxu1 }
 0x64e   : > { %v7029_v48 = vadd.f32 %v7028_v2, %v12462_v19  ;;  %v8821_v57 = vpop.f32.mrb[30].mxu1  ;;  %8874 = vmatprep.subr.bf16.mxu0 %v8873_v4 }
 0x64f   : > { %v7040_v46 = vadd.f32 %v8821_v57, %v12471_v5  ;;  %v7031_v3 = vpop.f32.mrb[31].mxu1  ;;  %8876 = vmatpush3.bf16.msra.mxu0 %v12495_v13  ;;  %v7073_v63 = vmax.f32 %v7037_v8, 0.0 }
 0x650   : > { %v7032_v14 = vadd.f32 %v7031_v3, %v12465_v18  ;;  %8878 = vmatprep.subr.bf16.mxu0 %v8877_v56  ;;  %v7071_v61 = vmax.f32 %v7029_v48, 0.0  ;;  %v9455_v18 = vmov 0.0  }
 0x651   : > { %v7074_v17 = vmax.f32 %v7040_v46, 0.0  ;;  %8854 = vmatprep.mubr.msk.f32.mxu1 %vm9454_vm2, %v9455_v18 }
 0x652   : > { %v7072_v10 = vmax.f32 %v7032_v14, 0.0 }
 0x653   : > { %v8885_v41 = vpack.c.bf16 %v7074_v17, %v7073_v63  ;;  %8880 = vmatpush3.bf16.msra.mxu0 %v12493_v47  ;;  %v7161_v47 = vld [vmem:[%s12586_s6] sm:$0x1] }
 0x654   : > { %v8881_v19 = vpack.c.bf16 %v7072_v10, %v7071_v61 }
 0x656   : > { %8882 = vmatprep.subr.bf16.mxu0 %v8881_v19 }
 0x657   : > { %8884 = vmatpush3.bf16.msra.mxu0 %v12503_v40 }
 0x658   : > { %8886 = vmatprep.subr.bf16.mxu0 %v8885_v41 }
 0x65b   : > { %8888 = vmatpush3.bf16.msra.mxu0 %v12501_v15 }
 0x65e   : > { %7140 = vmatmul.mubr.f32.vlgmr.msra.gmra.mrb[32].mxu0 %v9452_v27 }
 0x731   : > { %v8448_v30 = vpop.f32.mrb[32].mxu0 }
 0x732   : > { %v8449_v5 = vpop.f32.mrb[33].mxu0 }
 0x733   : > { %v8450_v13 = vadd.f32 %v8449_v5, %v8448_v30 }
 0x735   : > { %8855 = vmatmul.mubr.f32.vlgmr.msra.gmra.mrb[32].mxu1 %v8450_v13 }
 0x808   : > { %v7228_v40 = vpop.f32.mrb[32].mxu1 }
 0x809   : > { %v7229_v15 = vadd.f32 %v7228_v40, %v7161_v47  ;;  %v8856_v32 = vpop.f32.mrb[33].mxu1 }
 0x80b   : > { %7232 = vst [vmem:[%s270_s13] sm:$0x1] %v7229_v15 }
 0x80c   : > { %9400 = shalt.err (!%p9397_p3)
}
 0x80d   : > { %s9401_s22 = scalar_lea.hbm %s12538_s21, 16  ;;  %s9405_s8 = scalar_lea.hbm %s12587_s7, 32 }
 0x80e   : > { %p9402_p4 = scmp.ne.s32.totalorder %s12538_s21, %s9401_s22  ;;  %p9406_p9 = scmp.lt.u32.totalorder %s12538_s21, %s12587_s7 }
 0x80f   : > { %p9407_p10 = scmp.lt.u32.totalorder %s9405_s8, %s9401_s22  ;;  %p9409_p12 = scmp.lt.u32.totalorder %s9401_s22, %s12538_s21 }
 0x810   : > { %p9403_p7 = pnand %p9402_p4, %p9535_p5 }
 0x811   : > { %p9408_p11 = por %p9407_p10, %p9406_p9 }
 0x812   : > { %p9404_p8 = pneg %p9403_p7 }
 0x813   : > { %p9410_p13 = por %p9409_p12, %p9408_p11 }
 0x815   : > { %p9411_p0 = pnand %p9410_p13, %p9404_p8 }
 0x817   : > { %9414 = shalt.err (!%p9411_p0)
}
 0x818   : > { %9179 = dma.vmem_to_hbm [thread:$0]  (%p9535_p5), %s12540_s14, 16, %s12538_s21, %s7234_s17  }
 0x819 PF: > { %p9185_p1 = scmp.ge.s32.totalorder %s9449_s27, 2  ;;  %s7258_s15 = sand.u32 1, %s9437_s24  }
 0x81a   : > { %s7259_s16 = scalar_lea.sflag [#allocation4], %s7258_s15 }
 0x81b   : > { %p9182_p2 = pnand %p9185_p1, %p9539_p6 }
 0x81d   : > { %9432 = dma.done.wait (!%p9182_p2), %s7259_s16, 16  }
 0x81e   : > { %9434 = vsyncadd (!%p9182_p2), %s7259_s16, 4294967280  ;;  %p17_p3 = scmp.ge.s32.totalorder %s9522_s30, 4   ;;  %s12777_s24 = smov %s9441_s25 }
 0x81f   : > { %s12778_s25 = smov %s9445_s26  ;;  %s12779_s26 = smov %s9533_s10 }
 0x820   : > { %s12780_s27 = smov %s9522_s30  ;;  %19 = sbr.rel (!%p17_p3) target bundleno = 3 (0x3), region = 93 }
 0x827   :  { %7263 = vsyncpa [#allocation4], 1 }
 0x828   :  { %7265 = vsyncpa [#allocation4 + $0x1], 1 }

</bundles_post_ra>
